<compile_context>
chip_gen: v7x
topology: tpu7x:2x2x1
jax: 0.10.0
libtpu: 0.0.40
codegen_flags: <defaults>
</compile_context>

<pallas_src>
import math

import jax
import jax.numpy as jnp
from jax.experimental import pallas as pl
from jax.experimental.pallas import tpu as pltpu


_VMEM = pl.BlockSpec(memory_space=pltpu.MemorySpace.VMEM)


# ---------------------------------------------------------------------------
# Fused Pallas kernel (encoder wavefront + decoder + output projection)
# ---------------------------------------------------------------------------
def _make_fused_dcrnn_kernel(n_nodes, t_hist, n_pred, n_layers, hidden, out_dim):
    """Build the fused kernel as a closure over the (static) problem sizes.

    Ref order: a (bf16), x_flat (bf16),
               enc params (n_layers x 5), dec params (n_layers x 5),
               out_w (bf16), out_b (f32) | out
    Per-layer param order: (wx = [wru_x|wc_x] bf16, wru_h bf16, wc_h bf16, bru f32, bc f32).
    """
    bf16 = jnp.bfloat16
    f32 = jnp.float32

    def kernel(*refs):
        a_ref, x_ref = refs[0], refs[1]
        idx = 2
        enc = [refs[idx + 5 * l: idx + 5 * l + 5] for l in range(n_layers)]
        idx += 5 * n_layers
        dec = [refs[idx + 5 * l: idx + 5 * l + 5] for l in range(n_layers)]
        idx += 5 * n_layers
        ow_ref, ob_ref = refs[idx], refs[idx + 1]
        out_ref = refs[idx + 2]

        n = n_nodes
        a = a_ref[...]                                   # bf16 [N, N], loaded once

        # Hoist all loop-invariant parameter loads (+ bias broadcasts) out of the
        # unrolled loops so the Python-for unroll does not re-emit vld/broadcast.
        def load(cell):
            wx_ref, wruh_ref, wch_ref, bru_ref, bc_ref = cell
            return (wx_ref[...], wruh_ref[...], wch_ref[...],
                    jnp.broadcast_to(bru_ref[...], (n, 2 * hidden)),
                    jnp.broadcast_to(bc_ref[...], (n, hidden)))

        enc_p = [load(c) for c in enc]
        dec_p = [load(c) for c in dec]
        ow = ow_ref[...]                                 # bf16 [H, O]
        ob = jnp.broadcast_to(ob_ref[...], (n, out_dim))  # f32 [N, O]

        def gated_update(h, xw_ru, xw_c, wru_h, wc_h, bru_b, bc_b):
            # h-dependent half of one DCGRU cell step (bf16 MXU, f32 accumulate,
            # f32 elementwise gating):
            #   ru = sigmoid(A @ (x Wru_x + h Wru_h) + bru)
            #   c  = tanh   (A @ (x Wc_x  + (r*h) Wc_h) + bc)
            #   h' = u*h + (1-u)*c
            z_ru = jnp.dot(h.astype(bf16), wru_h, preferred_element_type=f32)
            if xw_ru is not None:
                z_ru = z_ru + xw_ru
            ru = jax.nn.sigmoid(
                jnp.dot(a, z_ru.astype(bf16), preferred_element_type=f32) + bru_b)
            r = ru[:, :hidden]
            u = ru[:, hidden:2 * hidden]
            z_c = jnp.dot((r * h).astype(bf16), wc_h, preferred_element_type=f32)
            if xw_c is not None:
                z_c = z_c + xw_c
            c = jnp.tanh(
                jnp.dot(a, z_c.astype(bf16), preferred_element_type=f32) + bc_b)
            return u * h + (1.0 - u) * c

        def x_proj(x_bf, wx):
            # single fused [Fin, 3H] projection, split into (ru, c) parts (f32)
            xw = jnp.dot(x_bf, wx, preferred_element_type=f32)
            return xw[:, :2 * hidden], xw[:, 2 * hidden:]

        # ------------------------------ encoder ------------------------------
        # Layer-0 input projections for the whole history: one M = T*N slab matmul.
        xw0_all = jnp.dot(x_ref[...], enc_p[0][0],
                          preferred_element_type=f32)        # [T*N, 3H]

        hs = [jnp.zeros((n, hidden), f32) for _ in range(n_layers)]
        prev_out = [None] * n_layers
        # Wavefront schedule: at step w, layer l processes time t = w - l.
        # Layer l consumes layer (l-1)'s output produced at step w-1, so the per-step
        # layer updates are mutually independent -> ILP across layers.
        for w in range(t_hist + n_layers - 1):
            cur_out = [None] * n_layers
            for l in range(n_layers):
                t = w - l
                if not (0 <= t < t_hist):
                    continue
                wx, wru_h, wc_h, bru_b, bc_b = enc_p[l]
                if l == 0:
                    xw = xw0_all[t * n:(t + 1) * n]
                    xw_ru, xw_c = xw[:, :2 * hidden], xw[:, 2 * hidden:]
                else:
                    xw_ru, xw_c = x_proj(prev_out[l - 1].astype(bf16), wx)
                hs[l] = gated_update(hs[l], xw_ru, xw_c, wru_h, wc_h, bru_b, bc_b)
                cur_out[l] = hs[l]
            prev_out = cur_out

        # ----------------- decoder (+ fused output projection) -----------------
        # Decoder layers are inherently serial within a step (layer l feeds layer l+1,
        # output feeds back as next step's input) -> no wavefront possible.
        ys = []
        x_in = None   # first decoder input is all-zeros -> skip dead x-path matmuls
        for _ in range(n_pred):
            for l in range(n_layers):
                wx, wru_h, wc_h, bru_b, bc_b = dec_p[l]
                if x_in is None:
                    xw_ru, xw_c = None, None
                else:
                    xw_ru, xw_c = x_proj(x_in.astype(bf16), wx)
                hs[l] = gated_update(hs[l], xw_ru, xw_c, wru_h, wc_h, bru_b, bc_b)
                x_in = hs[l]
            y = jnp.dot(x_in.astype(bf16), ow, preferred_element_type=f32) + ob
            ys.append(y)
            x_in = y

        # Single dense writeback of all predictions (one store instead of n_pred
        # masked stores on the serial chain).
        out_ref[...] = jnp.concatenate(ys, axis=0)       # [n_pred*N, O]

    return kernel


# ---------------------------------------------------------------------------
# Forward wrapper: one pallas_call for the whole model
# ---------------------------------------------------------------------------
def dcrnn_forward(params, inputs, a_norm, batch_seen, n_pred, hidden_size):
    """inputs: [N, T, input_dim] -> [N, n_pred, output_dim]."""
    n, t, input_dim = inputs.shape
    n_layers = len(params["encoder"])
    output_dim = params["out_w"].shape[1]

    # curriculum-learning sampling threshold (dead code for targets=None inference)
    cl_decay_steps = 10000
    _ = cl_decay_steps / (cl_decay_steps + math.exp(batch_seen / cl_decay_steps))

    bf16 = jnp.bfloat16

    # [N, T, F] -> [T*N, F] slab (bf16) so the hoisted layer-0 projection is one matmul.
    x_flat = jnp.transpose(inputs, (1, 0, 2)).reshape(t * n, input_dim).astype(bf16)

    # Per cell: fuse the x-projection weights into one [Fin, 3H] matrix; cast all
    # matmul weights to bf16 once here (biases stay f32).
    flat_params = []
    for p in params["encoder"] + params["decoder"]:
        wx = jnp.concatenate([p["wru_x"], p["wc_x"]], axis=1).astype(bf16)
        flat_params += [wx, p["wru_h"].astype(bf16), p["wc_h"].astype(bf16),
                        p["bru"], p["bc"]]
    args = ([a_norm.astype(bf16), x_flat] + flat_params
            + [params["out_w"].astype(bf16), params["out_b"]])

    kernel = _make_fused_dcrnn_kernel(n, t, n_pred, n_layers,
                                      hidden_size, output_dim)
    out = pl.pallas_call(
        kernel,
        out_shape=jax.ShapeDtypeStruct((n_pred * n, output_dim), jnp.float32),
        in_specs=[_VMEM] * len(args),
        out_specs=_VMEM,
    )(*args)
    return out.reshape(n_pred, n, output_dim).transpose(1, 0, 2)   # [N, n_pred, O]


# ---------------------------------------------------------------------------
# Pure-JAX reference (mirrors the PyTorch per-step formulation) for a sanity check
# ---------------------------------------------------------------------------
def _dcrnn_reference(params, inputs, a_norm, n_pred, hidden_size):
    n, t, _ = inputs.shape
    n_layers = len(params["encoder"])

    def cell(p, x, h):
        z = jnp.dot(a_norm, jnp.concatenate([x, h], -1))
        ru = jax.nn.sigmoid(
            z @ jnp.concatenate([p["wru_x"], p["wru_h"]], 0) + p["bru"])
        r, u = ru[:, :hidden_size], ru[:, hidden_size:]
        zc = jnp.dot(a_norm, jnp.concatenate([x, r * h], -1))
        c = jnp.tanh(zc @ jnp.concatenate([p["wc_x"], p["wc_h"]], 0) + p["bc"])
        return u * h + (1.0 - u) * c

    states = [jnp.zeros((n, hidden_size), jnp.float32) for _ in range(n_layers)]
    seq = [inputs[:, i, :] for i in range(t)]
    for l in range(n_layers):
        for i in range(t):
            s = cell(params["encoder"][l], seq[i], states[l])
            seq[i] = s
            states[l] = s
    dec_in = jnp.zeros((n, params["out_w"].shape[1]), jnp.float32)
    outs = []
    for _ in range(n_pred):
        for l in range(n_layers):
            s = cell(params["decoder"][l], dec_in, states[l])
            dec_in = s
            states[l] = s
        dec_in = dec_in @ params["out_w"] + params["out_b"]
        outs.append(dec_in)
    return jnp.stack(outs, 1)


# ---------------------------------------------------------------------------
# Parameter initialization (deterministic, synthetic)
# ---------------------------------------------------------------------------
def _init_cell_params(key, input_size, hidden_size):
    k = jax.random.split(key, 4)
    in_tot = input_size + hidden_size
    s = 1.0 / math.sqrt(in_tot)
    wru = jax.random.uniform(k[0], (in_tot, 2 * hidden_size),
                             minval=-s, maxval=s, dtype=jnp.float32)
    wc = jax.random.uniform(k[1], (in_tot, hidden_size),
                            minval=-s, maxval=s, dtype=jnp.float32)
    bru = jax.random.uniform(k[2], (1, 2 * hidden_size),
                             minval=-s, maxval=s, dtype=jnp.float32)
    bc = jax.random.uniform(k[3], (1, hidden_size),
                            minval=-s, maxval=s, dtype=jnp.float32)
    return {"wru_x": wru[:input_size], "wru_h": wru[input_size:], "bru": bru,
            "wc_x": wc[:input_size], "wc_h": wc[input_size:], "bc": bc}


def init_dcrnn_params(key, input_dim, output_dim, hidden_size, n_layers):
    keys = jax.random.split(key, 2 * n_layers + 1)
    enc = [_init_cell_params(keys[0], input_dim, hidden_size)]
    for i in range(1, n_layers):
        enc.append(_init_cell_params(keys[i], hidden_size, hidden_size))
    dec = [_init_cell_params(keys[n_layers], output_dim, hidden_size)]
    for i in range(1, n_layers):
        dec.append(_init_cell_params(keys[n_layers + i], hidden_size, hidden_size))
    ko1, ko2 = jax.random.split(keys[-1])
    s = 1.0 / math.sqrt(hidden_size)
    out_w = jax.random.uniform(ko1, (hidden_size, output_dim),
                               minval=-s, maxval=s, dtype=jnp.float32)
    out_b = jax.random.uniform(ko2, (1, output_dim),
                               minval=-s, maxval=s, dtype=jnp.float32)
    return {"encoder": enc, "decoder": dec, "out_w": out_w, "out_b": out_b}


def make_norm_adjacency(key, n):
    """Symmetric random graph with self-loops, sym-normalized (DGL norm='both')."""
    a = (jax.random.uniform(key, (n, n)) < 0.3).astype(jnp.float32)
    a = jnp.maximum(a, a.T)
    a = jnp.maximum(a, jnp.eye(n, dtype=jnp.float32))
    deg = a.sum(axis=1)
    d_inv_sqrt = 1.0 / jnp.sqrt(deg)
    return a * d_inv_sqrt[:, None] * d_inv_sqrt[None, :]


# ---------------------------------------------------------------------------
if __name__ == "__main__":
    N = 16          # graph nodes
    T = 8           # history length
    INPUT_DIM = 3
    OUTPUT_DIM = 2
    HIDDEN = 32
    N_LAYERS = 2
    N_PRED = 4
    BATCH_SEEN = 100

    key = jax.random.PRNGKey(0)
    k_par, k_adj, k_x = jax.random.split(key, 3)

    params = init_dcrnn_params(k_par, INPUT_DIM, OUTPUT_DIM, HIDDEN, N_LAYERS)
    a_norm = make_norm_adjacency(k_adj, N)
    x = jax.random.normal(k_x, (N, T, INPUT_DIM), dtype=jnp.float32)

    fwd = jax.jit(dcrnn_forward, static_argnums=(3, 4, 5))
    out = fwd(params, x, a_norm, BATCH_SEEN, N_PRED, HIDDEN)
    out = jax.block_until_ready(out)

    assert out.shape == (N, N_PRED, OUTPUT_DIM), out.shape
    assert bool(jnp.all(jnp.isfinite(out)))

    # Reference is pure f32; kernel uses single-pass bf16 MXU operands with f32
    # accumulation, so tolerance is loosened from 1e-3 accordingly.
    ref = _dcrnn_reference(params, x, a_norm, N_PRED, HIDDEN)
    assert bool(jnp.allclose(out, ref, rtol=5e-2, atol=5e-2)), \
        float(jnp.max(jnp.abs(out - ref)))

    print("KERNEL_OK")
</pallas_src>

<mosaic_0001>
module attributes {stable_mosaic.version = 11 : i64} {
  func.func @kernel(%arg0: memref<16x16xbf16, #tpu.memory_space<vmem>>, %arg1: memref<128x3xbf16, #tpu.memory_space<vmem>>, %arg2: memref<3x96xbf16, #tpu.memory_space<vmem>>, %arg3: memref<32x64xbf16, #tpu.memory_space<vmem>>, %arg4: memref<32x32xbf16, #tpu.memory_space<vmem>>, %arg5: memref<1x64xf32, #tpu.memory_space<vmem>>, %arg6: memref<1x32xf32, #tpu.memory_space<vmem>>, %arg7: memref<32x96xbf16, #tpu.memory_space<vmem>>, %arg8: memref<32x64xbf16, #tpu.memory_space<vmem>>, %arg9: memref<32x32xbf16, #tpu.memory_space<vmem>>, %arg10: memref<1x64xf32, #tpu.memory_space<vmem>>, %arg11: memref<1x32xf32, #tpu.memory_space<vmem>>, %arg12: memref<2x96xbf16, #tpu.memory_space<vmem>>, %arg13: memref<32x64xbf16, #tpu.memory_space<vmem>>, %arg14: memref<32x32xbf16, #tpu.memory_space<vmem>>, %arg15: memref<1x64xf32, #tpu.memory_space<vmem>>, %arg16: memref<1x32xf32, #tpu.memory_space<vmem>>, %arg17: memref<32x96xbf16, #tpu.memory_space<vmem>>, %arg18: memref<32x64xbf16, #tpu.memory_space<vmem>>, %arg19: memref<32x32xbf16, #tpu.memory_space<vmem>>, %arg20: memref<1x64xf32, #tpu.memory_space<vmem>>, %arg21: memref<1x32xf32, #tpu.memory_space<vmem>>, %arg22: memref<32x2xbf16, #tpu.memory_space<vmem>>, %arg23: memref<1x2xf32, #tpu.memory_space<vmem>>, %arg24: memref<64x2xf32, #tpu.memory_space<vmem>>) attributes {dimension_semantics = [], scalar_prefetch = 0 : i64, scratch_operands = 0 : i64, tpu.core_type = #tpu.core_type<tc>} {
    %c0 = arith.constant 0 : index
    %c0_0 = arith.constant 0 : index
    %0 = vector.load %arg0[%c0, %c0_0] : memref<16x16xbf16, #tpu.memory_space<vmem>>, vector<16x16xbf16>
    %c0_1 = arith.constant 0 : index
    %c0_2 = arith.constant 0 : index
    %1 = vector.load %arg2[%c0_1, %c0_2] : memref<3x96xbf16, #tpu.memory_space<vmem>>, vector<3x96xbf16>
    %c0_3 = arith.constant 0 : index
    %c0_4 = arith.constant 0 : index
    %2 = vector.load %arg3[%c0_3, %c0_4] : memref<32x64xbf16, #tpu.memory_space<vmem>>, vector<32x64xbf16>
    %c0_5 = arith.constant 0 : index
    %c0_6 = arith.constant 0 : index
    %3 = vector.load %arg4[%c0_5, %c0_6] : memref<32x32xbf16, #tpu.memory_space<vmem>>, vector<32x32xbf16>
    %c0_7 = arith.constant 0 : index
    %c0_8 = arith.constant 0 : index
    %4 = vector.load %arg5[%c0_7, %c0_8] : memref<1x64xf32, #tpu.memory_space<vmem>>, vector<1x64xf32>
    %5 = vector.shape_cast %4 : vector<1x64xf32> to vector<1x64xf32>
    %6 = vector.broadcast %5 : vector<1x64xf32> to vector<16x64xf32>
    %c0_9 = arith.constant 0 : index
    %c0_10 = arith.constant 0 : index
    %7 = vector.load %arg6[%c0_9, %c0_10] : memref<1x32xf32, #tpu.memory_space<vmem>>, vector<1x32xf32>
    %8 = vector.shape_cast %7 : vector<1x32xf32> to vector<1x32xf32>
    %9 = vector.broadcast %8 : vector<1x32xf32> to vector<16x32xf32>
    %c0_11 = arith.constant 0 : index
    %c0_12 = arith.constant 0 : index
    %10 = vector.load %arg7[%c0_11, %c0_12] : memref<32x96xbf16, #tpu.memory_space<vmem>>, vector<32x96xbf16>
    %c0_13 = arith.constant 0 : index
    %c0_14 = arith.constant 0 : index
    %11 = vector.load %arg8[%c0_13, %c0_14] : memref<32x64xbf16, #tpu.memory_space<vmem>>, vector<32x64xbf16>
    %c0_15 = arith.constant 0 : index
    %c0_16 = arith.constant 0 : index
    %12 = vector.load %arg9[%c0_15, %c0_16] : memref<32x32xbf16, #tpu.memory_space<vmem>>, vector<32x32xbf16>
    %c0_17 = arith.constant 0 : index
    %c0_18 = arith.constant 0 : index
    %13 = vector.load %arg10[%c0_17, %c0_18] : memref<1x64xf32, #tpu.memory_space<vmem>>, vector<1x64xf32>
    %14 = vector.shape_cast %13 : vector<1x64xf32> to vector<1x64xf32>
    %15 = vector.broadcast %14 : vector<1x64xf32> to vector<16x64xf32>
    %c0_19 = arith.constant 0 : index
    %c0_20 = arith.constant 0 : index
    %16 = vector.load %arg11[%c0_19, %c0_20] : memref<1x32xf32, #tpu.memory_space<vmem>>, vector<1x32xf32>
    %17 = vector.shape_cast %16 : vector<1x32xf32> to vector<1x32xf32>
    %18 = vector.broadcast %17 : vector<1x32xf32> to vector<16x32xf32>
    %c0_21 = arith.constant 0 : index
    %c0_22 = arith.constant 0 : index
    %19 = vector.load %arg12[%c0_21, %c0_22] : memref<2x96xbf16, #tpu.memory_space<vmem>>, vector<2x96xbf16>
    %c0_23 = arith.constant 0 : index
    %c0_24 = arith.constant 0 : index
    %20 = vector.load %arg13[%c0_23, %c0_24] : memref<32x64xbf16, #tpu.memory_space<vmem>>, vector<32x64xbf16>
    %c0_25 = arith.constant 0 : index
    %c0_26 = arith.constant 0 : index
    %21 = vector.load %arg14[%c0_25, %c0_26] : memref<32x32xbf16, #tpu.memory_space<vmem>>, vector<32x32xbf16>
    %c0_27 = arith.constant 0 : index
    %c0_28 = arith.constant 0 : index
    %22 = vector.load %arg15[%c0_27, %c0_28] : memref<1x64xf32, #tpu.memory_space<vmem>>, vector<1x64xf32>
    %23 = vector.shape_cast %22 : vector<1x64xf32> to vector<1x64xf32>
    %24 = vector.broadcast %23 : vector<1x64xf32> to vector<16x64xf32>
    %c0_29 = arith.constant 0 : index
    %c0_30 = arith.constant 0 : index
    %25 = vector.load %arg16[%c0_29, %c0_30] : memref<1x32xf32, #tpu.memory_space<vmem>>, vector<1x32xf32>
    %26 = vector.shape_cast %25 : vector<1x32xf32> to vector<1x32xf32>
    %27 = vector.broadcast %26 : vector<1x32xf32> to vector<16x32xf32>
    %c0_31 = arith.constant 0 : index
    %c0_32 = arith.constant 0 : index
    %28 = vector.load %arg17[%c0_31, %c0_32] : memref<32x96xbf16, #tpu.memory_space<vmem>>, vector<32x96xbf16>
    %c0_33 = arith.constant 0 : index
    %c0_34 = arith.constant 0 : index
    %29 = vector.load %arg18[%c0_33, %c0_34] : memref<32x64xbf16, #tpu.memory_space<vmem>>, vector<32x64xbf16>
    %c0_35 = arith.constant 0 : index
    %c0_36 = arith.constant 0 : index
    %30 = vector.load %arg19[%c0_35, %c0_36] : memref<32x32xbf16, #tpu.memory_space<vmem>>, vector<32x32xbf16>
    %c0_37 = arith.constant 0 : index
    %c0_38 = arith.constant 0 : index
    %31 = vector.load %arg20[%c0_37, %c0_38] : memref<1x64xf32, #tpu.memory_space<vmem>>, vector<1x64xf32>
    %32 = vector.shape_cast %31 : vector<1x64xf32> to vector<1x64xf32>
    %33 = vector.broadcast %32 : vector<1x64xf32> to vector<16x64xf32>
    %c0_39 = arith.constant 0 : index
    %c0_40 = arith.constant 0 : index
    %34 = vector.load %arg21[%c0_39, %c0_40] : memref<1x32xf32, #tpu.memory_space<vmem>>, vector<1x32xf32>
    %35 = vector.shape_cast %34 : vector<1x32xf32> to vector<1x32xf32>
    %36 = vector.broadcast %35 : vector<1x32xf32> to vector<16x32xf32>
    %c0_41 = arith.constant 0 : index
    %c0_42 = arith.constant 0 : index
    %37 = vector.load %arg22[%c0_41, %c0_42] : memref<32x2xbf16, #tpu.memory_space<vmem>>, vector<32x2xbf16>
    %c0_43 = arith.constant 0 : index
    %c0_44 = arith.constant 0 : index
    %38 = vector.load %arg23[%c0_43, %c0_44] : memref<1x2xf32, #tpu.memory_space<vmem>>, vector<1x2xf32>
    %39 = vector.shape_cast %38 : vector<1x2xf32> to vector<1x2xf32>
    %40 = vector.broadcast %39 : vector<1x2xf32> to vector<16x2xf32>
    %c0_45 = arith.constant 0 : index
    %c0_46 = arith.constant 0 : index
    %41 = vector.load %arg1[%c0_45, %c0_46] : memref<128x3xbf16, #tpu.memory_space<vmem>>, vector<128x3xbf16>
    %cst = arith.constant dense<0.000000e+00> : vector<128x96xf32>
    %42 = tpu.matmul %41, %1, %cst {dimension_numbers = #tpu.dot_dimension_numbers<[1], [0], [0], [1], [0, 0, 1, 1], [], []>} : vector<128x3xbf16>, vector<3x96xbf16>, vector<128x96xf32> -> vector<128x96xf32>
    %cst_47 = arith.constant 0.000000e+00 : f32
    %43 = vector.broadcast %cst_47 : f32 to vector<16x32xf32>
    %cst_48 = arith.constant 0.000000e+00 : f32
    %44 = vector.broadcast %cst_48 : f32 to vector<16x32xf32>
    %45 = vector.extract_strided_slice %42 {offsets = [0, 0], sizes = [16, 96], strides = [1, 1]} : vector<128x96xf32> to vector<16x96xf32>
    %46 = vector.extract_strided_slice %45 {offsets = [0, 0], sizes = [16, 64], strides = [1, 1]} : vector<16x96xf32> to vector<16x64xf32>
    %47 = vector.extract_strided_slice %45 {offsets = [0, 64], sizes = [16, 32], strides = [1, 1]} : vector<16x96xf32> to vector<16x32xf32>
    %48 = arith.truncf %43 : vector<16x32xf32> to vector<16x32xbf16>
    %cst_49 = arith.constant dense<0.000000e+00> : vector<16x64xf32>
    %49 = tpu.matmul %48, %2, %cst_49 {dimension_numbers = #tpu.dot_dimension_numbers<[1], [0], [0], [1], [0, 0, 1, 1], [], []>} : vector<16x32xbf16>, vector<32x64xbf16>, vector<16x64xf32> -> vector<16x64xf32>
    %50 = arith.addf %49, %46 : vector<16x64xf32>
    %51 = arith.truncf %50 : vector<16x64xf32> to vector<16x64xbf16>
    %cst_50 = arith.constant dense<0.000000e+00> : vector<16x64xf32>
    %52 = tpu.matmul %0, %51, %cst_50 {dimension_numbers = #tpu.dot_dimension_numbers<[1], [0], [0], [1], [0, 0, 1, 1], [], []>} : vector<16x16xbf16>, vector<16x64xbf16>, vector<16x64xf32> -> vector<16x64xf32>
    %53 = arith.addf %52, %6 : vector<16x64xf32>
    %54 = arith.negf %53 : vector<16x64xf32>
    %55 = math.exp %54 : vector<16x64xf32>
    %cst_51 = arith.constant 1.000000e+00 : f32
    %56 = vector.broadcast %cst_51 : f32 to vector<16x64xf32>
    %57 = arith.addf %56, %55 : vector<16x64xf32>
    %58 = arith.divf %56, %57 : vector<16x64xf32>
    %59 = vector.extract_strided_slice %58 {offsets = [0, 0], sizes = [16, 32], strides = [1, 1]} : vector<16x64xf32> to vector<16x32xf32>
    %60 = vector.extract_strided_slice %58 {offsets = [0, 32], sizes = [16, 32], strides = [1, 1]} : vector<16x64xf32> to vector<16x32xf32>
    %61 = arith.mulf %59, %43 : vector<16x32xf32>
    %62 = arith.truncf %61 : vector<16x32xf32> to vector<16x32xbf16>
    %cst_52 = arith.constant dense<0.000000e+00> : vector<16x32xf32>
    %63 = tpu.matmul %62, %3, %cst_52 {dimension_numbers = #tpu.dot_dimension_numbers<[1], [0], [0], [1], [0, 0, 1, 1], [], []>} : vector<16x32xbf16>, vector<32x32xbf16>, vector<16x32xf32> -> vector<16x32xf32>
    %64 = arith.addf %63, %47 : vector<16x32xf32>
    %65 = arith.truncf %64 : vector<16x32xf32> to vector<16x32xbf16>
    %cst_53 = arith.constant dense<0.000000e+00> : vector<16x32xf32>
    %66 = tpu.matmul %0, %65, %cst_53 {dimension_numbers = #tpu.dot_dimension_numbers<[1], [0], [0], [1], [0, 0, 1, 1], [], []>} : vector<16x16xbf16>, vector<16x32xbf16>, vector<16x32xf32> -> vector<16x32xf32>
    %67 = arith.addf %66, %9 : vector<16x32xf32>
    %68 = math.tanh %67 : vector<16x32xf32>
    %69 = arith.mulf %60, %43 : vector<16x32xf32>
    %cst_54 = arith.constant 1.000000e+00 : f32
    %70 = vector.broadcast %cst_54 : f32 to vector<16x32xf32>
    %71 = arith.subf %70, %60 : vector<16x32xf32>
    %72 = arith.mulf %71, %68 : vector<16x32xf32>
    %73 = arith.addf %69, %72 : vector<16x32xf32>
    %74 = vector.extract_strided_slice %42 {offsets = [16, 0], sizes = [16, 96], strides = [1, 1]} : vector<128x96xf32> to vector<16x96xf32>
    %75 = vector.extract_strided_slice %74 {offsets = [0, 0], sizes = [16, 64], strides = [1, 1]} : vector<16x96xf32> to vector<16x64xf32>
    %76 = vector.extract_strided_slice %74 {offsets = [0, 64], sizes = [16, 32], strides = [1, 1]} : vector<16x96xf32> to vector<16x32xf32>
    %77 = arith.truncf %73 : vector<16x32xf32> to vector<16x32xbf16>
    %cst_55 = arith.constant dense<0.000000e+00> : vector<16x64xf32>
    %78 = tpu.matmul %77, %2, %cst_55 {dimension_numbers = #tpu.dot_dimension_numbers<[1], [0], [0], [1], [0, 0, 1, 1], [], []>} : vector<16x32xbf16>, vector<32x64xbf16>, vector<16x64xf32> -> vector<16x64xf32>
    %79 = arith.addf %78, %75 : vector<16x64xf32>
    %80 = arith.truncf %79 : vector<16x64xf32> to vector<16x64xbf16>
    %cst_56 = arith.constant dense<0.000000e+00> : vector<16x64xf32>
    %81 = tpu.matmul %0, %80, %cst_56 {dimension_numbers = #tpu.dot_dimension_numbers<[1], [0], [0], [1], [0, 0, 1, 1], [], []>} : vector<16x16xbf16>, vector<16x64xbf16>, vector<16x64xf32> -> vector<16x64xf32>
    %82 = arith.addf %81, %6 : vector<16x64xf32>
    %83 = arith.negf %82 : vector<16x64xf32>
    %84 = math.exp %83 : vector<16x64xf32>
    %cst_57 = arith.constant 1.000000e+00 : f32
    %85 = vector.broadcast %cst_57 : f32 to vector<16x64xf32>
    %86 = arith.addf %85, %84 : vector<16x64xf32>
    %87 = arith.divf %85, %86 : vector<16x64xf32>
    %88 = vector.extract_strided_slice %87 {offsets = [0, 0], sizes = [16, 32], strides = [1, 1]} : vector<16x64xf32> to vector<16x32xf32>
    %89 = vector.extract_strided_slice %87 {offsets = [0, 32], sizes = [16, 32], strides = [1, 1]} : vector<16x64xf32> to vector<16x32xf32>
    %90 = arith.mulf %88, %73 : vector<16x32xf32>
    %91 = arith.truncf %90 : vector<16x32xf32> to vector<16x32xbf16>
    %cst_58 = arith.constant dense<0.000000e+00> : vector<16x32xf32>
    %92 = tpu.matmul %91, %3, %cst_58 {dimension_numbers = #tpu.dot_dimension_numbers<[1], [0], [0], [1], [0, 0, 1, 1], [], []>} : vector<16x32xbf16>, vector<32x32xbf16>, vector<16x32xf32> -> vector<16x32xf32>
    %93 = arith.addf %92, %76 : vector<16x32xf32>
    %94 = arith.truncf %93 : vector<16x32xf32> to vector<16x32xbf16>
    %cst_59 = arith.constant dense<0.000000e+00> : vector<16x32xf32>
    %95 = tpu.matmul %0, %94, %cst_59 {dimension_numbers = #tpu.dot_dimension_numbers<[1], [0], [0], [1], [0, 0, 1, 1], [], []>} : vector<16x16xbf16>, vector<16x32xbf16>, vector<16x32xf32> -> vector<16x32xf32>
    %96 = arith.addf %95, %9 : vector<16x32xf32>
    %97 = math.tanh %96 : vector<16x32xf32>
    %98 = arith.mulf %89, %73 : vector<16x32xf32>
    %cst_60 = arith.constant 1.000000e+00 : f32
    %99 = vector.broadcast %cst_60 : f32 to vector<16x32xf32>
    %100 = arith.subf %99, %89 : vector<16x32xf32>
    %101 = arith.mulf %100, %97 : vector<16x32xf32>
    %102 = arith.addf %98, %101 : vector<16x32xf32>
    %103 = arith.truncf %73 : vector<16x32xf32> to vector<16x32xbf16>
    %cst_61 = arith.constant dense<0.000000e+00> : vector<16x96xf32>
    %104 = tpu.matmul %103, %10, %cst_61 {dimension_numbers = #tpu.dot_dimension_numbers<[1], [0], [0], [1], [0, 0, 1, 1], [], []>} : vector<16x32xbf16>, vector<32x96xbf16>, vector<16x96xf32> -> vector<16x96xf32>
    %105 = vector.extract_strided_slice %104 {offsets = [0, 0], sizes = [16, 64], strides = [1, 1]} : vector<16x96xf32> to vector<16x64xf32>
    %106 = vector.extract_strided_slice %104 {offsets = [0, 64], sizes = [16, 32], strides = [1, 1]} : vector<16x96xf32> to vector<16x32xf32>
    %107 = arith.truncf %44 : vector<16x32xf32> to vector<16x32xbf16>
    %cst_62 = arith.constant dense<0.000000e+00> : vector<16x64xf32>
    %108 = tpu.matmul %107, %11, %cst_62 {dimension_numbers = #tpu.dot_dimension_numbers<[1], [0], [0], [1], [0, 0, 1, 1], [], []>} : vector<16x32xbf16>, vector<32x64xbf16>, vector<16x64xf32> -> vector<16x64xf32>
    %109 = arith.addf %108, %105 : vector<16x64xf32>
    %110 = arith.truncf %109 : vector<16x64xf32> to vector<16x64xbf16>
    %cst_63 = arith.constant dense<0.000000e+00> : vector<16x64xf32>
    %111 = tpu.matmul %0, %110, %cst_63 {dimension_numbers = #tpu.dot_dimension_numbers<[1], [0], [0], [1], [0, 0, 1, 1], [], []>} : vector<16x16xbf16>, vector<16x64xbf16>, vector<16x64xf32> -> vector<16x64xf32>
    %112 = arith.addf %111, %15 : vector<16x64xf32>
    %113 = arith.negf %112 : vector<16x64xf32>
    %114 = math.exp %113 : vector<16x64xf32>
    %cst_64 = arith.constant 1.000000e+00 : f32
    %115 = vector.broadcast %cst_64 : f32 to vector<16x64xf32>
    %116 = arith.addf %115, %114 : vector<16x64xf32>
    %117 = arith.divf %115, %116 : vector<16x64xf32>
    %118 = vector.extract_strided_slice %117 {offsets = [0, 0], sizes = [16, 32], strides = [1, 1]} : vector<16x64xf32> to vector<16x32xf32>
    %119 = vector.extract_strided_slice %117 {offsets = [0, 32], sizes = [16, 32], strides = [1, 1]} : vector<16x64xf32> to vector<16x32xf32>
    %120 = arith.mulf %118, %44 : vector<16x32xf32>
    %121 = arith.truncf %120 : vector<16x32xf32> to vector<16x32xbf16>
    %cst_65 = arith.constant dense<0.000000e+00> : vector<16x32xf32>
    %122 = tpu.matmul %121, %12, %cst_65 {dimension_numbers = #tpu.dot_dimension_numbers<[1], [0], [0], [1], [0, 0, 1, 1], [], []>} : vector<16x32xbf16>, vector<32x32xbf16>, vector<16x32xf32> -> vector<16x32xf32>
    %123 = arith.addf %122, %106 : vector<16x32xf32>
    %124 = arith.truncf %123 : vector<16x32xf32> to vector<16x32xbf16>
    %cst_66 = arith.constant dense<0.000000e+00> : vector<16x32xf32>
    %125 = tpu.matmul %0, %124, %cst_66 {dimension_numbers = #tpu.dot_dimension_numbers<[1], [0], [0], [1], [0, 0, 1, 1], [], []>} : vector<16x16xbf16>, vector<16x32xbf16>, vector<16x32xf32> -> vector<16x32xf32>
    %126 = arith.addf %125, %18 : vector<16x32xf32>
    %127 = math.tanh %126 : vector<16x32xf32>
    %128 = arith.mulf %119, %44 : vector<16x32xf32>
    %cst_67 = arith.constant 1.000000e+00 : f32
    %129 = vector.broadcast %cst_67 : f32 to vector<16x32xf32>
    %130 = arith.subf %129, %119 : vector<16x32xf32>
    %131 = arith.mulf %130, %127 : vector<16x32xf32>
    %132 = arith.addf %128, %131 : vector<16x32xf32>
    %133 = vector.extract_strided_slice %42 {offsets = [32, 0], sizes = [16, 96], strides = [1, 1]} : vector<128x96xf32> to vector<16x96xf32>
    %134 = vector.extract_strided_slice %133 {offsets = [0, 0], sizes = [16, 64], strides = [1, 1]} : vector<16x96xf32> to vector<16x64xf32>
    %135 = vector.extract_strided_slice %133 {offsets = [0, 64], sizes = [16, 32], strides = [1, 1]} : vector<16x96xf32> to vector<16x32xf32>
    %136 = arith.truncf %102 : vector<16x32xf32> to vector<16x32xbf16>
    %cst_68 = arith.constant dense<0.000000e+00> : vector<16x64xf32>
    %137 = tpu.matmul %136, %2, %cst_68 {dimension_numbers = #tpu.dot_dimension_numbers<[1], [0], [0], [1], [0, 0, 1, 1], [], []>} : vector<16x32xbf16>, vector<32x64xbf16>, vector<16x64xf32> -> vector<16x64xf32>
    %138 = arith.addf %137, %134 : vector<16x64xf32>
    %139 = arith.truncf %138 : vector<16x64xf32> to vector<16x64xbf16>
    %cst_69 = arith.constant dense<0.000000e+00> : vector<16x64xf32>
    %140 = tpu.matmul %0, %139, %cst_69 {dimension_numbers = #tpu.dot_dimension_numbers<[1], [0], [0], [1], [0, 0, 1, 1], [], []>} : vector<16x16xbf16>, vector<16x64xbf16>, vector<16x64xf32> -> vector<16x64xf32>
    %141 = arith.addf %140, %6 : vector<16x64xf32>
    %142 = arith.negf %141 : vector<16x64xf32>
    %143 = math.exp %142 : vector<16x64xf32>
    %cst_70 = arith.constant 1.000000e+00 : f32
    %144 = vector.broadcast %cst_70 : f32 to vector<16x64xf32>
    %145 = arith.addf %144, %143 : vector<16x64xf32>
    %146 = arith.divf %144, %145 : vector<16x64xf32>
    %147 = vector.extract_strided_slice %146 {offsets = [0, 0], sizes = [16, 32], strides = [1, 1]} : vector<16x64xf32> to vector<16x32xf32>
    %148 = vector.extract_strided_slice %146 {offsets = [0, 32], sizes = [16, 32], strides = [1, 1]} : vector<16x64xf32> to vector<16x32xf32>
    %149 = arith.mulf %147, %102 : vector<16x32xf32>
    %150 = arith.truncf %149 : vector<16x32xf32> to vector<16x32xbf16>
    %cst_71 = arith.constant dense<0.000000e+00> : vector<16x32xf32>
    %151 = tpu.matmul %150, %3, %cst_71 {dimension_numbers = #tpu.dot_dimension_numbers<[1], [0], [0], [1], [0, 0, 1, 1], [], []>} : vector<16x32xbf16>, vector<32x32xbf16>, vector<16x32xf32> -> vector<16x32xf32>
    %152 = arith.addf %151, %135 : vector<16x32xf32>
    %153 = arith.truncf %152 : vector<16x32xf32> to vector<16x32xbf16>
    %cst_72 = arith.constant dense<0.000000e+00> : vector<16x32xf32>
    %154 = tpu.matmul %0, %153, %cst_72 {dimension_numbers = #tpu.dot_dimension_numbers<[1], [0], [0], [1], [0, 0, 1, 1], [], []>} : vector<16x16xbf16>, vector<16x32xbf16>, vector<16x32xf32> -> vector<16x32xf32>
    %155 = arith.addf %154, %9 : vector<16x32xf32>
    %156 = math.tanh %155 : vector<16x32xf32>
    %157 = arith.mulf %148, %102 : vector<16x32xf32>
    %cst_73 = arith.constant 1.000000e+00 : f32
    %158 = vector.broadcast %cst_73 : f32 to vector<16x32xf32>
    %159 = arith.subf %158, %148 : vector<16x32xf32>
    %160 = arith.mulf %159, %156 : vector<16x32xf32>
    %161 = arith.addf %157, %160 : vector<16x32xf32>
    %162 = arith.truncf %102 : vector<16x32xf32> to vector<16x32xbf16>
    %cst_74 = arith.constant dense<0.000000e+00> : vector<16x96xf32>
    %163 = tpu.matmul %162, %10, %cst_74 {dimension_numbers = #tpu.dot_dimension_numbers<[1], [0], [0], [1], [0, 0, 1, 1], [], []>} : vector<16x32xbf16>, vector<32x96xbf16>, vector<16x96xf32> -> vector<16x96xf32>
    %164 = vector.extract_strided_slice %163 {offsets = [0, 0], sizes = [16, 64], strides = [1, 1]} : vector<16x96xf32> to vector<16x64xf32>
    %165 = vector.extract_strided_slice %163 {offsets = [0, 64], sizes = [16, 32], strides = [1, 1]} : vector<16x96xf32> to vector<16x32xf32>
    %166 = arith.truncf %132 : vector<16x32xf32> to vector<16x32xbf16>
    %cst_75 = arith.constant dense<0.000000e+00> : vector<16x64xf32>
    %167 = tpu.matmul %166, %11, %cst_75 {dimension_numbers = #tpu.dot_dimension_numbers<[1], [0], [0], [1], [0, 0, 1, 1], [], []>} : vector<16x32xbf16>, vector<32x64xbf16>, vector<16x64xf32> -> vector<16x64xf32>
    %168 = arith.addf %167, %164 : vector<16x64xf32>
    %169 = arith.truncf %168 : vector<16x64xf32> to vector<16x64xbf16>
    %cst_76 = arith.constant dense<0.000000e+00> : vector<16x64xf32>
    %170 = tpu.matmul %0, %169, %cst_76 {dimension_numbers = #tpu.dot_dimension_numbers<[1], [0], [0], [1], [0, 0, 1, 1], [], []>} : vector<16x16xbf16>, vector<16x64xbf16>, vector<16x64xf32> -> vector<16x64xf32>
    %171 = arith.addf %170, %15 : vector<16x64xf32>
    %172 = arith.negf %171 : vector<16x64xf32>
    %173 = math.exp %172 : vector<16x64xf32>
    %cst_77 = arith.constant 1.000000e+00 : f32
    %174 = vector.broadcast %cst_77 : f32 to vector<16x64xf32>
    %175 = arith.addf %174, %173 : vector<16x64xf32>
    %176 = arith.divf %174, %175 : vector<16x64xf32>
    %177 = vector.extract_strided_slice %176 {offsets = [0, 0], sizes = [16, 32], strides = [1, 1]} : vector<16x64xf32> to vector<16x32xf32>
    %178 = vector.extract_strided_slice %176 {offsets = [0, 32], sizes = [16, 32], strides = [1, 1]} : vector<16x64xf32> to vector<16x32xf32>
    %179 = arith.mulf %177, %132 : vector<16x32xf32>
    %180 = arith.truncf %179 : vector<16x32xf32> to vector<16x32xbf16>
    %cst_78 = arith.constant dense<0.000000e+00> : vector<16x32xf32>
    %181 = tpu.matmul %180, %12, %cst_78 {dimension_numbers = #tpu.dot_dimension_numbers<[1], [0], [0], [1], [0, 0, 1, 1], [], []>} : vector<16x32xbf16>, vector<32x32xbf16>, vector<16x32xf32> -> vector<16x32xf32>
    %182 = arith.addf %181, %165 : vector<16x32xf32>
    %183 = arith.truncf %182 : vector<16x32xf32> to vector<16x32xbf16>
    %cst_79 = arith.constant dense<0.000000e+00> : vector<16x32xf32>
    %184 = tpu.matmul %0, %183, %cst_79 {dimension_numbers = #tpu.dot_dimension_numbers<[1], [0], [0], [1], [0, 0, 1, 1], [], []>} : vector<16x16xbf16>, vector<16x32xbf16>, vector<16x32xf32> -> vector<16x32xf32>
    %185 = arith.addf %184, %18 : vector<16x32xf32>
    %186 = math.tanh %185 : vector<16x32xf32>
    %187 = arith.mulf %178, %132 : vector<16x32xf32>
    %cst_80 = arith.constant 1.000000e+00 : f32
    %188 = vector.broadcast %cst_80 : f32 to vector<16x32xf32>
    %189 = arith.subf %188, %178 : vector<16x32xf32>
    %190 = arith.mulf %189, %186 : vector<16x32xf32>
    %191 = arith.addf %187, %190 : vector<16x32xf32>
    %192 = vector.extract_strided_slice %42 {offsets = [48, 0], sizes = [16, 96], strides = [1, 1]} : vector<128x96xf32> to vector<16x96xf32>
    %193 = vector.extract_strided_slice %192 {offsets = [0, 0], sizes = [16, 64], strides = [1, 1]} : vector<16x96xf32> to vector<16x64xf32>
    %194 = vector.extract_strided_slice %192 {offsets = [0, 64], sizes = [16, 32], strides = [1, 1]} : vector<16x96xf32> to vector<16x32xf32>
    %195 = arith.truncf %161 : vector<16x32xf32> to vector<16x32xbf16>
    %cst_81 = arith.constant dense<0.000000e+00> : vector<16x64xf32>
    %196 = tpu.matmul %195, %2, %cst_81 {dimension_numbers = #tpu.dot_dimension_numbers<[1], [0], [0], [1], [0, 0, 1, 1], [], []>} : vector<16x32xbf16>, vector<32x64xbf16>, vector<16x64xf32> -> vector<16x64xf32>
    %197 = arith.addf %196, %193 : vector<16x64xf32>
    %198 = arith.truncf %197 : vector<16x64xf32> to vector<16x64xbf16>
    %cst_82 = arith.constant dense<0.000000e+00> : vector<16x64xf32>
    %199 = tpu.matmul %0, %198, %cst_82 {dimension_numbers = #tpu.dot_dimension_numbers<[1], [0], [0], [1], [0, 0, 1, 1], [], []>} : vector<16x16xbf16>, vector<16x64xbf16>, vector<16x64xf32> -> vector<16x64xf32>
    %200 = arith.addf %199, %6 : vector<16x64xf32>
    %201 = arith.negf %200 : vector<16x64xf32>
    %202 = math.exp %201 : vector<16x64xf32>
    %cst_83 = arith.constant 1.000000e+00 : f32
    %203 = vector.broadcast %cst_83 : f32 to vector<16x64xf32>
    %204 = arith.addf %203, %202 : vector<16x64xf32>
    %205 = arith.divf %203, %204 : vector<16x64xf32>
    %206 = vector.extract_strided_slice %205 {offsets = [0, 0], sizes = [16, 32], strides = [1, 1]} : vector<16x64xf32> to vector<16x32xf32>
    %207 = vector.extract_strided_slice %205 {offsets = [0, 32], sizes = [16, 32], strides = [1, 1]} : vector<16x64xf32> to vector<16x32xf32>
    %208 = arith.mulf %206, %161 : vector<16x32xf32>
    %209 = arith.truncf %208 : vector<16x32xf32> to vector<16x32xbf16>
    %cst_84 = arith.constant dense<0.000000e+00> : vector<16x32xf32>
    %210 = tpu.matmul %209, %3, %cst_84 {dimension_numbers = #tpu.dot_dimension_numbers<[1], [0], [0], [1], [0, 0, 1, 1], [], []>} : vector<16x32xbf16>, vector<32x32xbf16>, vector<16x32xf32> -> vector<16x32xf32>
    %211 = arith.addf %210, %194 : vector<16x32xf32>
    %212 = arith.truncf %211 : vector<16x32xf32> to vector<16x32xbf16>
    %cst_85 = arith.constant dense<0.000000e+00> : vector<16x32xf32>
    %213 = tpu.matmul %0, %212, %cst_85 {dimension_numbers = #tpu.dot_dimension_numbers<[1], [0], [0], [1], [0, 0, 1, 1], [], []>} : vector<16x16xbf16>, vector<16x32xbf16>, vector<16x32xf32> -> vector<16x32xf32>
    %214 = arith.addf %213, %9 : vector<16x32xf32>
    %215 = math.tanh %214 : vector<16x32xf32>
    %216 = arith.mulf %207, %161 : vector<16x32xf32>
    %cst_86 = arith.constant 1.000000e+00 : f32
    %217 = vector.broadcast %cst_86 : f32 to vector<16x32xf32>
    %218 = arith.subf %217, %207 : vector<16x32xf32>
    %219 = arith.mulf %218, %215 : vector<16x32xf32>
    %220 = arith.addf %216, %219 : vector<16x32xf32>
    %221 = arith.truncf %161 : vector<16x32xf32> to vector<16x32xbf16>
    %cst_87 = arith.constant dense<0.000000e+00> : vector<16x96xf32>
    %222 = tpu.matmul %221, %10, %cst_87 {dimension_numbers = #tpu.dot_dimension_numbers<[1], [0], [0], [1], [0, 0, 1, 1], [], []>} : vector<16x32xbf16>, vector<32x96xbf16>, vector<16x96xf32> -> vector<16x96xf32>
    %223 = vector.extract_strided_slice %222 {offsets = [0, 0], sizes = [16, 64], strides = [1, 1]} : vector<16x96xf32> to vector<16x64xf32>
    %224 = vector.extract_strided_slice %222 {offsets = [0, 64], sizes = [16, 32], strides = [1, 1]} : vector<16x96xf32> to vector<16x32xf32>
    %225 = arith.truncf %191 : vector<16x32xf32> to vector<16x32xbf16>
    %cst_88 = arith.constant dense<0.000000e+00> : vector<16x64xf32>
    %226 = tpu.matmul %225, %11, %cst_88 {dimension_numbers = #tpu.dot_dimension_numbers<[1], [0], [0], [1], [0, 0, 1, 1], [], []>} : vector<16x32xbf16>, vector<32x64xbf16>, vector<16x64xf32> -> vector<16x64xf32>
    %227 = arith.addf %226, %223 : vector<16x64xf32>
    %228 = arith.truncf %227 : vector<16x64xf32> to vector<16x64xbf16>
    %cst_89 = arith.constant dense<0.000000e+00> : vector<16x64xf32>
    %229 = tpu.matmul %0, %228, %cst_89 {dimension_numbers = #tpu.dot_dimension_numbers<[1], [0], [0], [1], [0, 0, 1, 1], [], []>} : vector<16x16xbf16>, vector<16x64xbf16>, vector<16x64xf32> -> vector<16x64xf32>
    %230 = arith.addf %229, %15 : vector<16x64xf32>
    %231 = arith.negf %230 : vector<16x64xf32>
    %232 = math.exp %231 : vector<16x64xf32>
    %cst_90 = arith.constant 1.000000e+00 : f32
    %233 = vector.broadcast %cst_90 : f32 to vector<16x64xf32>
    %234 = arith.addf %233, %232 : vector<16x64xf32>
    %235 = arith.divf %233, %234 : vector<16x64xf32>
    %236 = vector.extract_strided_slice %235 {offsets = [0, 0], sizes = [16, 32], strides = [1, 1]} : vector<16x64xf32> to vector<16x32xf32>
    %237 = vector.extract_strided_slice %235 {offsets = [0, 32], sizes = [16, 32], strides = [1, 1]} : vector<16x64xf32> to vector<16x32xf32>
    %238 = arith.mulf %236, %191 : vector<16x32xf32>
    %239 = arith.truncf %238 : vector<16x32xf32> to vector<16x32xbf16>
    %cst_91 = arith.constant dense<0.000000e+00> : vector<16x32xf32>
    %240 = tpu.matmul %239, %12, %cst_91 {dimension_numbers = #tpu.dot_dimension_numbers<[1], [0], [0], [1], [0, 0, 1, 1], [], []>} : vector<16x32xbf16>, vector<32x32xbf16>, vector<16x32xf32> -> vector<16x32xf32>
    %241 = arith.addf %240, %224 : vector<16x32xf32>
    %242 = arith.truncf %241 : vector<16x32xf32> to vector<16x32xbf16>
    %cst_92 = arith.constant dense<0.000000e+00> : vector<16x32xf32>
    %243 = tpu.matmul %0, %242, %cst_92 {dimension_numbers = #tpu.dot_dimension_numbers<[1], [0], [0], [1], [0, 0, 1, 1], [], []>} : vector<16x16xbf16>, vector<16x32xbf16>, vector<16x32xf32> -> vector<16x32xf32>
    %244 = arith.addf %243, %18 : vector<16x32xf32>
    %245 = math.tanh %244 : vector<16x32xf32>
    %246 = arith.mulf %237, %191 : vector<16x32xf32>
    %cst_93 = arith.constant 1.000000e+00 : f32
    %247 = vector.broadcast %cst_93 : f32 to vector<16x32xf32>
    %248 = arith.subf %247, %237 : vector<16x32xf32>
    %249 = arith.mulf %248, %245 : vector<16x32xf32>
    %250 = arith.addf %246, %249 : vector<16x32xf32>
    %251 = vector.extract_strided_slice %42 {offsets = [64, 0], sizes = [16, 96], strides = [1, 1]} : vector<128x96xf32> to vector<16x96xf32>
    %252 = vector.extract_strided_slice %251 {offsets = [0, 0], sizes = [16, 64], strides = [1, 1]} : vector<16x96xf32> to vector<16x64xf32>
    %253 = vector.extract_strided_slice %251 {offsets = [0, 64], sizes = [16, 32], strides = [1, 1]} : vector<16x96xf32> to vector<16x32xf32>
    %254 = arith.truncf %220 : vector<16x32xf32> to vector<16x32xbf16>
    %cst_94 = arith.constant dense<0.000000e+00> : vector<16x64xf32>
    %255 = tpu.matmul %254, %2, %cst_94 {dimension_numbers = #tpu.dot_dimension_numbers<[1], [0], [0], [1], [0, 0, 1, 1], [], []>} : vector<16x32xbf16>, vector<32x64xbf16>, vector<16x64xf32> -> vector<16x64xf32>
    %256 = arith.addf %255, %252 : vector<16x64xf32>
    %257 = arith.truncf %256 : vector<16x64xf32> to vector<16x64xbf16>
    %cst_95 = arith.constant dense<0.000000e+00> : vector<16x64xf32>
    %258 = tpu.matmul %0, %257, %cst_95 {dimension_numbers = #tpu.dot_dimension_numbers<[1], [0], [0], [1], [0, 0, 1, 1], [], []>} : vector<16x16xbf16>, vector<16x64xbf16>, vector<16x64xf32> -> vector<16x64xf32>
    %259 = arith.addf %258, %6 : vector<16x64xf32>
    %260 = arith.negf %259 : vector<16x64xf32>
    %261 = math.exp %260 : vector<16x64xf32>
    %cst_96 = arith.constant 1.000000e+00 : f32
    %262 = vector.broadcast %cst_96 : f32 to vector<16x64xf32>
    %263 = arith.addf %262, %261 : vector<16x64xf32>
    %264 = arith.divf %262, %263 : vector<16x64xf32>
    %265 = vector.extract_strided_slice %264 {offsets = [0, 0], sizes = [16, 32], strides = [1, 1]} : vector<16x64xf32> to vector<16x32xf32>
    %266 = vector.extract_strided_slice %264 {offsets = [0, 32], sizes = [16, 32], strides = [1, 1]} : vector<16x64xf32> to vector<16x32xf32>
    %267 = arith.mulf %265, %220 : vector<16x32xf32>
    %268 = arith.truncf %267 : vector<16x32xf32> to vector<16x32xbf16>
    %cst_97 = arith.constant dense<0.000000e+00> : vector<16x32xf32>
    %269 = tpu.matmul %268, %3, %cst_97 {dimension_numbers = #tpu.dot_dimension_numbers<[1], [0], [0], [1], [0, 0, 1, 1], [], []>} : vector<16x32xbf16>, vector<32x32xbf16>, vector<16x32xf32> -> vector<16x32xf32>
    %270 = arith.addf %269, %253 : vector<16x32xf32>
    %271 = arith.truncf %270 : vector<16x32xf32> to vector<16x32xbf16>
    %cst_98 = arith.constant dense<0.000000e+00> : vector<16x32xf32>
    %272 = tpu.matmul %0, %271, %cst_98 {dimension_numbers = #tpu.dot_dimension_numbers<[1], [0], [0], [1], [0, 0, 1, 1], [], []>} : vector<16x16xbf16>, vector<16x32xbf16>, vector<16x32xf32> -> vector<16x32xf32>
    %273 = arith.addf %272, %9 : vector<16x32xf32>
    %274 = math.tanh %273 : vector<16x32xf32>
    %275 = arith.mulf %266, %220 : vector<16x32xf32>
    %cst_99 = arith.constant 1.000000e+00 : f32
    %276 = vector.broadcast %cst_99 : f32 to vector<16x32xf32>
    %277 = arith.subf %276, %266 : vector<16x32xf32>
    %278 = arith.mulf %277, %274 : vector<16x32xf32>
    %279 = arith.addf %275, %278 : vector<16x32xf32>
    %280 = arith.truncf %220 : vector<16x32xf32> to vector<16x32xbf16>
    %cst_100 = arith.constant dense<0.000000e+00> : vector<16x96xf32>
    %281 = tpu.matmul %280, %10, %cst_100 {dimension_numbers = #tpu.dot_dimension_numbers<[1], [0], [0], [1], [0, 0, 1, 1], [], []>} : vector<16x32xbf16>, vector<32x96xbf16>, vector<16x96xf32> -> vector<16x96xf32>
    %282 = vector.extract_strided_slice %281 {offsets = [0, 0], sizes = [16, 64], strides = [1, 1]} : vector<16x96xf32> to vector<16x64xf32>
    %283 = vector.extract_strided_slice %281 {offsets = [0, 64], sizes = [16, 32], strides = [1, 1]} : vector<16x96xf32> to vector<16x32xf32>
    %284 = arith.truncf %250 : vector<16x32xf32> to vector<16x32xbf16>
    %cst_101 = arith.constant dense<0.000000e+00> : vector<16x64xf32>
    %285 = tpu.matmul %284, %11, %cst_101 {dimension_numbers = #tpu.dot_dimension_numbers<[1], [0], [0], [1], [0, 0, 1, 1], [], []>} : vector<16x32xbf16>, vector<32x64xbf16>, vector<16x64xf32> -> vector<16x64xf32>
    %286 = arith.addf %285, %282 : vector<16x64xf32>
    %287 = arith.truncf %286 : vector<16x64xf32> to vector<16x64xbf16>
    %cst_102 = arith.constant dense<0.000000e+00> : vector<16x64xf32>
    %288 = tpu.matmul %0, %287, %cst_102 {dimension_numbers = #tpu.dot_dimension_numbers<[1], [0], [0], [1], [0, 0, 1, 1], [], []>} : vector<16x16xbf16>, vector<16x64xbf16>, vector<16x64xf32> -> vector<16x64xf32>
    %289 = arith.addf %288, %15 : vector<16x64xf32>
    %290 = arith.negf %289 : vector<16x64xf32>
    %291 = math.exp %290 : vector<16x64xf32>
    %cst_103 = arith.constant 1.000000e+00 : f32
    %292 = vector.broadcast %cst_103 : f32 to vector<16x64xf32>
    %293 = arith.addf %292, %291 : vector<16x64xf32>
    %294 = arith.divf %292, %293 : vector<16x64xf32>
    %295 = vector.extract_strided_slice %294 {offsets = [0, 0], sizes = [16, 32], strides = [1, 1]} : vector<16x64xf32> to vector<16x32xf32>
    %296 = vector.extract_strided_slice %294 {offsets = [0, 32], sizes = [16, 32], strides = [1, 1]} : vector<16x64xf32> to vector<16x32xf32>
    %297 = arith.mulf %295, %250 : vector<16x32xf32>
    %298 = arith.truncf %297 : vector<16x32xf32> to vector<16x32xbf16>
    %cst_104 = arith.constant dense<0.000000e+00> : vector<16x32xf32>
    %299 = tpu.matmul %298, %12, %cst_104 {dimension_numbers = #tpu.dot_dimension_numbers<[1], [0], [0], [1], [0, 0, 1, 1], [], []>} : vector<16x32xbf16>, vector<32x32xbf16>, vector<16x32xf32> -> vector<16x32xf32>
    %300 = arith.addf %299, %283 : vector<16x32xf32>
    %301 = arith.truncf %300 : vector<16x32xf32> to vector<16x32xbf16>
    %cst_105 = arith.constant dense<0.000000e+00> : vector<16x32xf32>
    %302 = tpu.matmul %0, %301, %cst_105 {dimension_numbers = #tpu.dot_dimension_numbers<[1], [0], [0], [1], [0, 0, 1, 1], [], []>} : vector<16x16xbf16>, vector<16x32xbf16>, vector<16x32xf32> -> vector<16x32xf32>
    %303 = arith.addf %302, %18 : vector<16x32xf32>
    %304 = math.tanh %303 : vector<16x32xf32>
    %305 = arith.mulf %296, %250 : vector<16x32xf32>
    %cst_106 = arith.constant 1.000000e+00 : f32
    %306 = vector.broadcast %cst_106 : f32 to vector<16x32xf32>
    %307 = arith.subf %306, %296 : vector<16x32xf32>
    %308 = arith.mulf %307, %304 : vector<16x32xf32>
    %309 = arith.addf %305, %308 : vector<16x32xf32>
    %310 = vector.extract_strided_slice %42 {offsets = [80, 0], sizes = [16, 96], strides = [1, 1]} : vector<128x96xf32> to vector<16x96xf32>
    %311 = vector.extract_strided_slice %310 {offsets = [0, 0], sizes = [16, 64], strides = [1, 1]} : vector<16x96xf32> to vector<16x64xf32>
    %312 = vector.extract_strided_slice %310 {offsets = [0, 64], sizes = [16, 32], strides = [1, 1]} : vector<16x96xf32> to vector<16x32xf32>
    %313 = arith.truncf %279 : vector<16x32xf32> to vector<16x32xbf16>
    %cst_107 = arith.constant dense<0.000000e+00> : vector<16x64xf32>
    %314 = tpu.matmul %313, %2, %cst_107 {dimension_numbers = #tpu.dot_dimension_numbers<[1], [0], [0], [1], [0, 0, 1, 1], [], []>} : vector<16x32xbf16>, vector<32x64xbf16>, vector<16x64xf32> -> vector<16x64xf32>
    %315 = arith.addf %314, %311 : vector<16x64xf32>
    %316 = arith.truncf %315 : vector<16x64xf32> to vector<16x64xbf16>
    %cst_108 = arith.constant dense<0.000000e+00> : vector<16x64xf32>
    %317 = tpu.matmul %0, %316, %cst_108 {dimension_numbers = #tpu.dot_dimension_numbers<[1], [0], [0], [1], [0, 0, 1, 1], [], []>} : vector<16x16xbf16>, vector<16x64xbf16>, vector<16x64xf32> -> vector<16x64xf32>
    %318 = arith.addf %317, %6 : vector<16x64xf32>
    %319 = arith.negf %318 : vector<16x64xf32>
    %320 = math.exp %319 : vector<16x64xf32>
    %cst_109 = arith.constant 1.000000e+00 : f32
    %321 = vector.broadcast %cst_109 : f32 to vector<16x64xf32>
    %322 = arith.addf %321, %320 : vector<16x64xf32>
    %323 = arith.divf %321, %322 : vector<16x64xf32>
    %324 = vector.extract_strided_slice %323 {offsets = [0, 0], sizes = [16, 32], strides = [1, 1]} : vector<16x64xf32> to vector<16x32xf32>
    %325 = vector.extract_strided_slice %323 {offsets = [0, 32], sizes = [16, 32], strides = [1, 1]} : vector<16x64xf32> to vector<16x32xf32>
    %326 = arith.mulf %324, %279 : vector<16x32xf32>
    %327 = arith.truncf %326 : vector<16x32xf32> to vector<16x32xbf16>
    %cst_110 = arith.constant dense<0.000000e+00> : vector<16x32xf32>
    %328 = tpu.matmul %327, %3, %cst_110 {dimension_numbers = #tpu.dot_dimension_numbers<[1], [0], [0], [1], [0, 0, 1, 1], [], []>} : vector<16x32xbf16>, vector<32x32xbf16>, vector<16x32xf32> -> vector<16x32xf32>
    %329 = arith.addf %328, %312 : vector<16x32xf32>
    %330 = arith.truncf %329 : vector<16x32xf32> to vector<16x32xbf16>
    %cst_111 = arith.constant dense<0.000000e+00> : vector<16x32xf32>
    %331 = tpu.matmul %0, %330, %cst_111 {dimension_numbers = #tpu.dot_dimension_numbers<[1], [0], [0], [1], [0, 0, 1, 1], [], []>} : vector<16x16xbf16>, vector<16x32xbf16>, vector<16x32xf32> -> vector<16x32xf32>
    %332 = arith.addf %331, %9 : vector<16x32xf32>
    %333 = math.tanh %332 : vector<16x32xf32>
    %334 = arith.mulf %325, %279 : vector<16x32xf32>
    %cst_112 = arith.constant 1.000000e+00 : f32
    %335 = vector.broadcast %cst_112 : f32 to vector<16x32xf32>
    %336 = arith.subf %335, %325 : vector<16x32xf32>
    %337 = arith.mulf %336, %333 : vector<16x32xf32>
    %338 = arith.addf %334, %337 : vector<16x32xf32>
    %339 = arith.truncf %279 : vector<16x32xf32> to vector<16x32xbf16>
    %cst_113 = arith.constant dense<0.000000e+00> : vector<16x96xf32>
    %340 = tpu.matmul %339, %10, %cst_113 {dimension_numbers = #tpu.dot_dimension_numbers<[1], [0], [0], [1], [0, 0, 1, 1], [], []>} : vector<16x32xbf16>, vector<32x96xbf16>, vector<16x96xf32> -> vector<16x96xf32>
    %341 = vector.extract_strided_slice %340 {offsets = [0, 0], sizes = [16, 64], strides = [1, 1]} : vector<16x96xf32> to vector<16x64xf32>
    %342 = vector.extract_strided_slice %340 {offsets = [0, 64], sizes = [16, 32], strides = [1, 1]} : vector<16x96xf32> to vector<16x32xf32>
    %343 = arith.truncf %309 : vector<16x32xf32> to vector<16x32xbf16>
    %cst_114 = arith.constant dense<0.000000e+00> : vector<16x64xf32>
    %344 = tpu.matmul %343, %11, %cst_114 {dimension_numbers = #tpu.dot_dimension_numbers<[1], [0], [0], [1], [0, 0, 1, 1], [], []>} : vector<16x32xbf16>, vector<32x64xbf16>, vector<16x64xf32> -> vector<16x64xf32>
    %345 = arith.addf %344, %341 : vector<16x64xf32>
    %346 = arith.truncf %345 : vector<16x64xf32> to vector<16x64xbf16>
    %cst_115 = arith.constant dense<0.000000e+00> : vector<16x64xf32>
    %347 = tpu.matmul %0, %346, %cst_115 {dimension_numbers = #tpu.dot_dimension_numbers<[1], [0], [0], [1], [0, 0, 1, 1], [], []>} : vector<16x16xbf16>, vector<16x64xbf16>, vector<16x64xf32> -> vector<16x64xf32>
    %348 = arith.addf %347, %15 : vector<16x64xf32>
    %349 = arith.negf %348 : vector<16x64xf32>
    %350 = math.exp %349 : vector<16x64xf32>
    %cst_116 = arith.constant 1.000000e+00 : f32
    %351 = vector.broadcast %cst_116 : f32 to vector<16x64xf32>
    %352 = arith.addf %351, %350 : vector<16x64xf32>
    %353 = arith.divf %351, %352 : vector<16x64xf32>
    %354 = vector.extract_strided_slice %353 {offsets = [0, 0], sizes = [16, 32], strides = [1, 1]} : vector<16x64xf32> to vector<16x32xf32>
    %355 = vector.extract_strided_slice %353 {offsets = [0, 32], sizes = [16, 32], strides = [1, 1]} : vector<16x64xf32> to vector<16x32xf32>
    %356 = arith.mulf %354, %309 : vector<16x32xf32>
    %357 = arith.truncf %356 : vector<16x32xf32> to vector<16x32xbf16>
    %cst_117 = arith.constant dense<0.000000e+00> : vector<16x32xf32>
    %358 = tpu.matmul %357, %12, %cst_117 {dimension_numbers = #tpu.dot_dimension_numbers<[1], [0], [0], [1], [0, 0, 1, 1], [], []>} : vector<16x32xbf16>, vector<32x32xbf16>, vector<16x32xf32> -> vector<16x32xf32>
    %359 = arith.addf %358, %342 : vector<16x32xf32>
    %360 = arith.truncf %359 : vector<16x32xf32> to vector<16x32xbf16>
    %cst_118 = arith.constant dense<0.000000e+00> : vector<16x32xf32>
    %361 = tpu.matmul %0, %360, %cst_118 {dimension_numbers = #tpu.dot_dimension_numbers<[1], [0], [0], [1], [0, 0, 1, 1], [], []>} : vector<16x16xbf16>, vector<16x32xbf16>, vector<16x32xf32> -> vector<16x32xf32>
    %362 = arith.addf %361, %18 : vector<16x32xf32>
    %363 = math.tanh %362 : vector<16x32xf32>
    %364 = arith.mulf %355, %309 : vector<16x32xf32>
    %cst_119 = arith.constant 1.000000e+00 : f32
    %365 = vector.broadcast %cst_119 : f32 to vector<16x32xf32>
    %366 = arith.subf %365, %355 : vector<16x32xf32>
    %367 = arith.mulf %366, %363 : vector<16x32xf32>
    %368 = arith.addf %364, %367 : vector<16x32xf32>
    %369 = vector.extract_strided_slice %42 {offsets = [96, 0], sizes = [16, 96], strides = [1, 1]} : vector<128x96xf32> to vector<16x96xf32>
    %370 = vector.extract_strided_slice %369 {offsets = [0, 0], sizes = [16, 64], strides = [1, 1]} : vector<16x96xf32> to vector<16x64xf32>
    %371 = vector.extract_strided_slice %369 {offsets = [0, 64], sizes = [16, 32], strides = [1, 1]} : vector<16x96xf32> to vector<16x32xf32>
    %372 = arith.truncf %338 : vector<16x32xf32> to vector<16x32xbf16>
    %cst_120 = arith.constant dense<0.000000e+00> : vector<16x64xf32>
    %373 = tpu.matmul %372, %2, %cst_120 {dimension_numbers = #tpu.dot_dimension_numbers<[1], [0], [0], [1], [0, 0, 1, 1], [], []>} : vector<16x32xbf16>, vector<32x64xbf16>, vector<16x64xf32> -> vector<16x64xf32>
    %374 = arith.addf %373, %370 : vector<16x64xf32>
    %375 = arith.truncf %374 : vector<16x64xf32> to vector<16x64xbf16>
    %cst_121 = arith.constant dense<0.000000e+00> : vector<16x64xf32>
    %376 = tpu.matmul %0, %375, %cst_121 {dimension_numbers = #tpu.dot_dimension_numbers<[1], [0], [0], [1], [0, 0, 1, 1], [], []>} : vector<16x16xbf16>, vector<16x64xbf16>, vector<16x64xf32> -> vector<16x64xf32>
    %377 = arith.addf %376, %6 : vector<16x64xf32>
    %378 = arith.negf %377 : vector<16x64xf32>
    %379 = math.exp %378 : vector<16x64xf32>
    %cst_122 = arith.constant 1.000000e+00 : f32
    %380 = vector.broadcast %cst_122 : f32 to vector<16x64xf32>
    %381 = arith.addf %380, %379 : vector<16x64xf32>
    %382 = arith.divf %380, %381 : vector<16x64xf32>
    %383 = vector.extract_strided_slice %382 {offsets = [0, 0], sizes = [16, 32], strides = [1, 1]} : vector<16x64xf32> to vector<16x32xf32>
    %384 = vector.extract_strided_slice %382 {offsets = [0, 32], sizes = [16, 32], strides = [1, 1]} : vector<16x64xf32> to vector<16x32xf32>
    %385 = arith.mulf %383, %338 : vector<16x32xf32>
    %386 = arith.truncf %385 : vector<16x32xf32> to vector<16x32xbf16>
    %cst_123 = arith.constant dense<0.000000e+00> : vector<16x32xf32>
    %387 = tpu.matmul %386, %3, %cst_123 {dimension_numbers = #tpu.dot_dimension_numbers<[1], [0], [0], [1], [0, 0, 1, 1], [], []>} : vector<16x32xbf16>, vector<32x32xbf16>, vector<16x32xf32> -> vector<16x32xf32>
    %388 = arith.addf %387, %371 : vector<16x32xf32>
    %389 = arith.truncf %388 : vector<16x32xf32> to vector<16x32xbf16>
    %cst_124 = arith.constant dense<0.000000e+00> : vector<16x32xf32>
    %390 = tpu.matmul %0, %389, %cst_124 {dimension_numbers = #tpu.dot_dimension_numbers<[1], [0], [0], [1], [0, 0, 1, 1], [], []>} : vector<16x16xbf16>, vector<16x32xbf16>, vector<16x32xf32> -> vector<16x32xf32>
    %391 = arith.addf %390, %9 : vector<16x32xf32>
    %392 = math.tanh %391 : vector<16x32xf32>
    %393 = arith.mulf %384, %338 : vector<16x32xf32>
    %cst_125 = arith.constant 1.000000e+00 : f32
    %394 = vector.broadcast %cst_125 : f32 to vector<16x32xf32>
    %395 = arith.subf %394, %384 : vector<16x32xf32>
    %396 = arith.mulf %395, %392 : vector<16x32xf32>
    %397 = arith.addf %393, %396 : vector<16x32xf32>
    %398 = arith.truncf %338 : vector<16x32xf32> to vector<16x32xbf16>
    %cst_126 = arith.constant dense<0.000000e+00> : vector<16x96xf32>
    %399 = tpu.matmul %398, %10, %cst_126 {dimension_numbers = #tpu.dot_dimension_numbers<[1], [0], [0], [1], [0, 0, 1, 1], [], []>} : vector<16x32xbf16>, vector<32x96xbf16>, vector<16x96xf32> -> vector<16x96xf32>
    %400 = vector.extract_strided_slice %399 {offsets = [0, 0], sizes = [16, 64], strides = [1, 1]} : vector<16x96xf32> to vector<16x64xf32>
    %401 = vector.extract_strided_slice %399 {offsets = [0, 64], sizes = [16, 32], strides = [1, 1]} : vector<16x96xf32> to vector<16x32xf32>
    %402 = arith.truncf %368 : vector<16x32xf32> to vector<16x32xbf16>
    %cst_127 = arith.constant dense<0.000000e+00> : vector<16x64xf32>
    %403 = tpu.matmul %402, %11, %cst_127 {dimension_numbers = #tpu.dot_dimension_numbers<[1], [0], [0], [1], [0, 0, 1, 1], [], []>} : vector<16x32xbf16>, vector<32x64xbf16>, vector<16x64xf32> -> vector<16x64xf32>
    %404 = arith.addf %403, %400 : vector<16x64xf32>
    %405 = arith.truncf %404 : vector<16x64xf32> to vector<16x64xbf16>
    %cst_128 = arith.constant dense<0.000000e+00> : vector<16x64xf32>
    %406 = tpu.matmul %0, %405, %cst_128 {dimension_numbers = #tpu.dot_dimension_numbers<[1], [0], [0], [1], [0, 0, 1, 1], [], []>} : vector<16x16xbf16>, vector<16x64xbf16>, vector<16x64xf32> -> vector<16x64xf32>
    %407 = arith.addf %406, %15 : vector<16x64xf32>
    %408 = arith.negf %407 : vector<16x64xf32>
    %409 = math.exp %408 : vector<16x64xf32>
    %cst_129 = arith.constant 1.000000e+00 : f32
    %410 = vector.broadcast %cst_129 : f32 to vector<16x64xf32>
    %411 = arith.addf %410, %409 : vector<16x64xf32>
    %412 = arith.divf %410, %411 : vector<16x64xf32>
    %413 = vector.extract_strided_slice %412 {offsets = [0, 0], sizes = [16, 32], strides = [1, 1]} : vector<16x64xf32> to vector<16x32xf32>
    %414 = vector.extract_strided_slice %412 {offsets = [0, 32], sizes = [16, 32], strides = [1, 1]} : vector<16x64xf32> to vector<16x32xf32>
    %415 = arith.mulf %413, %368 : vector<16x32xf32>
    %416 = arith.truncf %415 : vector<16x32xf32> to vector<16x32xbf16>
    %cst_130 = arith.constant dense<0.000000e+00> : vector<16x32xf32>
    %417 = tpu.matmul %416, %12, %cst_130 {dimension_numbers = #tpu.dot_dimension_numbers<[1], [0], [0], [1], [0, 0, 1, 1], [], []>} : vector<16x32xbf16>, vector<32x32xbf16>, vector<16x32xf32> -> vector<16x32xf32>
    %418 = arith.addf %417, %401 : vector<16x32xf32>
    %419 = arith.truncf %418 : vector<16x32xf32> to vector<16x32xbf16>
    %cst_131 = arith.constant dense<0.000000e+00> : vector<16x32xf32>
    %420 = tpu.matmul %0, %419, %cst_131 {dimension_numbers = #tpu.dot_dimension_numbers<[1], [0], [0], [1], [0, 0, 1, 1], [], []>} : vector<16x16xbf16>, vector<16x32xbf16>, vector<16x32xf32> -> vector<16x32xf32>
    %421 = arith.addf %420, %18 : vector<16x32xf32>
    %422 = math.tanh %421 : vector<16x32xf32>
    %423 = arith.mulf %414, %368 : vector<16x32xf32>
    %cst_132 = arith.constant 1.000000e+00 : f32
    %424 = vector.broadcast %cst_132 : f32 to vector<16x32xf32>
    %425 = arith.subf %424, %414 : vector<16x32xf32>
    %426 = arith.mulf %425, %422 : vector<16x32xf32>
    %427 = arith.addf %423, %426 : vector<16x32xf32>
    %428 = vector.extract_strided_slice %42 {offsets = [112, 0], sizes = [16, 96], strides = [1, 1]} : vector<128x96xf32> to vector<16x96xf32>
    %429 = vector.extract_strided_slice %428 {offsets = [0, 0], sizes = [16, 64], strides = [1, 1]} : vector<16x96xf32> to vector<16x64xf32>
    %430 = vector.extract_strided_slice %428 {offsets = [0, 64], sizes = [16, 32], strides = [1, 1]} : vector<16x96xf32> to vector<16x32xf32>
    %431 = arith.truncf %397 : vector<16x32xf32> to vector<16x32xbf16>
    %cst_133 = arith.constant dense<0.000000e+00> : vector<16x64xf32>
    %432 = tpu.matmul %431, %2, %cst_133 {dimension_numbers = #tpu.dot_dimension_numbers<[1], [0], [0], [1], [0, 0, 1, 1], [], []>} : vector<16x32xbf16>, vector<32x64xbf16>, vector<16x64xf32> -> vector<16x64xf32>
    %433 = arith.addf %432, %429 : vector<16x64xf32>
    %434 = arith.truncf %433 : vector<16x64xf32> to vector<16x64xbf16>
    %cst_134 = arith.constant dense<0.000000e+00> : vector<16x64xf32>
    %435 = tpu.matmul %0, %434, %cst_134 {dimension_numbers = #tpu.dot_dimension_numbers<[1], [0], [0], [1], [0, 0, 1, 1], [], []>} : vector<16x16xbf16>, vector<16x64xbf16>, vector<16x64xf32> -> vector<16x64xf32>
    %436 = arith.addf %435, %6 : vector<16x64xf32>
    %437 = arith.negf %436 : vector<16x64xf32>
    %438 = math.exp %437 : vector<16x64xf32>
    %cst_135 = arith.constant 1.000000e+00 : f32
    %439 = vector.broadcast %cst_135 : f32 to vector<16x64xf32>
    %440 = arith.addf %439, %438 : vector<16x64xf32>
    %441 = arith.divf %439, %440 : vector<16x64xf32>
    %442 = vector.extract_strided_slice %441 {offsets = [0, 0], sizes = [16, 32], strides = [1, 1]} : vector<16x64xf32> to vector<16x32xf32>
    %443 = vector.extract_strided_slice %441 {offsets = [0, 32], sizes = [16, 32], strides = [1, 1]} : vector<16x64xf32> to vector<16x32xf32>
    %444 = arith.mulf %442, %397 : vector<16x32xf32>
    %445 = arith.truncf %444 : vector<16x32xf32> to vector<16x32xbf16>
    %cst_136 = arith.constant dense<0.000000e+00> : vector<16x32xf32>
    %446 = tpu.matmul %445, %3, %cst_136 {dimension_numbers = #tpu.dot_dimension_numbers<[1], [0], [0], [1], [0, 0, 1, 1], [], []>} : vector<16x32xbf16>, vector<32x32xbf16>, vector<16x32xf32> -> vector<16x32xf32>
    %447 = arith.addf %446, %430 : vector<16x32xf32>
    %448 = arith.truncf %447 : vector<16x32xf32> to vector<16x32xbf16>
    %cst_137 = arith.constant dense<0.000000e+00> : vector<16x32xf32>
    %449 = tpu.matmul %0, %448, %cst_137 {dimension_numbers = #tpu.dot_dimension_numbers<[1], [0], [0], [1], [0, 0, 1, 1], [], []>} : vector<16x16xbf16>, vector<16x32xbf16>, vector<16x32xf32> -> vector<16x32xf32>
    %450 = arith.addf %449, %9 : vector<16x32xf32>
    %451 = math.tanh %450 : vector<16x32xf32>
    %452 = arith.mulf %443, %397 : vector<16x32xf32>
    %cst_138 = arith.constant 1.000000e+00 : f32
    %453 = vector.broadcast %cst_138 : f32 to vector<16x32xf32>
    %454 = arith.subf %453, %443 : vector<16x32xf32>
    %455 = arith.mulf %454, %451 : vector<16x32xf32>
    %456 = arith.addf %452, %455 : vector<16x32xf32>
    %457 = arith.truncf %397 : vector<16x32xf32> to vector<16x32xbf16>
    %cst_139 = arith.constant dense<0.000000e+00> : vector<16x96xf32>
    %458 = tpu.matmul %457, %10, %cst_139 {dimension_numbers = #tpu.dot_dimension_numbers<[1], [0], [0], [1], [0, 0, 1, 1], [], []>} : vector<16x32xbf16>, vector<32x96xbf16>, vector<16x96xf32> -> vector<16x96xf32>
    %459 = vector.extract_strided_slice %458 {offsets = [0, 0], sizes = [16, 64], strides = [1, 1]} : vector<16x96xf32> to vector<16x64xf32>
    %460 = vector.extract_strided_slice %458 {offsets = [0, 64], sizes = [16, 32], strides = [1, 1]} : vector<16x96xf32> to vector<16x32xf32>
    %461 = arith.truncf %427 : vector<16x32xf32> to vector<16x32xbf16>
    %cst_140 = arith.constant dense<0.000000e+00> : vector<16x64xf32>
    %462 = tpu.matmul %461, %11, %cst_140 {dimension_numbers = #tpu.dot_dimension_numbers<[1], [0], [0], [1], [0, 0, 1, 1], [], []>} : vector<16x32xbf16>, vector<32x64xbf16>, vector<16x64xf32> -> vector<16x64xf32>
    %463 = arith.addf %462, %459 : vector<16x64xf32>
    %464 = arith.truncf %463 : vector<16x64xf32> to vector<16x64xbf16>
    %cst_141 = arith.constant dense<0.000000e+00> : vector<16x64xf32>
    %465 = tpu.matmul %0, %464, %cst_141 {dimension_numbers = #tpu.dot_dimension_numbers<[1], [0], [0], [1], [0, 0, 1, 1], [], []>} : vector<16x16xbf16>, vector<16x64xbf16>, vector<16x64xf32> -> vector<16x64xf32>
    %466 = arith.addf %465, %15 : vector<16x64xf32>
    %467 = arith.negf %466 : vector<16x64xf32>
    %468 = math.exp %467 : vector<16x64xf32>
    %cst_142 = arith.constant 1.000000e+00 : f32
    %469 = vector.broadcast %cst_142 : f32 to vector<16x64xf32>
    %470 = arith.addf %469, %468 : vector<16x64xf32>
    %471 = arith.divf %469, %470 : vector<16x64xf32>
    %472 = vector.extract_strided_slice %471 {offsets = [0, 0], sizes = [16, 32], strides = [1, 1]} : vector<16x64xf32> to vector<16x32xf32>
    %473 = vector.extract_strided_slice %471 {offsets = [0, 32], sizes = [16, 32], strides = [1, 1]} : vector<16x64xf32> to vector<16x32xf32>
    %474 = arith.mulf %472, %427 : vector<16x32xf32>
    %475 = arith.truncf %474 : vector<16x32xf32> to vector<16x32xbf16>
    %cst_143 = arith.constant dense<0.000000e+00> : vector<16x32xf32>
    %476 = tpu.matmul %475, %12, %cst_143 {dimension_numbers = #tpu.dot_dimension_numbers<[1], [0], [0], [1], [0, 0, 1, 1], [], []>} : vector<16x32xbf16>, vector<32x32xbf16>, vector<16x32xf32> -> vector<16x32xf32>
    %477 = arith.addf %476, %460 : vector<16x32xf32>
    %478 = arith.truncf %477 : vector<16x32xf32> to vector<16x32xbf16>
    %cst_144 = arith.constant dense<0.000000e+00> : vector<16x32xf32>
    %479 = tpu.matmul %0, %478, %cst_144 {dimension_numbers = #tpu.dot_dimension_numbers<[1], [0], [0], [1], [0, 0, 1, 1], [], []>} : vector<16x16xbf16>, vector<16x32xbf16>, vector<16x32xf32> -> vector<16x32xf32>
    %480 = arith.addf %479, %18 : vector<16x32xf32>
    %481 = math.tanh %480 : vector<16x32xf32>
    %482 = arith.mulf %473, %427 : vector<16x32xf32>
    %cst_145 = arith.constant 1.000000e+00 : f32
    %483 = vector.broadcast %cst_145 : f32 to vector<16x32xf32>
    %484 = arith.subf %483, %473 : vector<16x32xf32>
    %485 = arith.mulf %484, %481 : vector<16x32xf32>
    %486 = arith.addf %482, %485 : vector<16x32xf32>
    %487 = arith.truncf %456 : vector<16x32xf32> to vector<16x32xbf16>
    %cst_146 = arith.constant dense<0.000000e+00> : vector<16x96xf32>
    %488 = tpu.matmul %487, %10, %cst_146 {dimension_numbers = #tpu.dot_dimension_numbers<[1], [0], [0], [1], [0, 0, 1, 1], [], []>} : vector<16x32xbf16>, vector<32x96xbf16>, vector<16x96xf32> -> vector<16x96xf32>
    %489 = vector.extract_strided_slice %488 {offsets = [0, 0], sizes = [16, 64], strides = [1, 1]} : vector<16x96xf32> to vector<16x64xf32>
    %490 = vector.extract_strided_slice %488 {offsets = [0, 64], sizes = [16, 32], strides = [1, 1]} : vector<16x96xf32> to vector<16x32xf32>
    %491 = arith.truncf %486 : vector<16x32xf32> to vector<16x32xbf16>
    %cst_147 = arith.constant dense<0.000000e+00> : vector<16x64xf32>
    %492 = tpu.matmul %491, %11, %cst_147 {dimension_numbers = #tpu.dot_dimension_numbers<[1], [0], [0], [1], [0, 0, 1, 1], [], []>} : vector<16x32xbf16>, vector<32x64xbf16>, vector<16x64xf32> -> vector<16x64xf32>
    %493 = arith.addf %492, %489 : vector<16x64xf32>
    %494 = arith.truncf %493 : vector<16x64xf32> to vector<16x64xbf16>
    %cst_148 = arith.constant dense<0.000000e+00> : vector<16x64xf32>
    %495 = tpu.matmul %0, %494, %cst_148 {dimension_numbers = #tpu.dot_dimension_numbers<[1], [0], [0], [1], [0, 0, 1, 1], [], []>} : vector<16x16xbf16>, vector<16x64xbf16>, vector<16x64xf32> -> vector<16x64xf32>
    %496 = arith.addf %495, %15 : vector<16x64xf32>
    %497 = arith.negf %496 : vector<16x64xf32>
    %498 = math.exp %497 : vector<16x64xf32>
    %cst_149 = arith.constant 1.000000e+00 : f32
    %499 = vector.broadcast %cst_149 : f32 to vector<16x64xf32>
    %500 = arith.addf %499, %498 : vector<16x64xf32>
    %501 = arith.divf %499, %500 : vector<16x64xf32>
    %502 = vector.extract_strided_slice %501 {offsets = [0, 0], sizes = [16, 32], strides = [1, 1]} : vector<16x64xf32> to vector<16x32xf32>
    %503 = vector.extract_strided_slice %501 {offsets = [0, 32], sizes = [16, 32], strides = [1, 1]} : vector<16x64xf32> to vector<16x32xf32>
    %504 = arith.mulf %502, %486 : vector<16x32xf32>
    %505 = arith.truncf %504 : vector<16x32xf32> to vector<16x32xbf16>
    %cst_150 = arith.constant dense<0.000000e+00> : vector<16x32xf32>
    %506 = tpu.matmul %505, %12, %cst_150 {dimension_numbers = #tpu.dot_dimension_numbers<[1], [0], [0], [1], [0, 0, 1, 1], [], []>} : vector<16x32xbf16>, vector<32x32xbf16>, vector<16x32xf32> -> vector<16x32xf32>
    %507 = arith.addf %506, %490 : vector<16x32xf32>
    %508 = arith.truncf %507 : vector<16x32xf32> to vector<16x32xbf16>
    %cst_151 = arith.constant dense<0.000000e+00> : vector<16x32xf32>
    %509 = tpu.matmul %0, %508, %cst_151 {dimension_numbers = #tpu.dot_dimension_numbers<[1], [0], [0], [1], [0, 0, 1, 1], [], []>} : vector<16x16xbf16>, vector<16x32xbf16>, vector<16x32xf32> -> vector<16x32xf32>
    %510 = arith.addf %509, %18 : vector<16x32xf32>
    %511 = math.tanh %510 : vector<16x32xf32>
    %512 = arith.mulf %503, %486 : vector<16x32xf32>
    %cst_152 = arith.constant 1.000000e+00 : f32
    %513 = vector.broadcast %cst_152 : f32 to vector<16x32xf32>
    %514 = arith.subf %513, %503 : vector<16x32xf32>
    %515 = arith.mulf %514, %511 : vector<16x32xf32>
    %516 = arith.addf %512, %515 : vector<16x32xf32>
    %517 = arith.truncf %456 : vector<16x32xf32> to vector<16x32xbf16>
    %cst_153 = arith.constant dense<0.000000e+00> : vector<16x64xf32>
    %518 = tpu.matmul %517, %20, %cst_153 {dimension_numbers = #tpu.dot_dimension_numbers<[1], [0], [0], [1], [0, 0, 1, 1], [], []>} : vector<16x32xbf16>, vector<32x64xbf16>, vector<16x64xf32> -> vector<16x64xf32>
    %519 = arith.truncf %518 : vector<16x64xf32> to vector<16x64xbf16>
    %cst_154 = arith.constant dense<0.000000e+00> : vector<16x64xf32>
    %520 = tpu.matmul %0, %519, %cst_154 {dimension_numbers = #tpu.dot_dimension_numbers<[1], [0], [0], [1], [0, 0, 1, 1], [], []>} : vector<16x16xbf16>, vector<16x64xbf16>, vector<16x64xf32> -> vector<16x64xf32>
    %521 = arith.addf %520, %24 : vector<16x64xf32>
    %522 = arith.negf %521 : vector<16x64xf32>
    %523 = math.exp %522 : vector<16x64xf32>
    %cst_155 = arith.constant 1.000000e+00 : f32
    %524 = vector.broadcast %cst_155 : f32 to vector<16x64xf32>
    %525 = arith.addf %524, %523 : vector<16x64xf32>
    %526 = arith.divf %524, %525 : vector<16x64xf32>
    %527 = vector.extract_strided_slice %526 {offsets = [0, 0], sizes = [16, 32], strides = [1, 1]} : vector<16x64xf32> to vector<16x32xf32>
    %528 = vector.extract_strided_slice %526 {offsets = [0, 32], sizes = [16, 32], strides = [1, 1]} : vector<16x64xf32> to vector<16x32xf32>
    %529 = arith.mulf %527, %456 : vector<16x32xf32>
    %530 = arith.truncf %529 : vector<16x32xf32> to vector<16x32xbf16>
    %cst_156 = arith.constant dense<0.000000e+00> : vector<16x32xf32>
    %531 = tpu.matmul %530, %21, %cst_156 {dimension_numbers = #tpu.dot_dimension_numbers<[1], [0], [0], [1], [0, 0, 1, 1], [], []>} : vector<16x32xbf16>, vector<32x32xbf16>, vector<16x32xf32> -> vector<16x32xf32>
    %532 = arith.truncf %531 : vector<16x32xf32> to vector<16x32xbf16>
    %cst_157 = arith.constant dense<0.000000e+00> : vector<16x32xf32>
    %533 = tpu.matmul %0, %532, %cst_157 {dimension_numbers = #tpu.dot_dimension_numbers<[1], [0], [0], [1], [0, 0, 1, 1], [], []>} : vector<16x16xbf16>, vector<16x32xbf16>, vector<16x32xf32> -> vector<16x32xf32>
    %534 = arith.addf %533, %27 : vector<16x32xf32>
    %535 = math.tanh %534 : vector<16x32xf32>
    %536 = arith.mulf %528, %456 : vector<16x32xf32>
    %cst_158 = arith.constant 1.000000e+00 : f32
    %537 = vector.broadcast %cst_158 : f32 to vector<16x32xf32>
    %538 = arith.subf %537, %528 : vector<16x32xf32>
    %539 = arith.mulf %538, %535 : vector<16x32xf32>
    %540 = arith.addf %536, %539 : vector<16x32xf32>
    %541 = arith.truncf %540 : vector<16x32xf32> to vector<16x32xbf16>
    %cst_159 = arith.constant dense<0.000000e+00> : vector<16x96xf32>
    %542 = tpu.matmul %541, %28, %cst_159 {dimension_numbers = #tpu.dot_dimension_numbers<[1], [0], [0], [1], [0, 0, 1, 1], [], []>} : vector<16x32xbf16>, vector<32x96xbf16>, vector<16x96xf32> -> vector<16x96xf32>
    %543 = vector.extract_strided_slice %542 {offsets = [0, 0], sizes = [16, 64], strides = [1, 1]} : vector<16x96xf32> to vector<16x64xf32>
    %544 = vector.extract_strided_slice %542 {offsets = [0, 64], sizes = [16, 32], strides = [1, 1]} : vector<16x96xf32> to vector<16x32xf32>
    %545 = arith.truncf %516 : vector<16x32xf32> to vector<16x32xbf16>
    %cst_160 = arith.constant dense<0.000000e+00> : vector<16x64xf32>
    %546 = tpu.matmul %545, %29, %cst_160 {dimension_numbers = #tpu.dot_dimension_numbers<[1], [0], [0], [1], [0, 0, 1, 1], [], []>} : vector<16x32xbf16>, vector<32x64xbf16>, vector<16x64xf32> -> vector<16x64xf32>
    %547 = arith.addf %546, %543 : vector<16x64xf32>
    %548 = arith.truncf %547 : vector<16x64xf32> to vector<16x64xbf16>
    %cst_161 = arith.constant dense<0.000000e+00> : vector<16x64xf32>
    %549 = tpu.matmul %0, %548, %cst_161 {dimension_numbers = #tpu.dot_dimension_numbers<[1], [0], [0], [1], [0, 0, 1, 1], [], []>} : vector<16x16xbf16>, vector<16x64xbf16>, vector<16x64xf32> -> vector<16x64xf32>
    %550 = arith.addf %549, %33 : vector<16x64xf32>
    %551 = arith.negf %550 : vector<16x64xf32>
    %552 = math.exp %551 : vector<16x64xf32>
    %cst_162 = arith.constant 1.000000e+00 : f32
    %553 = vector.broadcast %cst_162 : f32 to vector<16x64xf32>
    %554 = arith.addf %553, %552 : vector<16x64xf32>
    %555 = arith.divf %553, %554 : vector<16x64xf32>
    %556 = vector.extract_strided_slice %555 {offsets = [0, 0], sizes = [16, 32], strides = [1, 1]} : vector<16x64xf32> to vector<16x32xf32>
    %557 = vector.extract_strided_slice %555 {offsets = [0, 32], sizes = [16, 32], strides = [1, 1]} : vector<16x64xf32> to vector<16x32xf32>
    %558 = arith.mulf %556, %516 : vector<16x32xf32>
    %559 = arith.truncf %558 : vector<16x32xf32> to vector<16x32xbf16>
    %cst_163 = arith.constant dense<0.000000e+00> : vector<16x32xf32>
    %560 = tpu.matmul %559, %30, %cst_163 {dimension_numbers = #tpu.dot_dimension_numbers<[1], [0], [0], [1], [0, 0, 1, 1], [], []>} : vector<16x32xbf16>, vector<32x32xbf16>, vector<16x32xf32> -> vector<16x32xf32>
    %561 = arith.addf %560, %544 : vector<16x32xf32>
    %562 = arith.truncf %561 : vector<16x32xf32> to vector<16x32xbf16>
    %cst_164 = arith.constant dense<0.000000e+00> : vector<16x32xf32>
    %563 = tpu.matmul %0, %562, %cst_164 {dimension_numbers = #tpu.dot_dimension_numbers<[1], [0], [0], [1], [0, 0, 1, 1], [], []>} : vector<16x16xbf16>, vector<16x32xbf16>, vector<16x32xf32> -> vector<16x32xf32>
    %564 = arith.addf %563, %36 : vector<16x32xf32>
    %565 = math.tanh %564 : vector<16x32xf32>
    %566 = arith.mulf %557, %516 : vector<16x32xf32>
    %cst_165 = arith.constant 1.000000e+00 : f32
    %567 = vector.broadcast %cst_165 : f32 to vector<16x32xf32>
    %568 = arith.subf %567, %557 : vector<16x32xf32>
    %569 = arith.mulf %568, %565 : vector<16x32xf32>
    %570 = arith.addf %566, %569 : vector<16x32xf32>
    %571 = arith.truncf %570 : vector<16x32xf32> to vector<16x32xbf16>
    %cst_166 = arith.constant dense<0.000000e+00> : vector<16x2xf32>
    %572 = tpu.matmul %571, %37, %cst_166 {dimension_numbers = #tpu.dot_dimension_numbers<[1], [0], [0], [1], [0, 0, 1, 1], [], []>} : vector<16x32xbf16>, vector<32x2xbf16>, vector<16x2xf32> -> vector<16x2xf32>
    %573 = arith.addf %572, %40 : vector<16x2xf32>
    %574 = arith.truncf %573 : vector<16x2xf32> to vector<16x2xbf16>
    %cst_167 = arith.constant dense<0.000000e+00> : vector<16x96xf32>
    %575 = tpu.matmul %574, %19, %cst_167 {dimension_numbers = #tpu.dot_dimension_numbers<[1], [0], [0], [1], [0, 0, 1, 1], [], []>} : vector<16x2xbf16>, vector<2x96xbf16>, vector<16x96xf32> -> vector<16x96xf32>
    %576 = vector.extract_strided_slice %575 {offsets = [0, 0], sizes = [16, 64], strides = [1, 1]} : vector<16x96xf32> to vector<16x64xf32>
    %577 = vector.extract_strided_slice %575 {offsets = [0, 64], sizes = [16, 32], strides = [1, 1]} : vector<16x96xf32> to vector<16x32xf32>
    %578 = arith.truncf %540 : vector<16x32xf32> to vector<16x32xbf16>
    %cst_168 = arith.constant dense<0.000000e+00> : vector<16x64xf32>
    %579 = tpu.matmul %578, %20, %cst_168 {dimension_numbers = #tpu.dot_dimension_numbers<[1], [0], [0], [1], [0, 0, 1, 1], [], []>} : vector<16x32xbf16>, vector<32x64xbf16>, vector<16x64xf32> -> vector<16x64xf32>
    %580 = arith.addf %579, %576 : vector<16x64xf32>
    %581 = arith.truncf %580 : vector<16x64xf32> to vector<16x64xbf16>
    %cst_169 = arith.constant dense<0.000000e+00> : vector<16x64xf32>
    %582 = tpu.matmul %0, %581, %cst_169 {dimension_numbers = #tpu.dot_dimension_numbers<[1], [0], [0], [1], [0, 0, 1, 1], [], []>} : vector<16x16xbf16>, vector<16x64xbf16>, vector<16x64xf32> -> vector<16x64xf32>
    %583 = arith.addf %582, %24 : vector<16x64xf32>
    %584 = arith.negf %583 : vector<16x64xf32>
    %585 = math.exp %584 : vector<16x64xf32>
    %cst_170 = arith.constant 1.000000e+00 : f32
    %586 = vector.broadcast %cst_170 : f32 to vector<16x64xf32>
    %587 = arith.addf %586, %585 : vector<16x64xf32>
    %588 = arith.divf %586, %587 : vector<16x64xf32>
    %589 = vector.extract_strided_slice %588 {offsets = [0, 0], sizes = [16, 32], strides = [1, 1]} : vector<16x64xf32> to vector<16x32xf32>
    %590 = vector.extract_strided_slice %588 {offsets = [0, 32], sizes = [16, 32], strides = [1, 1]} : vector<16x64xf32> to vector<16x32xf32>
    %591 = arith.mulf %589, %540 : vector<16x32xf32>
    %592 = arith.truncf %591 : vector<16x32xf32> to vector<16x32xbf16>
    %cst_171 = arith.constant dense<0.000000e+00> : vector<16x32xf32>
    %593 = tpu.matmul %592, %21, %cst_171 {dimension_numbers = #tpu.dot_dimension_numbers<[1], [0], [0], [1], [0, 0, 1, 1], [], []>} : vector<16x32xbf16>, vector<32x32xbf16>, vector<16x32xf32> -> vector<16x32xf32>
    %594 = arith.addf %593, %577 : vector<16x32xf32>
    %595 = arith.truncf %594 : vector<16x32xf32> to vector<16x32xbf16>
    %cst_172 = arith.constant dense<0.000000e+00> : vector<16x32xf32>
    %596 = tpu.matmul %0, %595, %cst_172 {dimension_numbers = #tpu.dot_dimension_numbers<[1], [0], [0], [1], [0, 0, 1, 1], [], []>} : vector<16x16xbf16>, vector<16x32xbf16>, vector<16x32xf32> -> vector<16x32xf32>
    %597 = arith.addf %596, %27 : vector<16x32xf32>
    %598 = math.tanh %597 : vector<16x32xf32>
    %599 = arith.mulf %590, %540 : vector<16x32xf32>
    %cst_173 = arith.constant 1.000000e+00 : f32
    %600 = vector.broadcast %cst_173 : f32 to vector<16x32xf32>
    %601 = arith.subf %600, %590 : vector<16x32xf32>
    %602 = arith.mulf %601, %598 : vector<16x32xf32>
    %603 = arith.addf %599, %602 : vector<16x32xf32>
    %604 = arith.truncf %603 : vector<16x32xf32> to vector<16x32xbf16>
    %cst_174 = arith.constant dense<0.000000e+00> : vector<16x96xf32>
    %605 = tpu.matmul %604, %28, %cst_174 {dimension_numbers = #tpu.dot_dimension_numbers<[1], [0], [0], [1], [0, 0, 1, 1], [], []>} : vector<16x32xbf16>, vector<32x96xbf16>, vector<16x96xf32> -> vector<16x96xf32>
    %606 = vector.extract_strided_slice %605 {offsets = [0, 0], sizes = [16, 64], strides = [1, 1]} : vector<16x96xf32> to vector<16x64xf32>
    %607 = vector.extract_strided_slice %605 {offsets = [0, 64], sizes = [16, 32], strides = [1, 1]} : vector<16x96xf32> to vector<16x32xf32>
    %608 = arith.truncf %570 : vector<16x32xf32> to vector<16x32xbf16>
    %cst_175 = arith.constant dense<0.000000e+00> : vector<16x64xf32>
    %609 = tpu.matmul %608, %29, %cst_175 {dimension_numbers = #tpu.dot_dimension_numbers<[1], [0], [0], [1], [0, 0, 1, 1], [], []>} : vector<16x32xbf16>, vector<32x64xbf16>, vector<16x64xf32> -> vector<16x64xf32>
    %610 = arith.addf %609, %606 : vector<16x64xf32>
    %611 = arith.truncf %610 : vector<16x64xf32> to vector<16x64xbf16>
    %cst_176 = arith.constant dense<0.000000e+00> : vector<16x64xf32>
    %612 = tpu.matmul %0, %611, %cst_176 {dimension_numbers = #tpu.dot_dimension_numbers<[1], [0], [0], [1], [0, 0, 1, 1], [], []>} : vector<16x16xbf16>, vector<16x64xbf16>, vector<16x64xf32> -> vector<16x64xf32>
    %613 = arith.addf %612, %33 : vector<16x64xf32>
    %614 = arith.negf %613 : vector<16x64xf32>
    %615 = math.exp %614 : vector<16x64xf32>
    %cst_177 = arith.constant 1.000000e+00 : f32
    %616 = vector.broadcast %cst_177 : f32 to vector<16x64xf32>
    %617 = arith.addf %616, %615 : vector<16x64xf32>
    %618 = arith.divf %616, %617 : vector<16x64xf32>
    %619 = vector.extract_strided_slice %618 {offsets = [0, 0], sizes = [16, 32], strides = [1, 1]} : vector<16x64xf32> to vector<16x32xf32>
    %620 = vector.extract_strided_slice %618 {offsets = [0, 32], sizes = [16, 32], strides = [1, 1]} : vector<16x64xf32> to vector<16x32xf32>
    %621 = arith.mulf %619, %570 : vector<16x32xf32>
    %622 = arith.truncf %621 : vector<16x32xf32> to vector<16x32xbf16>
    %cst_178 = arith.constant dense<0.000000e+00> : vector<16x32xf32>
    %623 = tpu.matmul %622, %30, %cst_178 {dimension_numbers = #tpu.dot_dimension_numbers<[1], [0], [0], [1], [0, 0, 1, 1], [], []>} : vector<16x32xbf16>, vector<32x32xbf16>, vector<16x32xf32> -> vector<16x32xf32>
    %624 = arith.addf %623, %607 : vector<16x32xf32>
    %625 = arith.truncf %624 : vector<16x32xf32> to vector<16x32xbf16>
    %cst_179 = arith.constant dense<0.000000e+00> : vector<16x32xf32>
    %626 = tpu.matmul %0, %625, %cst_179 {dimension_numbers = #tpu.dot_dimension_numbers<[1], [0], [0], [1], [0, 0, 1, 1], [], []>} : vector<16x16xbf16>, vector<16x32xbf16>, vector<16x32xf32> -> vector<16x32xf32>
    %627 = arith.addf %626, %36 : vector<16x32xf32>
    %628 = math.tanh %627 : vector<16x32xf32>
    %629 = arith.mulf %620, %570 : vector<16x32xf32>
    %cst_180 = arith.constant 1.000000e+00 : f32
    %630 = vector.broadcast %cst_180 : f32 to vector<16x32xf32>
    %631 = arith.subf %630, %620 : vector<16x32xf32>
    %632 = arith.mulf %631, %628 : vector<16x32xf32>
    %633 = arith.addf %629, %632 : vector<16x32xf32>
    %634 = arith.truncf %633 : vector<16x32xf32> to vector<16x32xbf16>
    %cst_181 = arith.constant dense<0.000000e+00> : vector<16x2xf32>
    %635 = tpu.matmul %634, %37, %cst_181 {dimension_numbers = #tpu.dot_dimension_numbers<[1], [0], [0], [1], [0, 0, 1, 1], [], []>} : vector<16x32xbf16>, vector<32x2xbf16>, vector<16x2xf32> -> vector<16x2xf32>
    %636 = arith.addf %635, %40 : vector<16x2xf32>
    %637 = arith.truncf %636 : vector<16x2xf32> to vector<16x2xbf16>
    %cst_182 = arith.constant dense<0.000000e+00> : vector<16x96xf32>
    %638 = tpu.matmul %637, %19, %cst_182 {dimension_numbers = #tpu.dot_dimension_numbers<[1], [0], [0], [1], [0, 0, 1, 1], [], []>} : vector<16x2xbf16>, vector<2x96xbf16>, vector<16x96xf32> -> vector<16x96xf32>
    %639 = vector.extract_strided_slice %638 {offsets = [0, 0], sizes = [16, 64], strides = [1, 1]} : vector<16x96xf32> to vector<16x64xf32>
    %640 = vector.extract_strided_slice %638 {offsets = [0, 64], sizes = [16, 32], strides = [1, 1]} : vector<16x96xf32> to vector<16x32xf32>
    %641 = arith.truncf %603 : vector<16x32xf32> to vector<16x32xbf16>
    %cst_183 = arith.constant dense<0.000000e+00> : vector<16x64xf32>
    %642 = tpu.matmul %641, %20, %cst_183 {dimension_numbers = #tpu.dot_dimension_numbers<[1], [0], [0], [1], [0, 0, 1, 1], [], []>} : vector<16x32xbf16>, vector<32x64xbf16>, vector<16x64xf32> -> vector<16x64xf32>
    %643 = arith.addf %642, %639 : vector<16x64xf32>
    %644 = arith.truncf %643 : vector<16x64xf32> to vector<16x64xbf16>
    %cst_184 = arith.constant dense<0.000000e+00> : vector<16x64xf32>
    %645 = tpu.matmul %0, %644, %cst_184 {dimension_numbers = #tpu.dot_dimension_numbers<[1], [0], [0], [1], [0, 0, 1, 1], [], []>} : vector<16x16xbf16>, vector<16x64xbf16>, vector<16x64xf32> -> vector<16x64xf32>
    %646 = arith.addf %645, %24 : vector<16x64xf32>
    %647 = arith.negf %646 : vector<16x64xf32>
    %648 = math.exp %647 : vector<16x64xf32>
    %cst_185 = arith.constant 1.000000e+00 : f32
    %649 = vector.broadcast %cst_185 : f32 to vector<16x64xf32>
    %650 = arith.addf %649, %648 : vector<16x64xf32>
    %651 = arith.divf %649, %650 : vector<16x64xf32>
    %652 = vector.extract_strided_slice %651 {offsets = [0, 0], sizes = [16, 32], strides = [1, 1]} : vector<16x64xf32> to vector<16x32xf32>
    %653 = vector.extract_strided_slice %651 {offsets = [0, 32], sizes = [16, 32], strides = [1, 1]} : vector<16x64xf32> to vector<16x32xf32>
    %654 = arith.mulf %652, %603 : vector<16x32xf32>
    %655 = arith.truncf %654 : vector<16x32xf32> to vector<16x32xbf16>
    %cst_186 = arith.constant dense<0.000000e+00> : vector<16x32xf32>
    %656 = tpu.matmul %655, %21, %cst_186 {dimension_numbers = #tpu.dot_dimension_numbers<[1], [0], [0], [1], [0, 0, 1, 1], [], []>} : vector<16x32xbf16>, vector<32x32xbf16>, vector<16x32xf32> -> vector<16x32xf32>
    %657 = arith.addf %656, %640 : vector<16x32xf32>
    %658 = arith.truncf %657 : vector<16x32xf32> to vector<16x32xbf16>
    %cst_187 = arith.constant dense<0.000000e+00> : vector<16x32xf32>
    %659 = tpu.matmul %0, %658, %cst_187 {dimension_numbers = #tpu.dot_dimension_numbers<[1], [0], [0], [1], [0, 0, 1, 1], [], []>} : vector<16x16xbf16>, vector<16x32xbf16>, vector<16x32xf32> -> vector<16x32xf32>
    %660 = arith.addf %659, %27 : vector<16x32xf32>
    %661 = math.tanh %660 : vector<16x32xf32>
    %662 = arith.mulf %653, %603 : vector<16x32xf32>
    %cst_188 = arith.constant 1.000000e+00 : f32
    %663 = vector.broadcast %cst_188 : f32 to vector<16x32xf32>
    %664 = arith.subf %663, %653 : vector<16x32xf32>
    %665 = arith.mulf %664, %661 : vector<16x32xf32>
    %666 = arith.addf %662, %665 : vector<16x32xf32>
    %667 = arith.truncf %666 : vector<16x32xf32> to vector<16x32xbf16>
    %cst_189 = arith.constant dense<0.000000e+00> : vector<16x96xf32>
    %668 = tpu.matmul %667, %28, %cst_189 {dimension_numbers = #tpu.dot_dimension_numbers<[1], [0], [0], [1], [0, 0, 1, 1], [], []>} : vector<16x32xbf16>, vector<32x96xbf16>, vector<16x96xf32> -> vector<16x96xf32>
    %669 = vector.extract_strided_slice %668 {offsets = [0, 0], sizes = [16, 64], strides = [1, 1]} : vector<16x96xf32> to vector<16x64xf32>
    %670 = vector.extract_strided_slice %668 {offsets = [0, 64], sizes = [16, 32], strides = [1, 1]} : vector<16x96xf32> to vector<16x32xf32>
    %671 = arith.truncf %633 : vector<16x32xf32> to vector<16x32xbf16>
    %cst_190 = arith.constant dense<0.000000e+00> : vector<16x64xf32>
    %672 = tpu.matmul %671, %29, %cst_190 {dimension_numbers = #tpu.dot_dimension_numbers<[1], [0], [0], [1], [0, 0, 1, 1], [], []>} : vector<16x32xbf16>, vector<32x64xbf16>, vector<16x64xf32> -> vector<16x64xf32>
    %673 = arith.addf %672, %669 : vector<16x64xf32>
    %674 = arith.truncf %673 : vector<16x64xf32> to vector<16x64xbf16>
    %cst_191 = arith.constant dense<0.000000e+00> : vector<16x64xf32>
    %675 = tpu.matmul %0, %674, %cst_191 {dimension_numbers = #tpu.dot_dimension_numbers<[1], [0], [0], [1], [0, 0, 1, 1], [], []>} : vector<16x16xbf16>, vector<16x64xbf16>, vector<16x64xf32> -> vector<16x64xf32>
    %676 = arith.addf %675, %33 : vector<16x64xf32>
    %677 = arith.negf %676 : vector<16x64xf32>
    %678 = math.exp %677 : vector<16x64xf32>
    %cst_192 = arith.constant 1.000000e+00 : f32
    %679 = vector.broadcast %cst_192 : f32 to vector<16x64xf32>
    %680 = arith.addf %679, %678 : vector<16x64xf32>
    %681 = arith.divf %679, %680 : vector<16x64xf32>
    %682 = vector.extract_strided_slice %681 {offsets = [0, 0], sizes = [16, 32], strides = [1, 1]} : vector<16x64xf32> to vector<16x32xf32>
    %683 = vector.extract_strided_slice %681 {offsets = [0, 32], sizes = [16, 32], strides = [1, 1]} : vector<16x64xf32> to vector<16x32xf32>
    %684 = arith.mulf %682, %633 : vector<16x32xf32>
    %685 = arith.truncf %684 : vector<16x32xf32> to vector<16x32xbf16>
    %cst_193 = arith.constant dense<0.000000e+00> : vector<16x32xf32>
    %686 = tpu.matmul %685, %30, %cst_193 {dimension_numbers = #tpu.dot_dimension_numbers<[1], [0], [0], [1], [0, 0, 1, 1], [], []>} : vector<16x32xbf16>, vector<32x32xbf16>, vector<16x32xf32> -> vector<16x32xf32>
    %687 = arith.addf %686, %670 : vector<16x32xf32>
    %688 = arith.truncf %687 : vector<16x32xf32> to vector<16x32xbf16>
    %cst_194 = arith.constant dense<0.000000e+00> : vector<16x32xf32>
    %689 = tpu.matmul %0, %688, %cst_194 {dimension_numbers = #tpu.dot_dimension_numbers<[1], [0], [0], [1], [0, 0, 1, 1], [], []>} : vector<16x16xbf16>, vector<16x32xbf16>, vector<16x32xf32> -> vector<16x32xf32>
    %690 = arith.addf %689, %36 : vector<16x32xf32>
    %691 = math.tanh %690 : vector<16x32xf32>
    %692 = arith.mulf %683, %633 : vector<16x32xf32>
    %cst_195 = arith.constant 1.000000e+00 : f32
    %693 = vector.broadcast %cst_195 : f32 to vector<16x32xf32>
    %694 = arith.subf %693, %683 : vector<16x32xf32>
    %695 = arith.mulf %694, %691 : vector<16x32xf32>
    %696 = arith.addf %692, %695 : vector<16x32xf32>
    %697 = arith.truncf %696 : vector<16x32xf32> to vector<16x32xbf16>
    %cst_196 = arith.constant dense<0.000000e+00> : vector<16x2xf32>
    %698 = tpu.matmul %697, %37, %cst_196 {dimension_numbers = #tpu.dot_dimension_numbers<[1], [0], [0], [1], [0, 0, 1, 1], [], []>} : vector<16x32xbf16>, vector<32x2xbf16>, vector<16x2xf32> -> vector<16x2xf32>
    %699 = arith.addf %698, %40 : vector<16x2xf32>
    %700 = arith.truncf %699 : vector<16x2xf32> to vector<16x2xbf16>
    %cst_197 = arith.constant dense<0.000000e+00> : vector<16x96xf32>
    %701 = tpu.matmul %700, %19, %cst_197 {dimension_numbers = #tpu.dot_dimension_numbers<[1], [0], [0], [1], [0, 0, 1, 1], [], []>} : vector<16x2xbf16>, vector<2x96xbf16>, vector<16x96xf32> -> vector<16x96xf32>
    %702 = vector.extract_strided_slice %701 {offsets = [0, 0], sizes = [16, 64], strides = [1, 1]} : vector<16x96xf32> to vector<16x64xf32>
    %703 = vector.extract_strided_slice %701 {offsets = [0, 64], sizes = [16, 32], strides = [1, 1]} : vector<16x96xf32> to vector<16x32xf32>
    %704 = arith.truncf %666 : vector<16x32xf32> to vector<16x32xbf16>
    %cst_198 = arith.constant dense<0.000000e+00> : vector<16x64xf32>
    %705 = tpu.matmul %704, %20, %cst_198 {dimension_numbers = #tpu.dot_dimension_numbers<[1], [0], [0], [1], [0, 0, 1, 1], [], []>} : vector<16x32xbf16>, vector<32x64xbf16>, vector<16x64xf32> -> vector<16x64xf32>
    %706 = arith.addf %705, %702 : vector<16x64xf32>
    %707 = arith.truncf %706 : vector<16x64xf32> to vector<16x64xbf16>
    %cst_199 = arith.constant dense<0.000000e+00> : vector<16x64xf32>
    %708 = tpu.matmul %0, %707, %cst_199 {dimension_numbers = #tpu.dot_dimension_numbers<[1], [0], [0], [1], [0, 0, 1, 1], [], []>} : vector<16x16xbf16>, vector<16x64xbf16>, vector<16x64xf32> -> vector<16x64xf32>
    %709 = arith.addf %708, %24 : vector<16x64xf32>
    %710 = arith.negf %709 : vector<16x64xf32>
    %711 = math.exp %710 : vector<16x64xf32>
    %cst_200 = arith.constant 1.000000e+00 : f32
    %712 = vector.broadcast %cst_200 : f32 to vector<16x64xf32>
    %713 = arith.addf %712, %711 : vector<16x64xf32>
    %714 = arith.divf %712, %713 : vector<16x64xf32>
    %715 = vector.extract_strided_slice %714 {offsets = [0, 0], sizes = [16, 32], strides = [1, 1]} : vector<16x64xf32> to vector<16x32xf32>
    %716 = vector.extract_strided_slice %714 {offsets = [0, 32], sizes = [16, 32], strides = [1, 1]} : vector<16x64xf32> to vector<16x32xf32>
    %717 = arith.mulf %715, %666 : vector<16x32xf32>
    %718 = arith.truncf %717 : vector<16x32xf32> to vector<16x32xbf16>
    %cst_201 = arith.constant dense<0.000000e+00> : vector<16x32xf32>
    %719 = tpu.matmul %718, %21, %cst_201 {dimension_numbers = #tpu.dot_dimension_numbers<[1], [0], [0], [1], [0, 0, 1, 1], [], []>} : vector<16x32xbf16>, vector<32x32xbf16>, vector<16x32xf32> -> vector<16x32xf32>
    %720 = arith.addf %719, %703 : vector<16x32xf32>
    %721 = arith.truncf %720 : vector<16x32xf32> to vector<16x32xbf16>
    %cst_202 = arith.constant dense<0.000000e+00> : vector<16x32xf32>
    %722 = tpu.matmul %0, %721, %cst_202 {dimension_numbers = #tpu.dot_dimension_numbers<[1], [0], [0], [1], [0, 0, 1, 1], [], []>} : vector<16x16xbf16>, vector<16x32xbf16>, vector<16x32xf32> -> vector<16x32xf32>
    %723 = arith.addf %722, %27 : vector<16x32xf32>
    %724 = math.tanh %723 : vector<16x32xf32>
    %725 = arith.mulf %716, %666 : vector<16x32xf32>
    %cst_203 = arith.constant 1.000000e+00 : f32
    %726 = vector.broadcast %cst_203 : f32 to vector<16x32xf32>
    %727 = arith.subf %726, %716 : vector<16x32xf32>
    %728 = arith.mulf %727, %724 : vector<16x32xf32>
    %729 = arith.addf %725, %728 : vector<16x32xf32>
    %730 = arith.truncf %729 : vector<16x32xf32> to vector<16x32xbf16>
    %cst_204 = arith.constant dense<0.000000e+00> : vector<16x96xf32>
    %731 = tpu.matmul %730, %28, %cst_204 {dimension_numbers = #tpu.dot_dimension_numbers<[1], [0], [0], [1], [0, 0, 1, 1], [], []>} : vector<16x32xbf16>, vector<32x96xbf16>, vector<16x96xf32> -> vector<16x96xf32>
    %732 = vector.extract_strided_slice %731 {offsets = [0, 0], sizes = [16, 64], strides = [1, 1]} : vector<16x96xf32> to vector<16x64xf32>
    %733 = vector.extract_strided_slice %731 {offsets = [0, 64], sizes = [16, 32], strides = [1, 1]} : vector<16x96xf32> to vector<16x32xf32>
    %734 = arith.truncf %696 : vector<16x32xf32> to vector<16x32xbf16>
    %cst_205 = arith.constant dense<0.000000e+00> : vector<16x64xf32>
    %735 = tpu.matmul %734, %29, %cst_205 {dimension_numbers = #tpu.dot_dimension_numbers<[1], [0], [0], [1], [0, 0, 1, 1], [], []>} : vector<16x32xbf16>, vector<32x64xbf16>, vector<16x64xf32> -> vector<16x64xf32>
    %736 = arith.addf %735, %732 : vector<16x64xf32>
    %737 = arith.truncf %736 : vector<16x64xf32> to vector<16x64xbf16>
    %cst_206 = arith.constant dense<0.000000e+00> : vector<16x64xf32>
    %738 = tpu.matmul %0, %737, %cst_206 {dimension_numbers = #tpu.dot_dimension_numbers<[1], [0], [0], [1], [0, 0, 1, 1], [], []>} : vector<16x16xbf16>, vector<16x64xbf16>, vector<16x64xf32> -> vector<16x64xf32>
    %739 = arith.addf %738, %33 : vector<16x64xf32>
    %740 = arith.negf %739 : vector<16x64xf32>
    %741 = math.exp %740 : vector<16x64xf32>
    %cst_207 = arith.constant 1.000000e+00 : f32
    %742 = vector.broadcast %cst_207 : f32 to vector<16x64xf32>
    %743 = arith.addf %742, %741 : vector<16x64xf32>
    %744 = arith.divf %742, %743 : vector<16x64xf32>
    %745 = vector.extract_strided_slice %744 {offsets = [0, 0], sizes = [16, 32], strides = [1, 1]} : vector<16x64xf32> to vector<16x32xf32>
    %746 = vector.extract_strided_slice %744 {offsets = [0, 32], sizes = [16, 32], strides = [1, 1]} : vector<16x64xf32> to vector<16x32xf32>
    %747 = arith.mulf %745, %696 : vector<16x32xf32>
    %748 = arith.truncf %747 : vector<16x32xf32> to vector<16x32xbf16>
    %cst_208 = arith.constant dense<0.000000e+00> : vector<16x32xf32>
    %749 = tpu.matmul %748, %30, %cst_208 {dimension_numbers = #tpu.dot_dimension_numbers<[1], [0], [0], [1], [0, 0, 1, 1], [], []>} : vector<16x32xbf16>, vector<32x32xbf16>, vector<16x32xf32> -> vector<16x32xf32>
    %750 = arith.addf %749, %733 : vector<16x32xf32>
    %751 = arith.truncf %750 : vector<16x32xf32> to vector<16x32xbf16>
    %cst_209 = arith.constant dense<0.000000e+00> : vector<16x32xf32>
    %752 = tpu.matmul %0, %751, %cst_209 {dimension_numbers = #tpu.dot_dimension_numbers<[1], [0], [0], [1], [0, 0, 1, 1], [], []>} : vector<16x16xbf16>, vector<16x32xbf16>, vector<16x32xf32> -> vector<16x32xf32>
    %753 = arith.addf %752, %36 : vector<16x32xf32>
    %754 = math.tanh %753 : vector<16x32xf32>
    %755 = arith.mulf %746, %696 : vector<16x32xf32>
    %cst_210 = arith.constant 1.000000e+00 : f32
    %756 = vector.broadcast %cst_210 : f32 to vector<16x32xf32>
    %757 = arith.subf %756, %746 : vector<16x32xf32>
    %758 = arith.mulf %757, %754 : vector<16x32xf32>
    %759 = arith.addf %755, %758 : vector<16x32xf32>
    %760 = arith.truncf %759 : vector<16x32xf32> to vector<16x32xbf16>
    %cst_211 = arith.constant dense<0.000000e+00> : vector<16x2xf32>
    %761 = tpu.matmul %760, %37, %cst_211 {dimension_numbers = #tpu.dot_dimension_numbers<[1], [0], [0], [1], [0, 0, 1, 1], [], []>} : vector<16x32xbf16>, vector<32x2xbf16>, vector<16x2xf32> -> vector<16x2xf32>
    %762 = arith.addf %761, %40 : vector<16x2xf32>
    %763 = tpu.concatenate %573, %636, %699, %762 in 0 : vector<16x2xf32>, vector<16x2xf32>, vector<16x2xf32>, vector<16x2xf32> -> vector<64x2xf32>
    %c0_212 = arith.constant 0 : index
    %c0_213 = arith.constant 0 : index
    %764 = vector.load %arg24[%c0_212, %c0_213] : memref<64x2xf32, #tpu.memory_space<vmem>>, vector<64x2xf32>
    tpu.vector_store %arg24[%c0_212, %c0_213], %763 {strides = array<i32>} : memref<64x2xf32, #tpu.memory_space<vmem>>, vector<64x2xf32>,
    return
  }
}

</mosaic_0001>

<bundles_post_ra>
// kernel: dcrnn_forward.1
= control target key start
LH: loop header
LB: loop body
LE: loop exit
PB: predicated region body
PF: predicated region fallthrough
CT: control target
= control target key end

     0   :  { %vm270_vm0 = vcmask 1040384   ;;  %vm271_vm1 = vcmask 1041408   ;;  %v8421_v0 = vmov 0.0   ;;  %v8422_v2 = vmov 65535   ;;  %s10464_s28 = smov 32   ;;  %s10431_s3 = inlined_call_operand.vmem [shape: bf16[32,64], index: 3, kind: input, shape index: {}]   ;;  %s10432_s2 = inlined_call_operand.vmem [shape: bf16[3,96], index: 2, kind: input, shape index: {}]   ;;  %s10433_s1 = inlined_call_operand.vmem [shape: bf16[128,3], index: 1, kind: input, shape index: {}]   ;;  %s10434_s0 = inlined_call_operand.vmem [shape: bf16[16,16], index: 0, kind: input, shape index: {}]   ;;  %s10435_s4 = inlined_call_operand.vmem [shape: bf16[32,32], index: 4, kind: input, shape index: {}]   ;;  %s10436_s5 = inlined_call_operand.vmem [shape: f32[1,64], index: 5, kind: input, shape index: {}]   ;;  %s10437_s6 = inlined_call_operand.vmem [shape: f32[1,32], index: 6, kind: input, shape index: {}]   ;;  %s10438_s7 = inlined_call_operand.vmem [shape: bf16[32,96], index: 7, kind: input, shape index: {}]   ;;  %s10439_s8 = inlined_call_operand.vmem [shape: bf16[32,64], index: 8, kind: input, shape index: {}]   ;;  %s10440_s9 = inlined_call_operand.vmem [shape: bf16[32,32], index: 9, kind: input, shape index: {}]   ;;  %s10441_s10 = inlined_call_operand.vmem [shape: f32[1,64], index: 10, kind: input, shape index: {}]   ;;  %s10442_s11 = inlined_call_operand.vmem [shape: f32[1,32], index: 11, kind: input, shape index: {}]   ;;  %s10443_s13 = inlined_call_operand.vmem [shape: bf16[32,64], index: 13, kind: input, shape index: {}]   ;;  %s10444_s14 = inlined_call_operand.vmem [shape: bf16[32,32], index: 14, kind: input, shape index: {}]   ;;  %s10445_s15 = inlined_call_operand.vmem [shape: f32[1,64], index: 15, kind: input, shape index: {}]   ;;  %s10446_s18 = inlined_call_operand.vmem [shape: bf16[32,64], index: 18, kind: input, shape index: {}]   ;;  %s10447_s16 = inlined_call_operand.vmem [shape: f32[1,32], index: 16, kind: input, shape index: {}]   ;;  %s10448_s17 = inlined_call_operand.vmem [shape: bf16[32,96], index: 17, kind: input, shape index: {}]   ;;  %s10449_s19 = inlined_call_operand.vmem [shape: bf16[32,32], index: 19, kind: input, shape index: {}]   ;;  %s10450_s20 = inlined_call_operand.vmem [shape: f32[1,64], index: 20, kind: input, shape index: {}]   ;;  %s10451_s21 = inlined_call_operand.vmem [shape: f32[1,32], index: 21, kind: input, shape index: {}]   ;;  %s10452_s22 = inlined_call_operand.vmem [shape: bf16[32,2], index: 22, kind: input, shape index: {}]   ;;  %s10453_s12 = inlined_call_operand.vmem [shape: bf16[2,96], index: 12, kind: input, shape index: {}]   ;;  %s10454_s23 = inlined_call_operand.vmem [shape: f32[1,2], index: 23, kind: input, shape index: {}]   ;;  %s10455_s24 = inlined_call_operand.vmem [shape: f32[64,2], index: 24, kind: output, shape index: {}]  }
   0x1   :  { %10466 = sst [smem:[#allocation2_spill]] %s10431_s3  ;;  %7228 = vmatprep.subr.bf16.mxu1 %v8421_v0  ;;  %v272_v3 = vsel %vm270_vm0, 4294967295, %v8422_v2  ;;  %vm245_vm2 = vcmask 23552   ;;  %vm8423_vm3 = vmmov 0   ;;  %v8424_v10 = vmov 0  }
   0x2   :  { %10467 = sst [smem:[#allocation3_spill]] %s10432_s2  ;;  %s10475_s27 = sld [smem:[#allocation2_spill]]  ;;  %v273_v5 = vsel %vm271_vm1, %v272_v3, 0  ;;  %7232 = vmatprep.mubr.msk.bf16.mxu1 %vm8423_vm3, %v8421_v0  ;;  %vm437_vm4 = vcmask 130048   ;;  %vm386_vm5 = vcmask 261120   ;;  %vm4952_vm6 = vcmask 15360  }
   0x3   :  { %10468 = sst [smem:[#allocation4_spill]] %s10433_s1  ;;  %s10476_s1 = sld [smem:[#allocation3_spill]] }
   0x4   :  { %10469 = sst [smem:[#allocation5_spill]] %s10434_s0  ;;  %s10484_s2 = smov 32  }
   0x5   :  { %10470 = sst [smem:[#allocation6_spill]] %s10435_s4  ;;  %s8425_s4 = smov 64  }
   0x6   :  { %10471 = sst [smem:[#allocation7_spill]] %s10436_s5  ;;  %s10478_s26 = sld [smem:[#allocation5_spill]] }
   0x7   :  { %10472 = sst [smem:[#allocation8_spill]] %s10437_s6  ;;  %s10480_s25 = sld [smem:[#allocation7_spill]] }
   0x8   :  { %10473 = sst [smem:[#allocation9_spill]] %s10438_s7  ;;  %v8557_v1 = vld [vmem:[%s10475_s27] sm:$0xff]   ;;  %s10477_s7 = sld [smem:[#allocation4_spill]]  ;;  %v8570_v8 = vld [vmem:[%s10475_s27 + $0x8] sm:$0xff]  }
   0x9   :  { %10474 = sst [smem:[#allocation10_spill]] %s10439_s8  ;;  %v80_v4 = vld [vmem:[%s10476_s1] sm:$0x3]  ;;  %7229 = vmatpush3.bf16.msra.mxu1 %v8557_v1  ;;  %s10479_s1 = sld [smem:[#allocation6_spill]] }
   0xa   :  { %v275_v7 = vand.u32 %v273_v5, %v80_v4  ;;  %7230 = vmatprep.subr.bf16.mxu1 %v8421_v0  ;;  %s10481_s5 = sld [smem:[#allocation8_spill]]  ;;  %s10482_s8 = sld [smem:[#allocation9_spill]] }
   0xb   :  { %s10483_s30 = sld [smem:[#allocation10_spill]] }
   0xc   :  { %7210 = vmatprep.subr.bf16.mxu0 %v275_v7  ;;  %v8599_v22 = vld [vmem:[%s10478_s26] sm:$0xff]  }
   0xd   :  { %7211 = vmatpush3.bf16.msra.mxu0 %v275_v7  ;;  %7231 = vmatpush3.bf16.msra.mxu1 %v8570_v8  ;;  %v8623_v25 = vld [vmem:[%s10480_s25] ss:$0 sm:$0xff] }
   0xe   :  { %v8054_v6 = vld [vmem:[%s10477_s7] sm:$0xff]   ;;  %v8056_v9 = vld [vmem:[%s10477_s7 + $0x8] sm:$0xff]   ;;  %7256 = vmatprep.subr.bf16.mxu0 %v8421_v0  ;;  %7236 = vmatprep.subr.bf16.mxu1 %v8421_v0  ;;  %v8060_v61 = vld [vmem:[%s10477_s7 + $0x10] sm:$0xff]  }
   0xf   :  { %7212 = vmatprep.mubr.msk.bf16.mxu0 %vm245_vm2, %v8054_v6  ;;  %v8609_v23 = vld [vmem:[%s10479_s1] sm:$0xff]   ;;  %v8615_v24 = vld [vmem:[%s10479_s1 + $0x8] sm:$0xff]   ;;  %v8061_v62 = vld [vmem:[%s10477_s7 + $0x18] sm:$0xff]  }
  0x10   :  { %7213 = vmatmul.mubr.msk.bf16.vlgmr.msra.gmra.mrb[0].mxu0 %vm245_vm2, %v8056_v9  ;;  %7233 = vmatmul.mubr.bf16.vlgmr.msra.gmra.mrb[0].mxu1 %v8424_v10  ;;  %v8638_v52 = vld [vmem:[%s10481_s5] ss:$0 sm:$0xff]  ;;  %v8063_v2 = vld [vmem:[%s10477_s7 + $0x28] sm:$0xff]   ;;  %v8064_v3 = vld [vmem:[%s10477_s7 + $0x30] sm:$0xff]  }
  0x11   :  { %7257 = vmatpush3.bf16.msra.mxu0 %v8557_v1  ;;  %7238 = vmatprep.mubr.msk.bf16.mxu1 %vm8423_vm3, %v8421_v0  ;;  %v8062_v63 = vld [vmem:[%s10477_s7 + $0x20] sm:$0xff]   ;;  %v8065_v4 = vld [vmem:[%s10477_s7 + $0x38] sm:$0xff]  }
  0x12   :  { %7258 = vmatprep.subr.bf16.mxu0 %v8421_v0  ;;  %7216 = vmatprep.mubr.msk.bf16.mxu0 %vm245_vm2, %v8060_v61  ;;  %v8741_v61 = vld [vmem:[%s10482_s8 + $0x8] sm:$0xff]  }
  0x15   :  { %7259 = vmatpush3.bf16.msra.mxu0 %v8570_v8 }
  0x16   :  { %7270 = vmatprep.subr.bf16.mxu0 %v8421_v0 }
  0x18   :  { %7217 = vmatmul.mubr.msk.bf16.gmra.mrb[4].mxu0 %vm245_vm2, %v8061_v62 }
  0x19   :  { %7220 = vmatprep.mubr.msk.bf16.mxu0 %vm245_vm2, %v8062_v63 }
  0x20   :  { %7221 = vmatmul.mubr.msk.bf16.gmra.mrb[8].mxu0 %vm245_vm2, %v8063_v2 }
  0x21   :  { %7224 = vmatprep.mubr.msk.bf16.mxu0 %vm245_vm2, %v8064_v3 }
  0x28   :  { %7225 = vmatmul.mubr.msk.bf16.gmra.mrb[12].mxu0 %vm245_vm2, %v8065_v4 }
  0x29   :  { %7260 = vmatprep.mubr.msk.bf16.mxu0 %vm8423_vm3, %v8421_v0 }
  0xe3   :  { %v8590_v11 = vpop.f32.mrb[0].mxu0  ;;  %v424_v13 = vpop.f32.mrb[0].mxu1 }
  0xe4   :  { %v311_v12 = vpop.f32.mrb[1].mxu0  ;;  %v7234_v16 = vpop.f32.mrb[1].mxu1 }
  0xe5   :  { %v425_v14 = vadd.f32 %v424_v13, %v311_v12  ;;  %511 = vrot.lane.b32.xlu0 %v311_v12, %s8425_s4  ;;  %v8593_v15 = vpop.f32.mrb[2].mxu0  ;;  %v427_v18 = vpop.f32.mrb[2].mxu1 }
  0xe6   :  { %v314_v17 = vpop.f32.mrb[3].mxu0  ;;  %v7235_v20 = vpop.f32.mrb[3].mxu1 }
  0xe7   :  { %v428_v19 = vadd.f32 %v427_v18, %v314_v17 }
  0xe9   :  { %v431_v21 = vpack.c.bf16 %v428_v19, %v425_v14  ;;  %513 = vrot.lane.b32.xlu0 %v314_v17, %s8425_s4 }
  0xeb   :  { %7237 = vmatpush3.bf16.msra.mxu1 %v431_v21  ;;  %v8685_v18 = vpop.f32.mrb[4].mxu0 }
  0xec   :  { %7242 = vmatprep.subr.bf16.mxu1 %v8421_v0  ;;  %v8687_v19 = vpop.f32.mrb[5].mxu0 }
  0xed   :  { %v8689_v20 = vpop.f32.mrb[6].mxu0 }
  0xee   :  { %7239 = vmatmul.mubr.msk.bf16.vlgmr.msra.gmra.mrb[4].mxu1 %vm437_vm4, %v8599_v22  ;;  %v8691_v21 = vpop.f32.mrb[7].mxu0 }
  0xef   :  { %7246 = vmatprep.mubr.msk.bf16.mxu1 %vm8423_vm3, %v8421_v0  ;;  %7243 = vmatpush3.bf16.msra.mxu1 %v8609_v23 }
  0xf0   :  { %7244 = vmatprep.subr.bf16.mxu1 %v8421_v0 }
  0xf3   :  { %7245 = vmatpush3.bf16.msra.mxu1 %v8615_v24 }
  0xf4   :  { %7250 = vmatprep.subr.bf16.mxu1 %v8421_v0 }
 0x157   :  { %v512_v43 = vpop.permute.xlu0 %511 }
 0x15b   :  { %v514_v46 = vpop.permute.xlu0 %513 }
 0x1c1   :  { %v475_v26 = vpop.f32.mrb[4].mxu1 }
 0x1c2   :  { %v476_v27 = vadd.f32 %v8623_v25, %v475_v26  ;;  %v7240_v28 = vpop.f32.mrb[5].mxu1  ;;  %v8693_v26 = vpop.f32.mrb[8].mxu0 }
 0x1c3   :  { %v478_v29 = vpop.f32.mrb[6].mxu1 }
 0x1c4   :  { %v6727_v30 = vmul.f32 -1.442695, %v476_v27  ;;  %v479_v31 = vadd.f32 %v8623_v25, %v478_v29  ;;  %v7241_v32 = vpop.f32.mrb[7].mxu1  ;;  %v8695_v27 = vpop.f32.mrb[9].mxu0 }
 0x1c5   :  { %v8697_v28 = vpop.f32.mrb[10].mxu0 }
 0x1c6   :  { %8084 = vpow2.f32 %v6727_v30  ;;  %v6728_v33 = vmul.f32 -1.442695, %v479_v31  ;;  %v8699_v29 = vpop.f32.mrb[11].mxu0 }
 0x1c7   :  { %v8701_v30 = vpop.f32.mrb[12].mxu0 }
 0x1c8   :  { %8086 = vpow2.f32 %v6728_v33  ;;  %v8703_v31 = vpop.f32.mrb[13].mxu0 }
 0x1c9   :  { %v8705_v32 = vpop.f32.mrb[14].mxu0 }
 0x1ca   :  { %v8707_v33 = vpop.f32.mrb[15].mxu0 }
 0x1d0   :  { %v8085_v34 = vpop.eup %8084 }
 0x1d1   :  { %v488_v35 = vadd.f32 1.0, %v8085_v34 }
 0x1d2   :  { %v8087_v36 = vpop.eup %8086 }
 0x1d3   :  { %8088 = vrcp.f32 %v488_v35  ;;  %v489_v37 = vadd.f32 1.0, %v8087_v36 }
 0x1d5   :  { %8090 = vrcp.f32 %v489_v37 }
 0x1dd   :  { %v8089_v38 = vpop.eup %8088 }
 0x1de   :  { %v494_v40 = vmul.f32 0.0, %v8089_v38  ;;  %v605_v5 = vsub.f32 1.0, %v8089_v38 }
 0x1df   :  { %v8091_v39 = vpop.eup %8090 }
 0x1e0   :  { %v495_v41 = vmul.f32 0.0, %v8091_v39  ;;  %v606_v12 = vsub.f32 1.0, %v8091_v39 }
 0x1e2   :  { %v496_v42 = vpack.c.bf16 %v495_v41, %v494_v40 }
 0x1e4   :  { %7247 = vmatmul.mubr.msk.bf16.vlgmr.msra.gmra.mrb[8].mxu1 %vm386_vm5, %v496_v42 }
 0x1e5   :  { %7252 = vmatprep.mubr.msk.bf16.mxu1 %vm8423_vm3, %v8421_v0 }
 0x2b7   :  { %v554_v44 = vpop.f32.mrb[8].mxu1 }
 0x2b8   :  { %v7248_v45 = vpop.f32.mrb[9].mxu1  ;;  %v555_v48 = vadd.f32 %v554_v44, %v512_v43 }
 0x2b9   :  { %v557_v47 = vpop.f32.mrb[10].mxu1 }
 0x2ba   :  { %v558_v49 = vadd.f32 %v557_v47, %v514_v46  ;;  %v7249_v50 = vpop.f32.mrb[11].mxu1 }
 0x2bc   :  { %v561_v51 = vpack.c.bf16 %v558_v49, %v555_v48 }
 0x2be   :  { %7251 = vmatpush3.bf16.msra.mxu1 %v561_v51 }
 0x2bf   :  { %7264 = vmatprep.subr.bf16.mxu1 %v8421_v0 }
 0x2c1   :  { %7253 = vmatmul.mubr.msk.bf16.vlgmr.msra.gmra.mrb[12].mxu1 %vm437_vm4, %v8599_v22 }
 0x2c2   :  { %7266 = vmatprep.mubr.msk.bf16.mxu1 %vm8423_vm3, %v8421_v0 }
 0x394   :  { %v596_v53 = vpop.f32.mrb[12].mxu1 }
 0x395   :  { %v597_v54 = vadd.f32 %v8638_v52, %v596_v53  ;;  %v7254_v55 = vpop.f32.mrb[13].mxu1 }
 0x396   :  { %v599_v56 = vpop.f32.mrb[14].mxu1 }
 0x397   :  { %8092 = vtanh.f32 %v597_v54  ;;  %v600_v57 = vadd.f32 %v8638_v52, %v599_v56  ;;  %v7255_v58 = vpop.f32.mrb[15].mxu1 }
 0x399   :  { %8094 = vtanh.f32 %v600_v57 }
 0x3a1   :  { %v8093_v59 = vpop.eup %8092 }
 0x3a2   :  { %609 = vrot.lane.b32.xlu1 %v8093_v59, %s10464_s28  ;;  %v8734_v59 = vld [vmem:[%s10482_s8] sm:$0xff]  }
 0x3a3   :  { %v8095_v60 = vpop.eup %8094 }
 0x3a6   :  { %611 = vrot.lane.b32.xlu1 %v8095_v60, %s10464_s28  ;;  %s8427_s28 = smov 96  }
 0x414   :  { %v610_v6 = vpop.permute.xlu1 %609 }
 0x415   :  { %v615_v7 = vmul.f32 %v610_v6, %v605_v5 }
 0x417   :  { %v8670_v9 = vadd.f32 %v615_v7, %v494_v40 }
 0x418   :  { %v612_v13 = vpop.permute.xlu1 %611 }
 0x419   :  { %v616_v14 = vmul.f32 %v612_v13, %v606_v12  ;;  %723 = vrot.lane.b32.xlu1 %v8670_v9, %s8427_s28  ;;  %v8754_v13 = vld [vmem:[%s10483_s30] sm:$0xff]  }
 0x41b   :  { %v8674_v16 = vadd.f32 %v616_v14, %v495_v41 }
 0x41d   :  { %734 = vrot.lane.b32.xlu1 %v8590_v11, %s8425_s4  ;;  %v619_v17 = vpack.c.bf16 %v8674_v16, %v8670_v9 }
 0x41f   :  { %621 = vrot.lane.b32.xlu0 %v619_v17, %s8427_s28 }
 0x423   :  { %725 = vrot.lane.b32.xlu0 %v8674_v16, %s8427_s28 }
 0x427   :  { %736 = vrot.lane.b32.xlu0 %v8593_v15, %s8425_s4 }
 0x48b   :  { %v724_v55 = vpop.permute.xlu1 %723 }
 0x48f   :  { %v735_v63 = vpop.permute.xlu1 %734 }
 0x491   :  { %v622_v34 = vpop.permute.xlu0 %621 }
 0x492   :  { %7261 = vmatmul.mubr.msk.bf16.vlgmr.msra.gmra.mrb[16].mxu0 %vm386_vm5, %v622_v34 }
 0x493   :  { %7271 = vmatpush3.bf16.msra.mxu0 %v8609_v23  ;;  %7274 = vmatprep.mubr.msk.bf16.mxu0 %vm8423_vm3, %v8421_v0 }
 0x494   :  { %7272 = vmatprep.subr.bf16.mxu0 %v8421_v0 }
 0x495   :  { %v726_v56 = vpop.permute.xlu0 %725 }
 0x497   :  { %7273 = vmatpush3.bf16.msra.mxu0 %v8615_v24 }
 0x498   :  { %7284 = vmatprep.subr.bf16.mxu0 %v8421_v0 }
 0x499   :  { %v737_v3 = vpop.permute.xlu0 %736 }
 0x565   :  { %v660_v35 = vpop.f32.mrb[16].mxu0 }
 0x566   :  { %v661_v36 = vadd.f32 %v8590_v11, %v660_v35  ;;  %v7262_v37 = vpop.f32.mrb[17].mxu0 }
 0x567   :  { %v663_v38 = vpop.f32.mrb[18].mxu0 }
 0x568   :  { %v664_v39 = vadd.f32 %v8593_v15, %v663_v38  ;;  %v7263_v40 = vpop.f32.mrb[19].mxu0 }
 0x56a   :  { %v667_v41 = vpack.c.bf16 %v664_v39, %v661_v36  ;;  %v8763_v36 = vld [vmem:[%s10483_s30 + $0x8] sm:$0xff]  }
 0x56c   :  { %7265 = vmatpush3.bf16.msra.mxu1 %v667_v41 }
 0x56d   :  { %7278 = vmatprep.subr.bf16.mxu1 %v8421_v0 }
 0x56f   :  { %7267 = vmatmul.mubr.msk.bf16.vlgmr.msra.gmra.mrb[16].mxu1 %vm437_vm4, %v8599_v22 }
 0x570   :  { %7280 = vmatprep.mubr.msk.bf16.mxu1 %vm8423_vm3, %v8421_v0 }
 0x642   :  { %v702_v42 = vpop.f32.mrb[16].mxu1 }
 0x643   :  { %v703_v43 = vadd.f32 %v8623_v25, %v702_v42  ;;  %v7268_v44 = vpop.f32.mrb[17].mxu1 }
 0x644   :  { %v705_v11 = vpop.f32.mrb[18].mxu1 }
 0x645   :  { %v6735_v45 = vmul.f32 -1.442695, %v703_v43  ;;  %v706_v46 = vadd.f32 %v8623_v25, %v705_v11  ;;  %v7269_v15 = vpop.f32.mrb[19].mxu1 }
 0x647   :  { %8096 = vpow2.f32 %v6735_v45  ;;  %v6736_v47 = vmul.f32 -1.442695, %v706_v46 }
 0x649   :  { %8098 = vpow2.f32 %v6736_v47 }
 0x651   :  { %v8097_v48 = vpop.eup %8096 }
 0x652   :  { %v715_v49 = vadd.f32 1.0, %v8097_v48 }
 0x653   :  { %v8099_v50 = vpop.eup %8098 }
 0x654   :  { %8100 = vrcp.f32 %v715_v49  ;;  %v716_v51 = vadd.f32 1.0, %v8099_v50  ;;  %v8787_v50 = vld [vmem:[%s10440_s9] sm:$0xff]  }
 0x656   :  { %8102 = vrcp.f32 %v716_v51 }
 0x65e   :  { %v8725_v53 = vpop.eup %8100 }
 0x65f   :  { %v729_v57 = vmul.f32 %v8725_v53, %v724_v55  ;;  %v830_v49 = vsub.f32 1.0, %v8725_v53  ;;  %v828_v55 = vmul.f32 %v8725_v53, %v8670_v9 }
 0x660   :  { %v8727_v54 = vpop.eup %8102 }
 0x661   :  { %v730_v58 = vmul.f32 %v8727_v54, %v726_v56 }
 0x663   :  { %v731_v60 = vpack.c.bf16 %v730_v58, %v729_v57  ;;  %v831_v57 = vsub.f32 1.0, %v8727_v54 }
 0x665   :  { %7275 = vmatmul.mubr.msk.bf16.vlgmr.msra.gmra.mrb[20].mxu0 %vm386_vm5, %v731_v60 }
 0x666   :  { %7285 = vmatpush3.bf16.msra.mxu0 %v8734_v59  ;;  %7288 = vmatprep.mubr.msk.bf16.mxu0 %vm8423_vm3, %v8421_v0 }
 0x667   :  { %7286 = vmatprep.subr.bf16.mxu0 %v8421_v0 }
 0x66a   :  { %7287 = vmatpush3.bf16.msra.mxu0 %v8741_v61 }
 0x66b   :  { %7300 = vmatprep.subr.bf16.mxu0 %v8421_v0 }
 0x66d   :  { %7289 = vmatmul.mubr.msk.bf16.vlgmr.msra.gmra.mrb[24].mxu0 %vm386_vm5, %v622_v34 }
 0x66e   :  { %7302 = vmatprep.mubr.msk.bf16.mxu0 %vm8423_vm3, %v8421_v0 }
 0x738   :  { %v777_v62 = vpop.f32.mrb[20].mxu0 }
 0x739   :  { %v7276_v2 = vpop.f32.mrb[21].mxu0  ;;  %v778_v5 = vadd.f32 %v777_v62, %v735_v63  ;;  %v829_v62 = vmul.f32 %v8727_v54, %v8674_v16  ;;  %v8818_v16 = vld [vmem:[%s10441_s10] ss:$0 sm:$0xff] }
 0x73a   :  { %v780_v4 = vpop.f32.mrb[22].mxu0  ;;  %v8801_v2 = vld [vmem:[%s10440_s9 + $0x8] sm:$0xff]  }
 0x73b   :  { %v781_v6 = vadd.f32 %v780_v4, %v737_v3  ;;  %v7277_v7 = vpop.f32.mrb[23].mxu0 }
 0x73d   :  { %v784_v12 = vpack.c.bf16 %v781_v6, %v778_v5 }
 0x73f   :  { %7279 = vmatpush3.bf16.msra.mxu1 %v784_v12 }
 0x740   :  { %v890_v14 = vpop.f32.mrb[24].mxu0  ;;  %7292 = vmatprep.subr.bf16.mxu1 %v8421_v0 }
 0x741   :  { %v7290_v17 = vpop.f32.mrb[25].mxu0 }
 0x742   :  { %7281 = vmatmul.mubr.msk.bf16.vlgmr.msra.gmra.mrb[20].mxu1 %vm437_vm4, %v8599_v22  ;;  %v893_v34 = vpop.f32.mrb[26].mxu0 }
 0x743   :  { %v7291_v35 = vpop.f32.mrb[27].mxu0  ;;  %7293 = vmatpush3.bf16.msra.mxu1 %v8754_v13  ;;  %7296 = vmatprep.mubr.msk.bf16.mxu1 %vm8423_vm3, %v8421_v0 }
 0x744   :  { %7294 = vmatprep.subr.bf16.mxu1 %v8421_v0 }
 0x747   :  { %7295 = vmatpush3.bf16.msra.mxu1 %v8763_v36 }
 0x748   :  { %7306 = vmatprep.subr.bf16.mxu1 %v8421_v0 }
 0x74a   :  { %7297 = vmatmul.mubr.bf16.vlgmr.msra.gmra.mrb[24].mxu1 %v8424_v10 }
 0x74b   :  { %7310 = vmatprep.mubr.msk.bf16.mxu1 %vm8423_vm3, %v8421_v0  ;;  %7307 = vmatpush3.bf16.msra.mxu1 %v8787_v50 }
 0x74c   :  { %7308 = vmatprep.subr.bf16.mxu1 %v8421_v0 }
 0x74f   :  { %7309 = vmatpush3.bf16.msra.mxu1 %v8801_v2 }
 0x750   :  { %7320 = vmatprep.subr.bf16.mxu1 %v8421_v0 }
 0x815   :  { %v819_v37 = vpop.f32.mrb[20].mxu1 }
 0x816   :  { %v820_v38 = vadd.f32 %v8638_v52, %v819_v37  ;;  %v7282_v39 = vpop.f32.mrb[21].mxu1 }
 0x817   :  { %v822_v40 = vpop.f32.mrb[22].mxu1 }
 0x818   :  { %8104 = vtanh.f32 %v820_v38  ;;  %v823_v41 = vadd.f32 %v8638_v52, %v822_v40  ;;  %v7283_v42 = vpop.f32.mrb[23].mxu1 }
 0x81a   :  { %8106 = vtanh.f32 %v823_v41 }
 0x81d   :  { %v943_v43 = vpop.f32.mrb[24].mxu1 }
 0x81e   :  { %v944_v44 = vadd.f32 %v943_v43, %v890_v14  ;;  %v7298_v11 = vpop.f32.mrb[25].mxu1 }
 0x81f   :  { %v946_v45 = vpop.f32.mrb[26].mxu1 }
 0x820   :  { %v947_v46 = vadd.f32 %v946_v45, %v893_v34  ;;  %v7299_v15 = vpop.f32.mrb[27].mxu1 }
 0x822   :  { %v8105_v10 = vpop.eup %8104  ;;  %v950_v47 = vpack.c.bf16 %v947_v46, %v944_v44 }
 0x823   :  { %834 = vrot.lane.b32.xlu1 %v8105_v10, %s10484_s2 }
 0x824   :  { %v8107_v48 = vpop.eup %8106  ;;  %7301 = vmatpush3.bf16.msra.mxu0 %v950_v47 }
 0x825   :  { %836 = vrot.lane.b32.xlu0 %v8107_v48, %s10484_s2  ;;  %7314 = vmatprep.subr.bf16.mxu0 %v8421_v0 }
 0x827   :  { %7303 = vmatmul.mubr.msk.bf16.vlgmr.msra.gmra.mrb[28].mxu0 %vm437_vm4, %v8599_v22 }
 0x828   :  { %7316 = vmatprep.mubr.msk.bf16.mxu0 %vm8423_vm3, %v8421_v0 }
 0x829   :  { %1021 = vrot.lane.b32.xlu0 %v890_v14, %s8425_s4 }
 0x895   :  { %v835_v51 = vpop.permute.xlu1 %834 }
 0x896   :  { %v840_v56 = vmul.f32 %v835_v51, %v830_v49 }
 0x897   :  { %v837_v58 = vpop.permute.xlu0 %836 }
 0x898   :  { %v8794_v60 = vadd.f32 %v840_v56, %v828_v55  ;;  %v841_v63 = vmul.f32 %v837_v58, %v831_v57 }
 0x89a   :  { %v8803_v9 = vadd.f32 %v841_v63, %v829_v62  ;;  %1233 = vrot.lane.b32.xlu0 %v8794_v60, %s8427_s28  ;;  %v8866_v63 = vld [vmem:[%s10442_s11] ss:$0 sm:$0xff] }
 0x89b   :  { %v1022_v44 = vpop.permute.xlu0 %1021 }
 0x89c   :  { %v1129_v53 = vpack.c.bf16 %v8803_v9, %v8794_v60 }
 0x89e   :  { %1131 = vrot.lane.b32.xlu1 %v1129_v53, %s8427_s28 }
 0x8a2   :  { %1023 = vrot.lane.b32.xlu1 %v893_v34, %s8425_s4 }
 0x8a6   :  { %1235 = vrot.lane.b32.xlu1 %v8803_v9, %s8427_s28 }
 0x8fa   :  { %v985_v54 = vpop.f32.mrb[28].mxu0 }
 0x8fb   :  { %v986_v3 = vadd.f32 %v8818_v16, %v985_v54  ;;  %v7304_v4 = vpop.f32.mrb[29].mxu0 }
 0x8fc   :  { %v988_v5 = vpop.f32.mrb[30].mxu0 }
 0x8fd   :  { %v6745_v6 = vmul.f32 -1.442695, %v986_v3  ;;  %v989_v7 = vadd.f32 %v8818_v16, %v988_v5  ;;  %v7305_v12 = vpop.f32.mrb[31].mxu0 }
 0x8ff   :  { %8108 = vpow2.f32 %v6745_v6  ;;  %v6746_v14 = vmul.f32 -1.442695, %v989_v7 }
 0x901   :  { %8110 = vpow2.f32 %v6746_v14 }
 0x909   :  { %v8109_v17 = vpop.eup %8108 }
 0x90a   :  { %v998_v34 = vadd.f32 1.0, %v8109_v17 }
 0x90b   :  { %v8111_v35 = vpop.eup %8110 }
 0x90c   :  { %8112 = vrcp.f32 %v998_v34  ;;  %v999_v37 = vadd.f32 1.0, %v8111_v35 }
 0x90e   :  { %8114 = vrcp.f32 %v999_v37 }
 0x910   :  { %v8841_v43 = vpop.permute.xlu1 %1131 }
 0x914   :  { %v1024_v45 = vpop.permute.xlu1 %1023 }
 0x916   :  { %v8822_v38 = vpop.eup %8112 }
 0x917   :  { %v8827_v40 = vmul.f32 0.0, %v8822_v38 }
 0x918   :  { %v8824_v39 = vpop.eup %8114 }
 0x919   :  { %v8830_v41 = vmul.f32 0.0, %v8824_v39 }
 0x91b   :  { %v1006_v42 = vpack.c.bf16 %v8830_v41, %v8827_v40 }
 0x91d   :  { %7311 = vmatmul.mubr.msk.bf16.vlgmr.msra.gmra.mrb[28].mxu1 %vm386_vm5, %v1006_v42 }
 0x91e   :  { %7321 = vmatpush3.bf16.msra.mxu1 %v8557_v1  ;;  %7324 = vmatprep.mubr.msk.bf16.mxu1 %vm8423_vm3, %v8421_v0 }
 0x91f   :  { %7322 = vmatprep.subr.bf16.mxu1 %v8421_v0 }
 0x922   :  { %7323 = vmatpush3.bf16.msra.mxu1 %v8570_v8 }
 0x923   :  { %7334 = vmatprep.subr.bf16.mxu1 %v8421_v0 }
 0x925   :  { %7325 = vmatmul.mubr.msk.bf16.vlgmr.msra.gmra.mrb[32].mxu1 %vm386_vm5, %v8841_v43 }
 0x926   :  { %7335 = vmatpush3.bf16.msra.mxu1 %v8609_v23  ;;  %7338 = vmatprep.mubr.msk.bf16.mxu1 %vm8423_vm3, %v8421_v0 }
 0x927   :  { %7336 = vmatprep.subr.bf16.mxu1 %v8421_v0 }
 0x92a   :  { %7337 = vmatpush3.bf16.msra.mxu1 %v8615_v24 }
 0x92b   :  { %7348 = vmatprep.subr.bf16.mxu1 %v8421_v0 }
 0x9f0   :  { %v1064_v1 = vpop.f32.mrb[28].mxu1 }
 0x9f1   :  { %v7312_v11 = vpop.f32.mrb[29].mxu1  ;;  %v1065_v15 = vadd.f32 %v1064_v1, %v1022_v44 }
 0x9f2   :  { %v1067_v46 = vpop.f32.mrb[30].mxu1 }
 0x9f3   :  { %v1068_v10 = vadd.f32 %v1067_v46, %v1024_v45  ;;  %v7313_v47 = vpop.f32.mrb[31].mxu1 }
 0x9f5   :  { %v1071_v48 = vpack.c.bf16 %v1068_v10, %v1065_v15 }
 0x9f7   :  { %7315 = vmatpush3.bf16.msra.mxu0 %v1071_v48  ;;  %v1234_v48 = vpop.permute.xlu0 %1233 }
 0x9f8   :  { %v1170_v49 = vpop.f32.mrb[32].mxu1  ;;  %7328 = vmatprep.subr.bf16.mxu0 %v8421_v0 }
 0x9f9   :  { %v1171_v51 = vadd.f32 %v1170_v49, %v8687_v19  ;;  %v7326_v55 = vpop.f32.mrb[33].mxu1  ;;  %v1236_v49 = vpop.permute.xlu1 %1235 }
 0x9fa   :  { %7317 = vmatmul.mubr.msk.bf16.vlgmr.msra.gmra.mrb[32].mxu0 %vm437_vm4, %v8599_v22  ;;  %v1173_v56 = vpop.f32.mrb[34].mxu1 }
 0x9fb   :  { %v1174_v57 = vadd.f32 %v1173_v56, %v8691_v21  ;;  %v7327_v58 = vpop.f32.mrb[35].mxu1  ;;  %7330 = vmatprep.mubr.msk.bf16.mxu0 %vm8423_vm3, %v8421_v0 }
 0x9fc   :  { %v1116_v58 = vsub.f32 1.0, %v8824_v39 }
 0x9fd   :  { %v1177_v62 = vpack.c.bf16 %v1174_v57, %v1171_v51 }
 0x9ff   :  { %7329 = vmatpush3.bf16.msra.mxu0 %v1177_v62 }
 0xa00   :  { %7342 = vmatprep.subr.bf16.mxu0 %v8421_v0 }
 0xa02   :  { %7331 = vmatmul.mubr.msk.bf16.vlgmr.msra.gmra.mrb[36].mxu0 %vm437_vm4, %v8599_v22 }
 0xa03   :  { %7344 = vmatprep.mubr.msk.bf16.mxu0 %vm8423_vm3, %v8421_v0 }
 0xacd   :  { %v1106_v53 = vpop.f32.mrb[32].mxu0 }
 0xace   :  { %v1107_v54 = vadd.f32 %v8866_v63, %v1106_v53  ;;  %v7318_v3 = vpop.f32.mrb[33].mxu0 }
 0xacf   :  { %v1109_v4 = vpop.f32.mrb[34].mxu0 }
 0xad0   :  { %8116 = vtanh.f32 %v1107_v54  ;;  %v1110_v5 = vadd.f32 %v8866_v63, %v1109_v4  ;;  %v7319_v6 = vpop.f32.mrb[35].mxu0 }
 0xad2   :  { %8118 = vtanh.f32 %v1110_v5 }
 0xad5   :  { %v1212_v7 = vpop.f32.mrb[36].mxu0 }
 0xad6   :  { %v1213_v12 = vadd.f32 %v8623_v25, %v1212_v7  ;;  %v7332_v14 = vpop.f32.mrb[37].mxu0 }
 0xad7   :  { %v1215_v17 = vpop.f32.mrb[38].mxu0 }
 0xad8   :  { %v6753_v34 = vmul.f32 -1.442695, %v1213_v12  ;;  %v1216_v35 = vadd.f32 %v8623_v25, %v1215_v17  ;;  %v7333_v37 = vpop.f32.mrb[39].mxu0 }
 0xada   :  { %v8117_v42 = vpop.eup %8116  ;;  %8120 = vpow2.f32 %v6753_v34  ;;  %v6754_v1 = vmul.f32 -1.442695, %v1216_v35 }
 0xadb   :  { %1119 = vrot.lane.b32.xlu0 %v8117_v42, %s10484_s2 }
 0xadc   :  { %v8119_v44 = vpop.eup %8118  ;;  %8122 = vpow2.f32 %v6754_v1 }
 0xadd   :  { %1121 = vrot.lane.b32.xlu1 %v8119_v44, %s10484_s2 }
 0xadf   :  { %1244 = vrot.lane.b32.xlu0 %v8687_v19, %s8425_s4 }
 0xae1   :  { %1246 = vrot.lane.b32.xlu1 %v8691_v21, %s8425_s4  ;;  %v1115_v21 = vsub.f32 1.0, %v8822_v38 }
 0xae4   :  { %v8121_v11 = vpop.eup %8120 }
 0xae5   :  { %v1225_v45 = vadd.f32 1.0, %v8121_v11 }
 0xae6   :  { %v8123_v46 = vpop.eup %8122 }
 0xae7   :  { %8124 = vrcp.f32 %v1225_v45  ;;  %v1226_v15 = vadd.f32 1.0, %v8123_v46 }
 0xae9   :  { %8126 = vrcp.f32 %v1226_v15 }
 0xaf1   :  { %v8878_v10 = vpop.eup %8124 }
 0xaf2   :  { %v1239_v51 = vmul.f32 %v8878_v10, %v1234_v48 }
 0xaf3   :  { %v8880_v47 = vpop.eup %8126 }
 0xaf4   :  { %v1240_v55 = vmul.f32 %v8880_v47, %v1236_v49 }
 0xaf6   :  { %v1241_v19 = vpack.c.bf16 %v1240_v55, %v1239_v51 }
 0xaf8   :  { %7339 = vmatmul.mubr.msk.bf16.vlgmr.msra.gmra.mrb[36].mxu1 %vm386_vm5, %v1241_v19 }
 0xaf9   :  { %7349 = vmatpush3.bf16.msra.mxu1 %v8734_v59  ;;  %7352 = vmatprep.mubr.msk.bf16.mxu1 %vm8423_vm3, %v8421_v0 }
 0xafa   :  { %7350 = vmatprep.subr.bf16.mxu1 %v8421_v0 }
 0xafd   :  { %7351 = vmatpush3.bf16.msra.mxu1 %v8741_v61 }
 0xafe   :  { %7364 = vmatprep.subr.bf16.mxu1 %v8421_v0 }
 0xb00   :  { %7353 = vmatmul.mubr.msk.bf16.vlgmr.msra.gmra.mrb[40].mxu1 %vm386_vm5, %v8841_v43 }
 0xb01   :  { %7366 = vmatprep.mubr.msk.bf16.mxu1 %vm8423_vm3, %v8421_v0 }
 0xb4d   :  { %v1120_v56 = vpop.permute.xlu0 %1119 }
 0xb4e   :  { %v1125_v57 = vmul.f32 %v1120_v56, %v1115_v21 }
 0xb4f   :  { %v1122_v62 = vpop.permute.xlu1 %1121 }
 0xb50   :  { %v1126_v53 = vmul.f32 %v1122_v62, %v1116_v58  ;;  %v8898_v54 = vadd.f32 %v1125_v57, %v8827_v40  ;;  %v1338_v62 = vmul.f32 %v8878_v10, %v8794_v60 }
 0xb51   :  { %v1245_v5 = vpop.permute.xlu0 %1244 }
 0xb52   :  { %v8901_v3 = vadd.f32 %v1126_v53, %v8830_v41 }
 0xb53   :  { %v1247_v6 = vpop.permute.xlu1 %1246 }
 0xb54   :  { %v1395_v43 = vpack.c.bf16 %v8901_v3, %v8898_v54 }
 0xb56   :  { %1397 = vrot.lane.b32.xlu0 %v1395_v43, %s8427_s28  ;;  %v1341_v43 = vsub.f32 1.0, %v8880_v47 }
 0xbc8   :  { %v1398_v37 = vpop.permute.xlu0 %1397 }
 0xbcb   :  { %v1287_v4 = vpop.f32.mrb[36].mxu1 }
 0xbcc   :  { %v7340_v38 = vpop.f32.mrb[37].mxu1  ;;  %v1288_v12 = vadd.f32 %v1287_v4, %v1245_v5 }
 0xbcd   :  { %v1290_v7 = vpop.f32.mrb[38].mxu1  ;;  %v1339_v38 = vmul.f32 %v8880_v47, %v8803_v9 }
 0xbce   :  { %v1291_v39 = vadd.f32 %v1290_v7, %v1247_v6  ;;  %v7341_v14 = vpop.f32.mrb[39].mxu1 }
 0xbd0   :  { %v1294_v17 = vpack.c.bf16 %v1291_v39, %v1288_v12 }
 0xbd2   :  { %7343 = vmatpush3.bf16.msra.mxu0 %v1294_v17 }
 0xbd3   :  { %v1388_v40 = vpop.f32.mrb[40].mxu1  ;;  %7356 = vmatprep.subr.bf16.mxu0 %v8421_v0 }
 0xbd4   :  { %v7354_v41 = vpop.f32.mrb[41].mxu1 }
 0xbd5   :  { %7345 = vmatmul.mubr.msk.bf16.vlgmr.msra.gmra.mrb[40].mxu0 %vm437_vm4, %v8599_v22  ;;  %v1391_v34 = vpop.f32.mrb[42].mxu1 }
 0xbd6   :  { %v7355_v35 = vpop.f32.mrb[43].mxu1  ;;  %7357 = vmatpush3.bf16.msra.mxu0 %v8754_v13  ;;  %7360 = vmatprep.mubr.msk.bf16.mxu0 %vm8423_vm3, %v8421_v0 }
 0xbd7   :  { %7358 = vmatprep.subr.bf16.mxu0 %v8421_v0 }
 0xbda   :  { %7359 = vmatpush3.bf16.msra.mxu0 %v8763_v36 }
 0xbdb   :  { %7370 = vmatprep.subr.bf16.mxu0 %v8421_v0 }
 0xbdd   :  { %7361 = vmatmul.mubr.msk.bf16.vlgmr.msra.gmra.mrb[44].mxu0 %vm386_vm5, %v1398_v37 }
 0xbde   :  { %7371 = vmatpush3.bf16.msra.mxu0 %v8787_v50  ;;  %7374 = vmatprep.mubr.msk.bf16.mxu0 %vm8423_vm3, %v8421_v0 }
 0xbdf   :  { %7372 = vmatprep.subr.bf16.mxu0 %v8421_v0 }
 0xbe2   :  { %7373 = vmatpush3.bf16.msra.mxu0 %v8801_v2 }
 0xbe3   :  { %7384 = vmatprep.subr.bf16.mxu0 %v8421_v0 }
 0xca8   :  { %v1329_v42 = vpop.f32.mrb[40].mxu0 }
 0xca9   :  { %v1330_v1 = vadd.f32 %v8638_v52, %v1329_v42  ;;  %v7346_v44 = vpop.f32.mrb[41].mxu0 }
 0xcaa   :  { %v1332_v11 = vpop.f32.mrb[42].mxu0 }
 0xcab   :  { %8128 = vtanh.f32 %v1330_v1  ;;  %v1333_v45 = vadd.f32 %v8638_v52, %v1332_v11  ;;  %v7347_v46 = vpop.f32.mrb[43].mxu0  ;;  %v1340_v52 = vsub.f32 1.0, %v8878_v10 }
 0xcad   :  { %8130 = vtanh.f32 %v1333_v45 }
 0xcb0   :  { %v1436_v15 = vpop.f32.mrb[44].mxu0 }
 0xcb1   :  { %v1437_v48 = vadd.f32 %v1436_v15, %v1388_v40  ;;  %v7362_v49 = vpop.f32.mrb[45].mxu0 }
 0xcb2   :  { %v1439_v51 = vpop.f32.mrb[46].mxu0 }
 0xcb3   :  { %v1440_v55 = vadd.f32 %v1439_v51, %v1391_v34  ;;  %v7363_v19 = vpop.f32.mrb[47].mxu0 }
 0xcb5   :  { %v8129_v21 = vpop.eup %8128  ;;  %v1443_v56 = vpack.c.bf16 %v1440_v55, %v1437_v48  ;;  %v8966_v48 = vld [vmem:[%s10475_s27] sm:$0xff]  }
 0xcb6   :  { %1344 = vrot.lane.b32.xlu1 %v8129_v21, %s10484_s2 }
 0xcb7   :  { %v8131_v57 = vpop.eup %8130  ;;  %7365 = vmatpush3.bf16.msra.mxu1 %v1443_v56 }
 0xcb8   :  { %1346 = vrot.lane.b32.xlu0 %v8131_v57, %s10484_s2  ;;  %7378 = vmatprep.subr.bf16.mxu1 %v8421_v0 }
 0xcba   :  { %1499 = vrot.lane.b32.xlu1 %v8898_v54, %s8427_s28  ;;  %7367 = vmatmul.mubr.msk.bf16.vlgmr.msra.gmra.mrb[44].mxu1 %vm437_vm4, %v8599_v22 }
 0xcbb   :  { %7380 = vmatprep.mubr.msk.bf16.mxu1 %vm8423_vm3, %v8421_v0 }
 0xcbc   :  { %1501 = vrot.lane.b32.xlu0 %v8901_v3, %s8427_s28 }
 0xcc0   :  { %1510 = vrot.lane.b32.xlu0 %v1388_v40, %s8425_s4 }
 0xd28   :  { %v1345_v58 = vpop.permute.xlu1 %1344 }
 0xd29   :  { %v1350_v53 = vmul.f32 %v1345_v58, %v1340_v52 }
 0xd2a   :  { %v1347_v4 = vpop.permute.xlu0 %1346 }
 0xd2b   :  { %v8940_v5 = vadd.f32 %v1350_v53, %v1338_v62  ;;  %v1351_v6 = vmul.f32 %v1347_v4, %v1341_v43 }
 0xd2c   :  { %v1500_v44 = vpop.permute.xlu1 %1499 }
 0xd2d   :  { %v8944_v7 = vadd.f32 %v1351_v6, %v1339_v38  ;;  %1724 = vrot.lane.b32.xlu0 %v8940_v5, %s8427_s28 }
 0xd2e   :  { %v1502_v11 = vpop.permute.xlu0 %1501 }
 0xd2f   :  { %v1620_v12 = vpack.c.bf16 %v8944_v7, %v8940_v5 }
 0xd31   :  { %1622 = vrot.lane.b32.xlu1 %v1620_v12, %s8427_s28 }
 0xd35   :  { %1512 = vrot.lane.b32.xlu1 %v1391_v34, %s8425_s4 }
 0xd39   :  { %1726 = vrot.lane.b32.xlu1 %v8944_v7, %s8427_s28 }
 0xd8d   :  { %v1478_v60 = vpop.f32.mrb[44].mxu1 }
 0xd8e   :  { %v1479_v10 = vadd.f32 %v8818_v16, %v1478_v60  ;;  %v7368_v9 = vpop.f32.mrb[45].mxu1 }
 0xd8f   :  { %v1481_v47 = vpop.f32.mrb[46].mxu1 }
 0xd90   :  { %v6760_v39 = vmul.f32 -1.442695, %v1479_v10  ;;  %v1482_v14 = vadd.f32 %v8818_v16, %v1481_v47  ;;  %v7369_v17 = vpop.f32.mrb[47].mxu1 }
 0xd92   :  { %8132 = vpow2.f32 %v6760_v39  ;;  %v6761_v40 = vmul.f32 -1.442695, %v1482_v14 }
 0xd94   :  { %8134 = vpow2.f32 %v6761_v40 }
 0xd9c   :  { %v8133_v41 = vpop.eup %8132 }
 0xd9d   :  { %v1491_v35 = vadd.f32 1.0, %v8133_v41 }
 0xd9e   :  { %v8135_v37 = vpop.eup %8134 }
 0xd9f   :  { %8136 = vrcp.f32 %v1491_v35  ;;  %v1492_v34 = vadd.f32 1.0, %v8135_v37 }
 0xda1   :  { %8138 = vrcp.f32 %v1492_v34 }
 0xda3   :  { %v8974_v49 = vpop.permute.xlu1 %1622 }
 0xda7   :  { %v1513_v19 = vpop.permute.xlu1 %1512 }
 0xda9   :  { %v8956_v42 = vpop.eup %8136 }
 0xdaa   :  { %v1505_v45 = vmul.f32 %v8956_v42, %v1500_v44 }
 0xdab   :  { %v8958_v1 = vpop.eup %8138 }
 0xdac   :  { %v1506_v46 = vmul.f32 %v8958_v1, %v1502_v11 }
 0xdae   :  { %v1507_v15 = vpack.c.bf16 %v1506_v46, %v1505_v45 }
 0xdb0   :  { %7375 = vmatmul.mubr.msk.bf16.vlgmr.msra.gmra.mrb[48].mxu0 %vm386_vm5, %v1507_v15 }
 0xdb1   :  { %7385 = vmatpush3.bf16.msra.mxu0 %v8966_v48  ;;  %7388 = vmatprep.mubr.msk.bf16.mxu0 %vm8423_vm3, %v8421_v0 }
 0xdb2   :  { %7386 = vmatprep.subr.bf16.mxu0 %v8421_v0 }
 0xdb5   :  { %7387 = vmatpush3.bf16.msra.mxu0 %v8570_v8  ;;  %v1511_v8 = vpop.permute.xlu0 %1510 }
 0xdb6   :  { %7398 = vmatprep.subr.bf16.mxu0 %v8421_v0 }
 0xdb8   :  { %7389 = vmatmul.mubr.msk.bf16.vlgmr.msra.gmra.mrb[52].mxu0 %vm386_vm5, %v8974_v49 }
 0xdb9   :  { %7399 = vmatpush3.bf16.msra.mxu0 %v8609_v23  ;;  %7402 = vmatprep.mubr.msk.bf16.mxu0 %vm8423_vm3, %v8421_v0 }
 0xdba   :  { %7400 = vmatprep.subr.bf16.mxu0 %v8421_v0 }
 0xdbd   :  { %7401 = vmatpush3.bf16.msra.mxu0 %v8615_v24 }
 0xdbe   :  { %7412 = vmatprep.subr.bf16.mxu0 %v8421_v0 }
 0xe83   :  { %v1553_v51 = vpop.f32.mrb[48].mxu0 }
 0xe84   :  { %v7376_v55 = vpop.f32.mrb[49].mxu0  ;;  %v1554_v56 = vadd.f32 %v1553_v51, %v1511_v8  ;;  %v1725_v8 = vpop.permute.xlu0 %1724 }
 0xe85   :  { %v1556_v21 = vpop.f32.mrb[50].mxu0  ;;  %v1727_v55 = vpop.permute.xlu1 %1726 }
 0xe86   :  { %v1557_v57 = vadd.f32 %v1556_v21, %v1513_v19  ;;  %v7377_v52 = vpop.f32.mrb[51].mxu0 }
 0xe88   :  { %v1560_v58 = vpack.c.bf16 %v1557_v57, %v1554_v56 }
 0xe8a   :  { %7379 = vmatpush3.bf16.msra.mxu1 %v1560_v58  ;;  %v1604_v58 = vmul.f32 %v8956_v42, %v8898_v54 }
 0xe8b   :  { %v1661_v23 = vpop.f32.mrb[52].mxu0  ;;  %7392 = vmatprep.subr.bf16.mxu1 %v8421_v0 }
 0xe8c   :  { %v1662_v62 = vadd.f32 %v8685_v18, %v1661_v23  ;;  %v7390_v53 = vpop.f32.mrb[53].mxu0 }
 0xe8d   :  { %7381 = vmatmul.mubr.msk.bf16.vlgmr.msra.gmra.mrb[48].mxu1 %vm437_vm4, %v8599_v22  ;;  %v1664_v24 = vpop.f32.mrb[54].mxu0 }
 0xe8e   :  { %v1665_v43 = vadd.f32 %v8689_v20, %v1664_v24  ;;  %v7391_v4 = vpop.f32.mrb[55].mxu0  ;;  %7394 = vmatprep.mubr.msk.bf16.mxu1 %vm8423_vm3, %v8421_v0 }
 0xe90   :  { %v1668_v38 = vpack.c.bf16 %v1665_v43, %v1662_v62 }
 0xe92   :  { %7393 = vmatpush3.bf16.msra.mxu1 %v1668_v38 }
 0xe93   :  { %7406 = vmatprep.subr.bf16.mxu1 %v8421_v0 }
 0xe95   :  { %7395 = vmatmul.mubr.msk.bf16.vlgmr.msra.gmra.mrb[52].mxu1 %vm437_vm4, %v8599_v22 }
 0xe96   :  { %7408 = vmatprep.mubr.msk.bf16.mxu1 %vm8423_vm3, %v8421_v0 }
 0xf60   :  { %v1595_v6 = vpop.f32.mrb[48].mxu1 }
 0xf61   :  { %v1596_v12 = vadd.f32 %v8866_v63, %v1595_v6  ;;  %v7382_v60 = vpop.f32.mrb[49].mxu1 }
 0xf62   :  { %v1598_v10 = vpop.f32.mrb[50].mxu1 }
 0xf63   :  { %8140 = vtanh.f32 %v1596_v12  ;;  %v1599_v9 = vadd.f32 %v8866_v63, %v1598_v10  ;;  %v7383_v47 = vpop.f32.mrb[51].mxu1  ;;  %v9040_v10 = vld [vmem:[%s10478_s26] sm:$0xff]  }
 0xf65   :  { %8142 = vtanh.f32 %v1599_v9 }
 0xf68   :  { %v1703_v39 = vpop.f32.mrb[52].mxu1 }
 0xf69   :  { %v1704_v14 = vadd.f32 %v8623_v25, %v1703_v39  ;;  %v7396_v17 = vpop.f32.mrb[53].mxu1 }
 0xf6a   :  { %v1706_v40 = vpop.f32.mrb[54].mxu1 }
 0xf6b   :  { %v6766_v41 = vmul.f32 -1.442695, %v1704_v14  ;;  %v1707_v22 = vadd.f32 %v8623_v25, %v1706_v40  ;;  %v7397_v35 = vpop.f32.mrb[55].mxu1 }
 0xf6d   :  { %v8141_v37 = vpop.eup %8140  ;;  %8144 = vpow2.f32 %v6766_v41  ;;  %v6767_v34 = vmul.f32 -1.442695, %v1707_v22 }
 0xf6e   :  { %1610 = vrot.lane.b32.xlu0 %v8141_v37, %s10484_s2 }
 0xf6f   :  { %v8143_v44 = vpop.eup %8142  ;;  %8146 = vpow2.f32 %v6767_v34 }
 0xf70   :  { %1612 = vrot.lane.b32.xlu1 %v8143_v44, %s10484_s2 }
 0xf72   :  { %1735 = vrot.lane.b32.xlu0 %v8685_v18, %s8425_s4 }
 0xf74   :  { %1737 = vrot.lane.b32.xlu1 %v8689_v20, %s8425_s4  ;;  %v1606_v20 = vsub.f32 1.0, %v8956_v42 }
 0xf77   :  { %v8145_v11 = vpop.eup %8144 }
 0xf78   :  { %v1716_v45 = vadd.f32 1.0, %v8145_v11 }
 0xf79   :  { %v8147_v46 = vpop.eup %8146 }
 0xf7a   :  { %8148 = vrcp.f32 %v1716_v45  ;;  %v1717_v25 = vadd.f32 1.0, %v8147_v46 }
 0xf7c   :  { %8150 = vrcp.f32 %v1717_v25 }
 0xf84   :  { %v9006_v15 = vpop.eup %8148 }
 0xf85   :  { %v1730_v19 = vmul.f32 %v9006_v15, %v1725_v8  ;;  %v1831_v25 = vsub.f32 1.0, %v9006_v15 }
 0xf86   :  { %v9008_v51 = vpop.eup %8150 }
 0xf87   :  { %v1731_v21 = vmul.f32 %v9008_v51, %v1727_v55  ;;  %v1829_v55 = vmul.f32 %v9006_v15, %v8940_v5 }
 0xf89   :  { %v1732_v18 = vpack.c.bf16 %v1731_v21, %v1730_v19  ;;  %v1832_v21 = vsub.f32 1.0, %v9008_v51 }
 0xf8b   :  { %7403 = vmatmul.mubr.msk.bf16.vlgmr.msra.gmra.mrb[56].mxu0 %vm386_vm5, %v1732_v18 }
 0xf8c   :  { %7413 = vmatpush3.bf16.msra.mxu0 %v8734_v59  ;;  %7416 = vmatprep.mubr.msk.bf16.mxu0 %vm8423_vm3, %v8421_v0  ;;  %v1607_v59 = vsub.f32 1.0, %v8958_v1 }
 0xf8d   :  { %7414 = vmatprep.subr.bf16.mxu0 %v8421_v0 }
 0xf90   :  { %7415 = vmatpush3.bf16.msra.mxu0 %v8741_v61  ;;  %v1605_v61 = vmul.f32 %v8958_v1, %v8901_v3 }
 0xf91   :  { %7428 = vmatprep.subr.bf16.mxu0 %v8421_v0 }
 0xf93   :  { %7417 = vmatmul.mubr.msk.bf16.vlgmr.msra.gmra.mrb[60].mxu0 %vm386_vm5, %v8974_v49 }
 0xf94   :  { %7430 = vmatprep.mubr.msk.bf16.mxu0 %vm8423_vm3, %v8421_v0 }
 0xfe0   :  { %v1611_v56 = vpop.permute.xlu0 %1610 }
 0xfe1   :  { %v1616_v57 = vmul.f32 %v1611_v56, %v1606_v20  ;;  %v1830_v56 = vmul.f32 %v9008_v51, %v8944_v7 }
 0xfe2   :  { %v1613_v52 = vpop.permute.xlu1 %1612 }
 0xfe3   :  { %v1617_v23 = vmul.f32 %v1613_v52, %v1607_v59  ;;  %v9029_v62 = vadd.f32 %v1616_v57, %v1604_v58 }
 0xfe4   :  { %v1736_v43 = vpop.permute.xlu0 %1735 }
 0xfe5   :  { %v9031_v49 = vadd.f32 %v1617_v23, %v1605_v61 }
 0xfe6   :  { %v1738_v38 = vpop.permute.xlu1 %1737 }
 0xfe7   :  { %v1886_v53 = vpack.c.bf16 %v9031_v49, %v9029_v62 }
 0xfe9   :  { %1888 = vrot.lane.b32.xlu0 %v1886_v53, %s8427_s28 }
0x105b   :  { %v1889_v39 = vpop.permute.xlu0 %1888 }
0x105e   :  { %v1778_v24 = vpop.f32.mrb[56].mxu0 }
0x105f   :  { %v7404_v4 = vpop.f32.mrb[57].mxu0  ;;  %v1779_v12 = vadd.f32 %v1778_v24, %v1736_v43 }
0x1060   :  { %v1781_v6 = vpop.f32.mrb[58].mxu0 }
0x1061   :  { %v1782_v54 = vadd.f32 %v1781_v6, %v1738_v38  ;;  %v7405_v42 = vpop.f32.mrb[59].mxu0 }
0x1063   :  { %v1785_v60 = vpack.c.bf16 %v1782_v54, %v1779_v12 }
0x1065   :  { %7407 = vmatpush3.bf16.msra.mxu1 %v1785_v60 }
0x1066   :  { %v1879_v3 = vpop.f32.mrb[60].mxu0  ;;  %7420 = vmatprep.subr.bf16.mxu1 %v8421_v0 }
0x1067   :  { %v7418_v1 = vpop.f32.mrb[61].mxu0 }
0x1068   :  { %7409 = vmatmul.mubr.msk.bf16.vlgmr.msra.gmra.mrb[56].mxu1 %vm437_vm4, %v9040_v10  ;;  %v1882_v9 = vpop.f32.mrb[62].mxu0  ;;  %v9110_v1 = vld [vmem:[%s10475_s27 + $0x8] sm:$0xff]  }
0x1069   :  { %v7419_v47 = vpop.f32.mrb[63].mxu0  ;;  %7421 = vmatpush3.bf16.msra.mxu1 %v8754_v13  ;;  %7424 = vmatprep.mubr.msk.bf16.mxu1 %vm8423_vm3, %v8421_v0 }
0x106a   :  { %7422 = vmatprep.subr.bf16.mxu1 %v8421_v0  ;;  %v9121_v47 = vld [vmem:[%s10479_s1] sm:$0xff]  }
0x106d   :  { %7423 = vmatpush3.bf16.msra.mxu1 %v8763_v36  ;;  %v9060_v36 = vld [vmem:[%s10481_s5] ss:$0 sm:$0xff] }
0x106e   :  { %7434 = vmatprep.subr.bf16.mxu1 %v8421_v0 }
0x1070   :  { %7425 = vmatmul.mubr.msk.bf16.vlgmr.msra.gmra.mrb[60].mxu1 %vm386_vm5, %v1889_v39  ;;  %v9130_v39 = vld [vmem:[%s10479_s1 + $0x8] sm:$0xff]  }
0x1071   :  { %7435 = vmatpush3.bf16.msra.mxu1 %v8787_v50  ;;  %7438 = vmatprep.mubr.msk.bf16.mxu1 %vm8423_vm3, %v8421_v0 }
0x1072   :  { %7436 = vmatprep.subr.bf16.mxu1 %v8421_v0 }
0x1075   :  { %7437 = vmatpush3.bf16.msra.mxu1 %v8801_v2 }
0x1076   :  { %7448 = vmatprep.subr.bf16.mxu1 %v8421_v0 }
0x113b   :  { %v1820_v13 = vpop.f32.mrb[56].mxu1 }
0x113c   :  { %v1821_v14 = vadd.f32 %v9060_v36, %v1820_v13  ;;  %v7410_v17 = vpop.f32.mrb[57].mxu1 }
0x113d   :  { %v1823_v40 = vpop.f32.mrb[58].mxu1 }
0x113e   :  { %8152 = vtanh.f32 %v1821_v14  ;;  %v1824_v50 = vadd.f32 %v9060_v36, %v1823_v40  ;;  %v7411_v41 = vpop.f32.mrb[59].mxu1 }
0x1140   :  { %8154 = vtanh.f32 %v1824_v50 }
0x1143   :  { %v1927_v22 = vpop.f32.mrb[60].mxu1 }
0x1144   :  { %v1928_v35 = vadd.f32 %v1927_v22, %v1879_v3  ;;  %v7426_v2 = vpop.f32.mrb[61].mxu1 }
0x1145   :  { %v1930_v37 = vpop.f32.mrb[62].mxu1 }
0x1146   :  { %v1931_v34 = vadd.f32 %v1930_v37, %v1882_v9  ;;  %v7427_v44 = vpop.f32.mrb[63].mxu1 }
0x1148   :  { %v8153_v11 = vpop.eup %8152  ;;  %v1934_v45 = vpack.c.bf16 %v1931_v34, %v1928_v35 }
0x1149   :  { %1835 = vrot.lane.b32.xlu1 %v8153_v11, %s10484_s2 }
0x114a   :  { %v8155_v46 = vpop.eup %8154  ;;  %7429 = vmatpush3.bf16.msra.mxu0 %v1934_v45 }
0x114b   :  { %1837 = vrot.lane.b32.xlu0 %v8155_v46, %s10484_s2  ;;  %7442 = vmatprep.subr.bf16.mxu0 %v8421_v0 }
0x114d   :  { %1990 = vrot.lane.b32.xlu1 %v9029_v62, %s8427_s28  ;;  %7431 = vmatmul.mubr.msk.bf16.vlgmr.msra.gmra.mrb[64].mxu0 %vm437_vm4, %v9040_v10 }
0x114e   :  { %7444 = vmatprep.mubr.msk.bf16.mxu0 %vm8423_vm3, %v8421_v0 }
0x114f   :  { %1992 = vrot.lane.b32.xlu0 %v9031_v49, %s8427_s28 }
0x1153   :  { %2001 = vrot.lane.b32.xlu0 %v1879_v3, %s8425_s4 }
0x11bb   :  { %v1836_v8 = vpop.permute.xlu1 %1835 }
0x11bc   :  { %v1841_v19 = vmul.f32 %v1836_v8, %v1831_v25 }
0x11bd   :  { %v1838_v18 = vpop.permute.xlu0 %1837 }
0x11be   :  { %v9080_v20 = vadd.f32 %v1841_v19, %v1829_v55  ;;  %v1842_v57 = vmul.f32 %v1838_v18, %v1832_v21 }
0x11bf   :  { %v1991_v54 = vpop.permute.xlu1 %1990 }
0x11c0   :  { %v9084_v59 = vadd.f32 %v1842_v57, %v1830_v56  ;;  %2215 = vrot.lane.b32.xlu0 %v9080_v20, %s8427_s28 }
0x11c1   :  { %v1993_v42 = vpop.permute.xlu0 %1992 }
0x11c2   :  { %v2111_v52 = vpack.c.bf16 %v9084_v59, %v9080_v20 }
0x11c4   :  { %2113 = vrot.lane.b32.xlu1 %v2111_v52, %s8427_s28  ;;  %v9151_v52 = vld [vmem:[%s10480_s25] ss:$0 sm:$0xff] }
0x11c5   :  { %v2002_v14 = vpop.permute.xlu0 %2001 }
0x11c8   :  { %2003 = vrot.lane.b32.xlu1 %v1882_v9, %s8425_s4 }
0x11cc   :  { %2217 = vrot.lane.b32.xlu1 %v9084_v59, %s8427_s28 }
0x1220   :  { %v1969_v5 = vpop.f32.mrb[64].mxu0 }
0x1221   :  { %v1970_v15 = vadd.f32 %v8818_v16, %v1969_v5  ;;  %v7432_v7 = vpop.f32.mrb[65].mxu0 }
0x1222   :  { %v1972_v51 = vpop.f32.mrb[66].mxu0 }
0x1223   :  { %v6773_v58 = vmul.f32 -1.442695, %v1970_v15  ;;  %v1973_v61 = vadd.f32 %v8818_v16, %v1972_v51  ;;  %v7433_v23 = vpop.f32.mrb[67].mxu0 }
0x1225   :  { %8156 = vpow2.f32 %v6773_v58  ;;  %v6774_v53 = vmul.f32 -1.442695, %v1973_v61 }
0x1227   :  { %8158 = vpow2.f32 %v6774_v53 }
0x122f   :  { %v8157_v24 = vpop.eup %8156 }
0x1230   :  { %v1982_v43 = vadd.f32 1.0, %v8157_v24 }
0x1231   :  { %v8159_v4 = vpop.eup %8158 }
0x1232   :  { %8160 = vrcp.f32 %v1982_v43  ;;  %v1983_v38 = vadd.f32 1.0, %v8159_v4 }
0x1234   :  { %8162 = vrcp.f32 %v1983_v38 }
0x1236   :  { %v9114_v9 = vpop.permute.xlu1 %2113 }
0x123a   :  { %v2004_v40 = vpop.permute.xlu1 %2003 }
0x123c   :  { %v9096_v6 = vpop.eup %8160 }
0x123d   :  { %v1996_v60 = vmul.f32 %v9096_v6, %v1991_v54 }
0x123e   :  { %v9098_v12 = vpop.eup %8162 }
0x123f   :  { %v1997_v16 = vmul.f32 %v9098_v12, %v1993_v42 }
0x1241   :  { %v1998_v3 = vpack.c.bf16 %v1997_v16, %v1996_v60  ;;  %v2216_v60 = vpop.permute.xlu0 %2215  ;;  %v2218_v16 = vpop.permute.xlu1 %2217 }
0x1243   :  { %7439 = vmatmul.mubr.msk.bf16.vlgmr.msra.gmra.mrb[64].mxu1 %vm386_vm5, %v1998_v3 }
0x1244   :  { %7449 = vmatpush3.bf16.msra.mxu1 %v8966_v48  ;;  %7452 = vmatprep.mubr.msk.bf16.mxu1 %vm8423_vm3, %v8421_v0 }
0x1245   :  { %7450 = vmatprep.subr.bf16.mxu1 %v8421_v0 }
0x1248   :  { %7451 = vmatpush3.bf16.msra.mxu1 %v9110_v1 }
0x1249   :  { %7462 = vmatprep.subr.bf16.mxu1 %v8421_v0 }
0x124b   :  { %7453 = vmatmul.mubr.msk.bf16.vlgmr.msra.gmra.mrb[68].mxu1 %vm386_vm5, %v9114_v9 }
0x124c   :  { %7463 = vmatpush3.bf16.msra.mxu1 %v9121_v47  ;;  %7466 = vmatprep.mubr.msk.bf16.mxu1 %vm8423_vm3, %v8421_v0 }
0x124d   :  { %7464 = vmatprep.subr.bf16.mxu1 %v8421_v0 }
0x1250   :  { %7465 = vmatpush3.bf16.msra.mxu1 %v9130_v39 }
0x1251   :  { %7476 = vmatprep.subr.bf16.mxu1 %v8421_v0 }
0x1316   :  { %v2044_v13 = vpop.f32.mrb[64].mxu1 }
0x1317   :  { %v7440_v17 = vpop.f32.mrb[65].mxu1  ;;  %v2045_v41 = vadd.f32 %v2044_v13, %v2002_v14  ;;  %v9180_v14 = vld [vmem:[%s10482_s8 + $0x8] sm:$0xff]  }
0x1318   :  { %v2047_v50 = vpop.f32.mrb[66].mxu1  ;;  %v2097_v17 = vsub.f32 1.0, %v9096_v6 }
0x1319   :  { %v2048_v22 = vadd.f32 %v2047_v50, %v2004_v40  ;;  %v7441_v35 = vpop.f32.mrb[67].mxu1 }
0x131a   :  { %v2095_v35 = vmul.f32 %v9096_v6, %v9029_v62 }
0x131b   :  { %v2051_v2 = vpack.c.bf16 %v2048_v22, %v2045_v41  ;;  %v2098_v41 = vsub.f32 1.0, %v9098_v12 }
0x131d   :  { %7443 = vmatpush3.bf16.msra.mxu0 %v2051_v2  ;;  %v2096_v2 = vmul.f32 %v9098_v12, %v9031_v49 }
0x131e   :  { %v2152_v37 = vpop.f32.mrb[68].mxu1  ;;  %7456 = vmatprep.subr.bf16.mxu0 %v8421_v0 }
0x131f   :  { %v2153_v34 = vadd.f32 %v2152_v37, %v8695_v27  ;;  %v7454_v44 = vpop.f32.mrb[69].mxu1 }
0x1320   :  { %7445 = vmatmul.mubr.msk.bf16.vlgmr.msra.gmra.mrb[68].mxu0 %vm437_vm4, %v9040_v10  ;;  %v2155_v11 = vpop.f32.mrb[70].mxu1 }
0x1321   :  { %v2156_v45 = vadd.f32 %v2155_v11, %v8699_v29  ;;  %v7455_v46 = vpop.f32.mrb[71].mxu1  ;;  %7458 = vmatprep.mubr.msk.bf16.mxu0 %vm8423_vm3, %v8421_v0 }
0x1323   :  { %v2159_v25 = vpack.c.bf16 %v2156_v45, %v2153_v34 }
0x1325   :  { %7457 = vmatpush3.bf16.msra.mxu0 %v2159_v25 }
0x1326   :  { %7470 = vmatprep.subr.bf16.mxu0 %v8421_v0 }
0x1328   :  { %7459 = vmatmul.mubr.msk.bf16.vlgmr.msra.gmra.mrb[72].mxu0 %vm437_vm4, %v9040_v10 }
0x1329   :  { %7472 = vmatprep.mubr.msk.bf16.mxu0 %vm8423_vm3, %v8421_v0 }
0x13f3   :  { %v2086_v8 = vpop.f32.mrb[68].mxu0 }
0x13f4   :  { %v2087_v55 = vadd.f32 %v8866_v63, %v2086_v8  ;;  %v7446_v19 = vpop.f32.mrb[69].mxu0 }
0x13f5   :  { %v2089_v21 = vpop.f32.mrb[70].mxu0 }
0x13f6   :  { %8164 = vtanh.f32 %v2087_v55  ;;  %v2090_v18 = vadd.f32 %v8866_v63, %v2089_v21  ;;  %v7447_v56 = vpop.f32.mrb[71].mxu0 }
0x13f7   :  { %v9207_v56 = vld [vmem:[%s10483_s30] sm:$0xff]  }
0x13f8   :  { %8166 = vtanh.f32 %v2090_v18 }
0x13fb   :  { %v2194_v57 = vpop.f32.mrb[72].mxu0 }
0x13fc   :  { %v2195_v5 = vadd.f32 %v9151_v52, %v2194_v57  ;;  %v7460_v15 = vpop.f32.mrb[73].mxu0  ;;  %v9216_v57 = vld [vmem:[%s10483_s30 + $0x8] sm:$0xff]  }
0x13fd   :  { %v2197_v7 = vpop.f32.mrb[74].mxu0  ;;  %v9224_v15 = vld [vmem:[%s10440_s9] sm:$0xff]  }
0x13fe   :  { %v6779_v51 = vmul.f32 -1.442695, %v2195_v5  ;;  %v2198_v58 = vadd.f32 %v9151_v52, %v2197_v7  ;;  %v7461_v61 = vpop.f32.mrb[75].mxu0  ;;  %v9233_v7 = vld [vmem:[%s10440_s9 + $0x8] sm:$0xff]  }
0x1400   :  { %v8165_v23 = vpop.eup %8164  ;;  %8168 = vpow2.f32 %v6779_v51  ;;  %v6780_v53 = vmul.f32 -1.442695, %v2198_v58 }
0x1401   :  { %2101 = vrot.lane.b32.xlu0 %v8165_v23, %s10484_s2 }
0x1402   :  { %v8167_v63 = vpop.eup %8166  ;;  %8170 = vpow2.f32 %v6780_v53 }
0x1403   :  { %2103 = vrot.lane.b32.xlu1 %v8167_v63, %s10484_s2 }
0x1405   :  { %2226 = vrot.lane.b32.xlu0 %v8695_v27, %s8425_s4 }
0x1407   :  { %2228 = vrot.lane.b32.xlu1 %v8699_v29, %s8425_s4  ;;  %v9171_v29 = vld [vmem:[%s10482_s8] sm:$0xff]  }
0x140a   :  { %v8169_v24 = vpop.eup %8168 }
0x140b   :  { %v2207_v43 = vadd.f32 1.0, %v8169_v24 }
0x140c   :  { %v8171_v4 = vpop.eup %8170 }
0x140d   :  { %8172 = vrcp.f32 %v2207_v43  ;;  %v2208_v38 = vadd.f32 1.0, %v8171_v4 }
0x140f   :  { %8174 = vrcp.f32 %v2208_v38 }
0x1417   :  { %v9161_v54 = vpop.eup %8172 }
0x1418   :  { %v2221_v3 = vmul.f32 %v9161_v54, %v2216_v60 }
0x1419   :  { %v9163_v42 = vpop.eup %8174 }
0x141a   :  { %v2222_v13 = vmul.f32 %v9163_v42, %v2218_v16 }
0x141c   :  { %v2223_v27 = vpack.c.bf16 %v2222_v13, %v2221_v3 }
0x141e   :  { %7467 = vmatmul.mubr.msk.bf16.vlgmr.msra.gmra.mrb[72].mxu1 %vm386_vm5, %v2223_v27 }
0x141f   :  { %7477 = vmatpush3.bf16.msra.mxu1 %v9171_v29  ;;  %7480 = vmatprep.mubr.msk.bf16.mxu1 %vm8423_vm3, %v8421_v0 }
0x1420   :  { %7478 = vmatprep.subr.bf16.mxu1 %v8421_v0 }
0x1423   :  { %7479 = vmatpush3.bf16.msra.mxu1 %v9180_v14 }
0x1424   :  { %7492 = vmatprep.subr.bf16.mxu1 %v8421_v0 }
0x1426   :  { %7481 = vmatmul.mubr.msk.bf16.vlgmr.msra.gmra.mrb[76].mxu1 %vm386_vm5, %v9114_v9 }
0x1427   :  { %7494 = vmatprep.mubr.msk.bf16.mxu1 %vm8423_vm3, %v8421_v0 }
0x1473   :  { %v2102_v40 = vpop.permute.xlu0 %2101 }
0x1474   :  { %v2107_v50 = vmul.f32 %v2102_v40, %v2097_v17  ;;  %v2322_v17 = vsub.f32 1.0, %v9161_v54 }
0x1475   :  { %v2104_v22 = vpop.permute.xlu1 %2103 }
0x1476   :  { %v2108_v37 = vmul.f32 %v2104_v22, %v2098_v41  ;;  %v9194_v34 = vadd.f32 %v2107_v50, %v2095_v35  ;;  %v2320_v50 = vmul.f32 %v9161_v54, %v9080_v20  ;;  %v2323_v22 = vsub.f32 1.0, %v9163_v42 }
0x1477   :  { %v2227_v45 = vpop.permute.xlu0 %2226 }
0x1478   :  { %v9196_v9 = vadd.f32 %v2108_v37, %v2096_v2  ;;  %v2321_v37 = vmul.f32 %v9163_v42, %v9084_v59  ;;  %v9272_v59 = vld [vmem:[%s10441_s10] ss:$0 sm:$0xff] }
0x1479   :  { %v2229_v25 = vpop.permute.xlu1 %2228 }
0x147a   :  { %v2377_v44 = vpack.c.bf16 %v9196_v9, %v9194_v34 }
0x147c   :  { %2379 = vrot.lane.b32.xlu0 %v2377_v44, %s8427_s28 }
0x14ee   :  { %v2380_v5 = vpop.permute.xlu0 %2379 }
0x14f1   :  { %v2269_v11 = vpop.f32.mrb[72].mxu1 }
0x14f2   :  { %v7468_v46 = vpop.f32.mrb[73].mxu1  ;;  %v2270_v55 = vadd.f32 %v2269_v11, %v2227_v45 }
0x14f3   :  { %v2272_v8 = vpop.f32.mrb[74].mxu1 }
0x14f4   :  { %v2273_v62 = vadd.f32 %v2272_v8, %v2229_v25  ;;  %v7469_v6 = vpop.f32.mrb[75].mxu1 }
0x14f6   :  { %v2276_v19 = vpack.c.bf16 %v2273_v62, %v2270_v55 }
0x14f8   :  { %7471 = vmatpush3.bf16.msra.mxu0 %v2276_v19 }
0x14f9   :  { %v2370_v49 = vpop.f32.mrb[76].mxu1  ;;  %7484 = vmatprep.subr.bf16.mxu0 %v8421_v0 }
0x14fa   :  { %v7482_v12 = vpop.f32.mrb[77].mxu1 }
0x14fb   :  { %7473 = vmatmul.mubr.msk.bf16.vlgmr.msra.gmra.mrb[76].mxu0 %vm437_vm4, %v9040_v10  ;;  %v2373_v21 = vpop.f32.mrb[78].mxu1 }
0x14fc   :  { %v7483_v18 = vpop.f32.mrb[79].mxu1  ;;  %7485 = vmatpush3.bf16.msra.mxu0 %v9207_v56  ;;  %7488 = vmatprep.mubr.msk.bf16.mxu0 %vm8423_vm3, %v8421_v0 }
0x14fd   :  { %7486 = vmatprep.subr.bf16.mxu0 %v8421_v0 }
0x1500   :  { %7487 = vmatpush3.bf16.msra.mxu0 %v9216_v57 }
0x1501   :  { %7498 = vmatprep.subr.bf16.mxu0 %v8421_v0 }
0x1503   :  { %7489 = vmatmul.mubr.msk.bf16.vlgmr.msra.gmra.mrb[80].mxu0 %vm386_vm5, %v2380_v5 }
0x1504   :  { %7499 = vmatpush3.bf16.msra.mxu0 %v9224_v15  ;;  %7502 = vmatprep.mubr.msk.bf16.mxu0 %vm8423_vm3, %v8421_v0 }
0x1505   :  { %7500 = vmatprep.subr.bf16.mxu0 %v8421_v0 }
0x1508   :  { %7501 = vmatpush3.bf16.msra.mxu0 %v9233_v7 }
0x1509   :  { %7512 = vmatprep.subr.bf16.mxu0 %v8421_v0 }
0x15ce   :  { %v2311_v51 = vpop.f32.mrb[76].mxu0 }
0x15cf   :  { %v2312_v58 = vadd.f32 %v9060_v36, %v2311_v51  ;;  %v7474_v61 = vpop.f32.mrb[77].mxu0 }
0x15d0   :  { %v2314_v23 = vpop.f32.mrb[78].mxu0 }
0x15d1   :  { %8176 = vtanh.f32 %v2312_v58  ;;  %v2315_v53 = vadd.f32 %v9060_v36, %v2314_v23  ;;  %v7475_v63 = vpop.f32.mrb[79].mxu0 }
0x15d3   :  { %8178 = vtanh.f32 %v2315_v53 }
0x15d6   :  { %v2418_v24 = vpop.f32.mrb[80].mxu0 }
0x15d7   :  { %v2419_v43 = vadd.f32 %v2418_v24, %v2370_v49  ;;  %v7490_v4 = vpop.f32.mrb[81].mxu0 }
0x15d8   :  { %v2421_v38 = vpop.f32.mrb[82].mxu0 }
0x15d9   :  { %v2422_v60 = vadd.f32 %v2421_v38, %v2373_v21  ;;  %v7491_v16 = vpop.f32.mrb[83].mxu0 }
0x15db   :  { %v8177_v3 = vpop.eup %8176  ;;  %v2425_v13 = vpack.c.bf16 %v2422_v60, %v2419_v43 }
0x15dc   :  { %2326 = vrot.lane.b32.xlu1 %v8177_v3, %s10484_s2 }
0x15dd   :  { %v8179_v27 = vpop.eup %8178  ;;  %7493 = vmatpush3.bf16.msra.mxu1 %v2425_v13 }
0x15de   :  { %2328 = vrot.lane.b32.xlu0 %v8179_v27, %s10484_s2  ;;  %7506 = vmatprep.subr.bf16.mxu1 %v8421_v0 }
0x15e0   :  { %2481 = vrot.lane.b32.xlu1 %v9194_v34, %s8427_s28  ;;  %7495 = vmatmul.mubr.msk.bf16.vlgmr.msra.gmra.mrb[80].mxu1 %vm437_vm4, %v9040_v10 }
0x15e1   :  { %7508 = vmatprep.mubr.msk.bf16.mxu1 %vm8423_vm3, %v8421_v0 }
0x15e2   :  { %2483 = vrot.lane.b32.xlu0 %v9196_v9, %s8427_s28 }
0x15e6   :  { %2492 = vrot.lane.b32.xlu0 %v2370_v49, %s8425_s4 }
0x164e   :  { %v2327_v40 = vpop.permute.xlu1 %2326 }
0x164f   :  { %v2332_v41 = vmul.f32 %v2327_v40, %v2322_v17 }
0x1650   :  { %v2329_v35 = vpop.permute.xlu0 %2328 }
0x1651   :  { %v9255_v2 = vadd.f32 %v2332_v41, %v2320_v50  ;;  %v2333_v44 = vmul.f32 %v2329_v35, %v2323_v22 }
0x1652   :  { %v2482_v5 = vpop.permute.xlu1 %2481 }
0x1653   :  { %v9259_v11 = vadd.f32 %v2333_v44, %v2321_v37  ;;  %2706 = vrot.lane.b32.xlu0 %v9255_v2, %s8427_s28  ;;  %v9314_v37 = vld [vmem:[%s10442_s11] ss:$0 sm:$0xff] }
0x1654   :  { %v2484_v51 = vpop.permute.xlu0 %2483 }
0x1655   :  { %v2602_v45 = vpack.c.bf16 %v9259_v11, %v9255_v2 }
0x1657   :  { %2604 = vrot.lane.b32.xlu1 %v2602_v45, %s8427_s28 }
0x1658   :  { %v2493_v63 = vpop.permute.xlu0 %2492 }
0x165b   :  { %2494 = vrot.lane.b32.xlu1 %v2373_v21, %s8425_s4 }
0x165f   :  { %2708 = vrot.lane.b32.xlu1 %v9259_v11, %s8427_s28 }
0x16b3   :  { %v2460_v20 = vpop.f32.mrb[80].mxu1 }
0x16b4   :  { %v2461_v54 = vadd.f32 %v9272_v59, %v2460_v20  ;;  %v7496_v42 = vpop.f32.mrb[81].mxu1 }
0x16b5   :  { %v2463_v46 = vpop.f32.mrb[82].mxu1 }
0x16b6   :  { %v6786_v25 = vmul.f32 -1.442695, %v2461_v54  ;;  %v2464_v8 = vadd.f32 %v9272_v59, %v2463_v46  ;;  %v7497_v55 = vpop.f32.mrb[83].mxu1 }
0x16b8   :  { %8180 = vpow2.f32 %v6786_v25  ;;  %v6787_v62 = vmul.f32 -1.442695, %v2464_v8 }
0x16ba   :  { %8182 = vpow2.f32 %v6787_v62 }
0x16c2   :  { %v8181_v6 = vpop.eup %8180 }
0x16c3   :  { %v2473_v19 = vadd.f32 1.0, %v8181_v6 }
0x16c4   :  { %v8183_v49 = vpop.eup %8182 }
0x16c5   :  { %8184 = vrcp.f32 %v2473_v19  ;;  %v2474_v12 = vadd.f32 1.0, %v8183_v49 }
0x16c7   :  { %8186 = vrcp.f32 %v2474_v12 }
0x16c9   :  { %v9289_v53 = vpop.permute.xlu1 %2604 }
0x16cd   :  { %v2495_v43 = vpop.permute.xlu1 %2494 }
0x16cf   :  { %v9276_v21 = vpop.eup %8184 }
0x16d0   :  { %v2487_v58 = vmul.f32 %v9276_v21, %v2482_v5 }
0x16d1   :  { %v9278_v18 = vpop.eup %8186 }
0x16d2   :  { %v2488_v61 = vmul.f32 %v9278_v18, %v2484_v51 }
0x16d4   :  { %v2489_v23 = vpack.c.bf16 %v2488_v61, %v2487_v58 }
0x16d6   :  { %7503 = vmatmul.mubr.msk.bf16.vlgmr.msra.gmra.mrb[84].mxu0 %vm386_vm5, %v2489_v23 }
0x16d7   :  { %7513 = vmatpush3.bf16.msra.mxu0 %v8966_v48  ;;  %7516 = vmatprep.mubr.msk.bf16.mxu0 %vm8423_vm3, %v8421_v0 }
0x16d8   :  { %7514 = vmatprep.subr.bf16.mxu0 %v8421_v0 }
0x16db   :  { %7515 = vmatpush3.bf16.msra.mxu0 %v9110_v1 }
0x16dc   :  { %7526 = vmatprep.subr.bf16.mxu0 %v8421_v0 }
0x16de   :  { %7517 = vmatmul.mubr.msk.bf16.vlgmr.msra.gmra.mrb[88].mxu0 %vm386_vm5, %v9289_v53 }
0x16df   :  { %7527 = vmatpush3.bf16.msra.mxu0 %v9121_v47  ;;  %7530 = vmatprep.mubr.msk.bf16.mxu0 %vm8423_vm3, %v8421_v0 }
0x16e0   :  { %7528 = vmatprep.subr.bf16.mxu0 %v8421_v0 }
0x16e3   :  { %7529 = vmatpush3.bf16.msra.mxu0 %v9130_v39 }
0x16e4   :  { %7540 = vmatprep.subr.bf16.mxu0 %v8421_v0 }
0x17a9   :  { %v2535_v48 = vpop.f32.mrb[84].mxu0 }
0x17aa   :  { %v7504_v24 = vpop.f32.mrb[85].mxu0  ;;  %v2536_v38 = vadd.f32 %v2535_v48, %v2493_v63 }
0x17ab   :  { %v2538_v4 = vpop.f32.mrb[86].mxu0  ;;  %v2707_v24 = vpop.permute.xlu0 %2706 }
0x17ac   :  { %v2539_v60 = vadd.f32 %v2538_v4, %v2495_v43  ;;  %v7505_v16 = vpop.f32.mrb[87].mxu0  ;;  %v2709_v43 = vpop.permute.xlu1 %2708 }
0x17ae   :  { %v2542_v3 = vpack.c.bf16 %v2539_v60, %v2536_v38 }
0x17b0   :  { %7507 = vmatpush3.bf16.msra.mxu1 %v2542_v3  ;;  %v2589_v3 = vsub.f32 1.0, %v9278_v18 }
0x17b1   :  { %v2643_v13 = vpop.f32.mrb[88].mxu0  ;;  %7520 = vmatprep.subr.bf16.mxu1 %v8421_v0 }
0x17b2   :  { %v2644_v27 = vadd.f32 %v8693_v26, %v2643_v13  ;;  %v7518_v17 = vpop.f32.mrb[89].mxu0 }
0x17b3   :  { %7509 = vmatmul.mubr.msk.bf16.vlgmr.msra.gmra.mrb[84].mxu1 %vm437_vm4, %v9040_v10  ;;  %v2646_v40 = vpop.f32.mrb[90].mxu0  ;;  %v2587_v17 = vmul.f32 %v9278_v18, %v9196_v9 }
0x17b4   :  { %v2647_v50 = vadd.f32 %v8697_v28, %v2646_v40  ;;  %v7519_v41 = vpop.f32.mrb[91].mxu0  ;;  %7522 = vmatprep.mubr.msk.bf16.mxu1 %vm8423_vm3, %v8421_v0 }
0x17b6   :  { %v2650_v22 = vpack.c.bf16 %v2647_v50, %v2644_v27  ;;  %v2586_v27 = vmul.f32 %v9276_v21, %v9194_v34 }
0x17b8   :  { %7521 = vmatpush3.bf16.msra.mxu1 %v2650_v22 }
0x17b9   :  { %7534 = vmatprep.subr.bf16.mxu1 %v8421_v0 }
0x17bb   :  { %7523 = vmatmul.mubr.msk.bf16.vlgmr.msra.gmra.mrb[88].mxu1 %vm437_vm4, %v9040_v10 }
0x17bc   :  { %7536 = vmatprep.mubr.msk.bf16.mxu1 %vm8423_vm3, %v8421_v0 }
0x1886   :  { %v2577_v35 = vpop.f32.mrb[84].mxu1 }
0x1887   :  { %v2578_v44 = vadd.f32 %v9314_v37, %v2577_v35  ;;  %v7510_v45 = vpop.f32.mrb[85].mxu1 }
0x1888   :  { %v2580_v20 = vpop.f32.mrb[86].mxu1 }
0x1889   :  { %8188 = vtanh.f32 %v2578_v44  ;;  %v2581_v54 = vadd.f32 %v9314_v37, %v2580_v20  ;;  %v7511_v42 = vpop.f32.mrb[87].mxu1 }
0x188b   :  { %8190 = vtanh.f32 %v2581_v54 }
0x188e   :  { %v2685_v46 = vpop.f32.mrb[88].mxu1 }
0x188f   :  { %v2686_v25 = vadd.f32 %v9151_v52, %v2685_v46  ;;  %v7524_v8 = vpop.f32.mrb[89].mxu1 }
0x1890   :  { %v2688_v55 = vpop.f32.mrb[90].mxu1 }
0x1891   :  { %v6792_v62 = vmul.f32 -1.442695, %v2686_v25  ;;  %v2689_v6 = vadd.f32 %v9151_v52, %v2688_v55  ;;  %v7525_v19 = vpop.f32.mrb[91].mxu1 }
0x1893   :  { %v8189_v49 = vpop.eup %8188  ;;  %8192 = vpow2.f32 %v6792_v62  ;;  %v6793_v12 = vmul.f32 -1.442695, %v2689_v6 }
0x1894   :  { %2592 = vrot.lane.b32.xlu0 %v8189_v49, %s10484_s2 }
0x1895   :  { %v8191_v5 = vpop.eup %8190  ;;  %8194 = vpow2.f32 %v6793_v12 }
0x1896   :  { %2594 = vrot.lane.b32.xlu1 %v8191_v5, %s10484_s2 }
0x1898   :  { %2717 = vrot.lane.b32.xlu0 %v8693_v26, %s8425_s4 }
0x189a   :  { %2719 = vrot.lane.b32.xlu1 %v8697_v28, %s8425_s4  ;;  %v2588_v28 = vsub.f32 1.0, %v9276_v21 }
0x189d   :  { %v8193_v51 = vpop.eup %8192 }
0x189e   :  { %v2698_v58 = vadd.f32 1.0, %v8193_v51 }
0x189f   :  { %v8195_v61 = vpop.eup %8194 }
0x18a0   :  { %8196 = vrcp.f32 %v2698_v58  ;;  %v2699_v23 = vadd.f32 1.0, %v8195_v61 }
0x18a2   :  { %8198 = vrcp.f32 %v2699_v23 }
0x18aa   :  { %v9326_v48 = vpop.eup %8196 }
0x18ab   :  { %v2712_v4 = vmul.f32 %v9326_v48, %v2707_v24 }
0x18ac   :  { %v9328_v63 = vpop.eup %8198 }
0x18ad   :  { %v2713_v38 = vmul.f32 %v9328_v63, %v2709_v43 }
0x18af   :  { %v2714_v26 = vpack.c.bf16 %v2713_v38, %v2712_v4 }
0x18b1   :  { %7531 = vmatmul.mubr.msk.bf16.vlgmr.msra.gmra.mrb[92].mxu0 %vm386_vm5, %v2714_v26 }
0x18b2   :  { %7541 = vmatpush3.bf16.msra.mxu0 %v9171_v29  ;;  %7544 = vmatprep.mubr.msk.bf16.mxu0 %vm8423_vm3, %v8421_v0 }
0x18b3   :  { %7542 = vmatprep.subr.bf16.mxu0 %v8421_v0 }
0x18b6   :  { %7543 = vmatpush3.bf16.msra.mxu0 %v9180_v14 }
0x18b7   :  { %7556 = vmatprep.subr.bf16.mxu0 %v8421_v0 }
0x18b9   :  { %7545 = vmatmul.mubr.msk.bf16.vlgmr.msra.gmra.mrb[96].mxu0 %vm386_vm5, %v9289_v53 }
0x18ba   :  { %7558 = vmatprep.mubr.msk.bf16.mxu0 %vm8423_vm3, %v8421_v0 }
0x1906   :  { %v2593_v60 = vpop.permute.xlu0 %2592 }
0x1907   :  { %v2598_v16 = vmul.f32 %v2593_v60, %v2588_v28  ;;  %v2811_v28 = vmul.f32 %v9326_v48, %v9255_v2 }
0x1908   :  { %v2595_v13 = vpop.permute.xlu1 %2594 }
0x1909   :  { %v2599_v40 = vmul.f32 %v2595_v13, %v2589_v3  ;;  %v9349_v50 = vadd.f32 %v2598_v16, %v2586_v27  ;;  %v2814_v16 = vsub.f32 1.0, %v9328_v63  ;;  %v2812_v27 = vmul.f32 %v9328_v63, %v9259_v11 }
0x190a   :  { %v2718_v35 = vpop.permute.xlu0 %2717 }
0x190b   :  { %v9351_v53 = vadd.f32 %v2599_v40, %v2587_v17 }
0x190c   :  { %v2720_v45 = vpop.permute.xlu1 %2719 }
0x190d   :  { %v2868_v41 = vpack.c.bf16 %v9351_v53, %v9349_v50 }
0x190f   :  { %2870 = vrot.lane.b32.xlu0 %v2868_v41, %s8427_s28 }
0x1981   :  { %v2871_v8 = vpop.permute.xlu0 %2870 }
0x1984   :  { %v2760_v22 = vpop.f32.mrb[92].mxu0 }
0x1985   :  { %v7532_v44 = vpop.f32.mrb[93].mxu0  ;;  %v2761_v54 = vadd.f32 %v2760_v22, %v2718_v35 }
0x1986   :  { %v2763_v20 = vpop.f32.mrb[94].mxu0 }
0x1987   :  { %v2764_v34 = vadd.f32 %v2763_v20, %v2720_v45  ;;  %v7533_v21 = vpop.f32.mrb[95].mxu0 }
0x1989   :  { %v2767_v42 = vpack.c.bf16 %v2764_v34, %v2761_v54 }
0x198b   :  { %7535 = vmatpush3.bf16.msra.mxu1 %v2767_v42 }
0x198c   :  { %v2861_v9 = vpop.f32.mrb[96].mxu0  ;;  %7548 = vmatprep.subr.bf16.mxu1 %v8421_v0 }
0x198d   :  { %v7546_v18 = vpop.f32.mrb[97].mxu0 }
0x198e   :  { %7537 = vmatmul.mubr.msk.bf16.vlgmr.msra.gmra.mrb[92].mxu1 %vm437_vm4, %v9040_v10  ;;  %v2864_v46 = vpop.f32.mrb[98].mxu0 }
0x198f   :  { %v7547_v25 = vpop.f32.mrb[99].mxu0  ;;  %7549 = vmatpush3.bf16.msra.mxu1 %v9207_v56  ;;  %7552 = vmatprep.mubr.msk.bf16.mxu1 %vm8423_vm3, %v8421_v0 }
0x1990   :  { %7550 = vmatprep.subr.bf16.mxu1 %v8421_v0 }
0x1993   :  { %7551 = vmatpush3.bf16.msra.mxu1 %v9216_v57 }
0x1994   :  { %7562 = vmatprep.subr.bf16.mxu1 %v8421_v0 }
0x1996   :  { %7553 = vmatmul.mubr.msk.bf16.vlgmr.msra.gmra.mrb[96].mxu1 %vm386_vm5, %v2871_v8 }
0x1997   :  { %7563 = vmatpush3.bf16.msra.mxu1 %v9224_v15  ;;  %7566 = vmatprep.mubr.msk.bf16.mxu1 %vm8423_vm3, %v8421_v0 }
0x1998   :  { %7564 = vmatprep.subr.bf16.mxu1 %v8421_v0 }
0x199b   :  { %7565 = vmatpush3.bf16.msra.mxu1 %v9233_v7 }
0x199c   :  { %7576 = vmatprep.subr.bf16.mxu1 %v8421_v0 }
0x1a61   :  { %v2802_v55 = vpop.f32.mrb[92].mxu1 }
0x1a62   :  { %v2803_v62 = vadd.f32 %v9060_v36, %v2802_v55  ;;  %v7538_v6 = vpop.f32.mrb[93].mxu1 }
0x1a63   :  { %v2805_v19 = vpop.f32.mrb[94].mxu1 }
0x1a64   :  { %8200 = vtanh.f32 %v2803_v62  ;;  %v2806_v49 = vadd.f32 %v9060_v36, %v2805_v19  ;;  %v7539_v12 = vpop.f32.mrb[95].mxu1  ;;  %v2813_v36 = vsub.f32 1.0, %v9326_v48  ;;  %v9416_v62 = vld [vmem:[%s10475_s27] sm:$0xff]  }
0x1a66   :  { %8202 = vtanh.f32 %v2806_v49 }
0x1a69   :  { %v2909_v5 = vpop.f32.mrb[96].mxu1 }
0x1a6a   :  { %v2910_v51 = vadd.f32 %v2909_v5, %v2861_v9  ;;  %v7554_v58 = vpop.f32.mrb[97].mxu1 }
0x1a6b   :  { %v2912_v61 = vpop.f32.mrb[98].mxu1 }
0x1a6c   :  { %v2913_v23 = vadd.f32 %v2912_v61, %v2864_v46  ;;  %v7555_v24 = vpop.f32.mrb[99].mxu1 }
0x1a6e   :  { %v8201_v43 = vpop.eup %8200  ;;  %v2916_v4 = vpack.c.bf16 %v2913_v23, %v2910_v51 }
0x1a6f   :  { %2817 = vrot.lane.b32.xlu1 %v8201_v43, %s10484_s2 }
0x1a70   :  { %v8203_v38 = vpop.eup %8202  ;;  %7557 = vmatpush3.bf16.msra.mxu0 %v2916_v4 }
0x1a71   :  { %2819 = vrot.lane.b32.xlu0 %v8203_v38, %s10484_s2  ;;  %7570 = vmatprep.subr.bf16.mxu0 %v8421_v0 }
0x1a73   :  { %2972 = vrot.lane.b32.xlu1 %v9349_v50, %s8427_s28  ;;  %7559 = vmatmul.mubr.msk.bf16.vlgmr.msra.gmra.mrb[100].mxu0 %vm437_vm4, %v9040_v10 }
0x1a74   :  { %7572 = vmatprep.mubr.msk.bf16.mxu0 %vm8423_vm3, %v8421_v0 }
0x1a75   :  { %2974 = vrot.lane.b32.xlu0 %v9351_v53, %s8427_s28 }
0x1a79   :  { %2983 = vrot.lane.b32.xlu0 %v2861_v9, %s8425_s4 }
0x1ae1   :  { %v2818_v26 = vpop.permute.xlu1 %2817 }
0x1ae2   :  { %v2823_v60 = vmul.f32 %v2818_v26, %v2813_v36 }
0x1ae3   :  { %v2820_v3 = vpop.permute.xlu0 %2819 }
0x1ae4   :  { %v9390_v13 = vadd.f32 %v2823_v60, %v2811_v28  ;;  %v2824_v17 = vmul.f32 %v2820_v3, %v2814_v16 }
0x1ae5   :  { %v2973_v18 = vpop.permute.xlu1 %2972 }
0x1ae6   :  { %v9394_v40 = vadd.f32 %v2824_v17, %v2812_v27  ;;  %3197 = vrot.lane.b32.xlu0 %v9390_v13, %s8427_s28 }
0x1ae8   :  { %v3093_v41 = vpack.c.bf16 %v9394_v40, %v9390_v13 }
0x1aea   :  { %3095 = vrot.lane.b32.xlu1 %v3093_v41, %s8427_s28 }
0x1aee   :  { %2985 = vrot.lane.b32.xlu1 %v2864_v46, %s8425_s4  ;;  %v2975_v46 = vpop.permute.xlu0 %2974 }
0x1af2   :  { %3199 = vrot.lane.b32.xlu1 %v9394_v40, %s8427_s28 }
0x1b46   :  { %v2951_v2 = vpop.f32.mrb[100].mxu0 }
0x1b47   :  { %v2952_v48 = vadd.f32 %v9272_v59, %v2951_v2  ;;  %v7560_v11 = vpop.f32.mrb[101].mxu0 }
0x1b48   :  { %v2954_v63 = vpop.f32.mrb[102].mxu0 }
0x1b49   :  { %v6799_v22 = vmul.f32 -1.442695, %v2952_v48  ;;  %v2955_v35 = vadd.f32 %v9272_v59, %v2954_v63  ;;  %v7561_v44 = vpop.f32.mrb[103].mxu0 }
0x1b4b   :  { %8204 = vpow2.f32 %v6799_v22  ;;  %v6800_v45 = vmul.f32 -1.442695, %v2955_v35 }
0x1b4d   :  { %8206 = vpow2.f32 %v6800_v45 }
0x1b55   :  { %v8205_v20 = vpop.eup %8204 }
0x1b56   :  { %v2964_v54 = vadd.f32 1.0, %v8205_v20 }
0x1b57   :  { %v8207_v34 = vpop.eup %8206 }
0x1b58   :  { %8208 = vrcp.f32 %v2964_v54  ;;  %v2965_v21 = vadd.f32 1.0, %v8207_v34 }
0x1b5a   :  { %8210 = vrcp.f32 %v2965_v21 }
0x1b5c   :  { %v9424_v6 = vpop.permute.xlu1 %3095 }
0x1b60   :  { %v2986_v12 = vpop.permute.xlu1 %2985 }
0x1b62   :  { %v9406_v42 = vpop.eup %8208 }
0x1b63   :  { %v2978_v25 = vmul.f32 %v9406_v42, %v2973_v18 }
0x1b64   :  { %v9408_v9 = vpop.eup %8210 }
0x1b65   :  { %v2979_v8 = vmul.f32 %v9408_v9, %v2975_v46  ;;  %v3200_v46 = vpop.permute.xlu1 %3199 }
0x1b67   :  { %v2980_v55 = vpack.c.bf16 %v2979_v8, %v2978_v25 }
0x1b69   :  { %7567 = vmatmul.mubr.msk.bf16.vlgmr.msra.gmra.mrb[100].mxu1 %vm386_vm5, %v2980_v55 }
0x1b6a   :  { %7577 = vmatpush3.bf16.msra.mxu1 %v9416_v62  ;;  %7580 = vmatprep.mubr.msk.bf16.mxu1 %vm8423_vm3, %v8421_v0 }
0x1b6b   :  { %7578 = vmatprep.subr.bf16.mxu1 %v8421_v0 }
0x1b6e   :  { %7579 = vmatpush3.bf16.msra.mxu1 %v9110_v1  ;;  %v2984_v1 = vpop.permute.xlu0 %2983 }
0x1b6f   :  { %7590 = vmatprep.subr.bf16.mxu1 %v8421_v0 }
0x1b71   :  { %7581 = vmatmul.mubr.msk.bf16.vlgmr.msra.gmra.mrb[104].mxu1 %vm386_vm5, %v9424_v6 }
0x1b72   :  { %7591 = vmatpush3.bf16.msra.mxu1 %v9121_v47  ;;  %7594 = vmatprep.mubr.msk.bf16.mxu1 %vm8423_vm3, %v8421_v0  ;;  %v3198_v18 = vpop.permute.xlu0 %3197 }
0x1b73   :  { %7592 = vmatprep.subr.bf16.mxu1 %v8421_v0 }
0x1b76   :  { %7593 = vmatpush3.bf16.msra.mxu1 %v9130_v39 }
0x1b77   :  { %7604 = vmatprep.subr.bf16.mxu1 %v8421_v0 }
0x1c3c   :  { %v3026_v19 = vpop.f32.mrb[100].mxu1 }
0x1c3d   :  { %v7568_v49 = vpop.f32.mrb[101].mxu1  ;;  %v3027_v51 = vadd.f32 %v3026_v19, %v2984_v1 }
0x1c3e   :  { %v3029_v5 = vpop.f32.mrb[102].mxu1  ;;  %v3077_v49 = vmul.f32 %v9406_v42, %v9349_v50 }
0x1c3f   :  { %v3030_v58 = vadd.f32 %v3029_v5, %v2986_v12  ;;  %v7569_v61 = vpop.f32.mrb[103].mxu1 }
0x1c41   :  { %v3033_v23 = vpack.c.bf16 %v3030_v58, %v3027_v51 }
0x1c43   :  { %7571 = vmatpush3.bf16.msra.mxu0 %v3033_v23 }
0x1c44   :  { %v3134_v47 = vpop.f32.mrb[104].mxu1  ;;  %7584 = vmatprep.subr.bf16.mxu0 %v8421_v0 }
0x1c45   :  { %v3135_v24 = vadd.f32 %v3134_v47, %v8703_v31  ;;  %v7582_v43 = vpop.f32.mrb[105].mxu1 }
0x1c46   :  { %7573 = vmatmul.mubr.msk.bf16.vlgmr.msra.gmra.mrb[104].mxu0 %vm437_vm4, %v9040_v10  ;;  %v3137_v39 = vpop.f32.mrb[106].mxu1 }
0x1c47   :  { %v3138_v4 = vadd.f32 %v3137_v39, %v8707_v33  ;;  %v7583_v38 = vpop.f32.mrb[107].mxu1  ;;  %7586 = vmatprep.mubr.msk.bf16.mxu0 %vm8423_vm3, %v8421_v0 }
0x1c49   :  { %v3141_v36 = vpack.c.bf16 %v3138_v4, %v3135_v24  ;;  %v9490_v4 = vld [vmem:[%s10478_s26] sm:$0xff]  }
0x1c4b   :  { %7585 = vmatpush3.bf16.msra.mxu0 %v3141_v36 }
0x1c4c   :  { %7598 = vmatprep.subr.bf16.mxu0 %v8421_v0 }
0x1c4e   :  { %7587 = vmatmul.mubr.msk.bf16.vlgmr.msra.gmra.mrb[108].mxu0 %vm437_vm4, %v9040_v10 }
0x1c4f   :  { %7600 = vmatprep.mubr.msk.bf16.mxu0 %vm8423_vm3, %v8421_v0 }
0x1d19   :  { %v3068_v26 = vpop.f32.mrb[104].mxu0 }
0x1d1a   :  { %v3069_v28 = vadd.f32 %v9314_v37, %v3068_v26  ;;  %v7574_v60 = vpop.f32.mrb[105].mxu0 }
0x1d1b   :  { %v3071_v16 = vpop.f32.mrb[106].mxu0 }
0x1d1c   :  { %8212 = vtanh.f32 %v3069_v28  ;;  %v3072_v3 = vadd.f32 %v9314_v37, %v3071_v16  ;;  %v7575_v27 = vpop.f32.mrb[107].mxu0 }
0x1d1e   :  { %8214 = vtanh.f32 %v3072_v3 }
0x1d21   :  { %v3176_v17 = vpop.f32.mrb[108].mxu0 }
0x1d22   :  { %v3177_v41 = vadd.f32 %v9151_v52, %v3176_v17  ;;  %v7588_v2 = vpop.f32.mrb[109].mxu0 }
0x1d23   :  { %v3179_v48 = vpop.f32.mrb[110].mxu0 }
0x1d24   :  { %v6805_v11 = vmul.f32 -1.442695, %v3177_v41  ;;  %v3180_v10 = vadd.f32 %v9151_v52, %v3179_v48  ;;  %v7589_v63 = vpop.f32.mrb[111].mxu0 }
0x1d26   :  { %v8213_v22 = vpop.eup %8212  ;;  %8216 = vpow2.f32 %v6805_v11  ;;  %v6806_v35 = vmul.f32 -1.442695, %v3180_v10 }
0x1d27   :  { %3083 = vrot.lane.b32.xlu0 %v8213_v22, %s10484_s2 }
0x1d28   :  { %v8215_v44 = vpop.eup %8214  ;;  %8218 = vpow2.f32 %v6806_v35 }
0x1d29   :  { %3085 = vrot.lane.b32.xlu1 %v8215_v44, %s10484_s2 }
0x1d2b   :  { %3208 = vrot.lane.b32.xlu0 %v8703_v31, %s8425_s4 }
0x1d2d   :  { %3210 = vrot.lane.b32.xlu1 %v8707_v33, %s8425_s4  ;;  %v3079_v33 = vsub.f32 1.0, %v9406_v42 }
0x1d30   :  { %v8217_v45 = vpop.eup %8216 }
0x1d31   :  { %v3189_v20 = vadd.f32 1.0, %v8217_v45 }
0x1d32   :  { %v8219_v54 = vpop.eup %8218 }
0x1d33   :  { %8220 = vrcp.f32 %v3189_v20  ;;  %v3190_v52 = vadd.f32 1.0, %v8219_v54 }
0x1d35   :  { %8222 = vrcp.f32 %v3190_v52 }
0x1d3d   :  { %v9456_v34 = vpop.eup %8220 }
0x1d3e   :  { %v3203_v25 = vmul.f32 %v9456_v34, %v3198_v18  ;;  %v3304_v22 = vsub.f32 1.0, %v9456_v34  ;;  %v3302_v44 = vmul.f32 %v9456_v34, %v9390_v13 }
0x1d3f   :  { %v9458_v21 = vpop.eup %8222 }
0x1d40   :  { %v3204_v8 = vmul.f32 %v9458_v21, %v3200_v46  ;;  %v3305_v20 = vsub.f32 1.0, %v9458_v21  ;;  %v3303_v18 = vmul.f32 %v9458_v21, %v9394_v40 }
0x1d42   :  { %v3205_v31 = vpack.c.bf16 %v3204_v8, %v3203_v25 }
0x1d44   :  { %7595 = vmatmul.mubr.msk.bf16.vlgmr.msra.gmra.mrb[108].mxu1 %vm386_vm5, %v3205_v31 }
0x1d45   :  { %7605 = vmatpush3.bf16.msra.mxu1 %v9171_v29  ;;  %7608 = vmatprep.mubr.msk.bf16.mxu1 %vm8423_vm3, %v8421_v0  ;;  %v3080_v29 = vsub.f32 1.0, %v9408_v9 }
0x1d46   :  { %7606 = vmatprep.subr.bf16.mxu1 %v8421_v0 }
0x1d49   :  { %7607 = vmatpush3.bf16.msra.mxu1 %v9180_v14  ;;  %v3078_v14 = vmul.f32 %v9408_v9, %v9351_v53 }
0x1d4a   :  { %7620 = vmatprep.subr.bf16.mxu1 %v8421_v0 }
0x1d4c   :  { %7609 = vmatmul.mubr.msk.bf16.vlgmr.msra.gmra.mrb[112].mxu1 %vm386_vm5, %v9424_v6 }
0x1d4d   :  { %7622 = vmatprep.mubr.msk.bf16.mxu1 %vm8423_vm3, %v8421_v0 }
0x1d99   :  { %v3084_v55 = vpop.permute.xlu0 %3083 }
0x1d9a   :  { %v3089_v19 = vmul.f32 %v3084_v55, %v3079_v33 }
0x1d9b   :  { %v3086_v1 = vpop.permute.xlu1 %3085 }
0x1d9c   :  { %v3090_v12 = vmul.f32 %v3086_v1, %v3080_v29  ;;  %v9479_v5 = vadd.f32 %v3089_v19, %v3077_v49 }
0x1d9d   :  { %v3209_v61 = vpop.permute.xlu0 %3208 }
0x1d9e   :  { %v9481_v6 = vadd.f32 %v3090_v12, %v3078_v14 }
0x1d9f   :  { %v3211_v47 = vpop.permute.xlu1 %3210 }
0x1da0   :  { %v3359_v51 = vpack.c.bf16 %v9481_v6, %v9479_v5 }
0x1da2   :  { %3361 = vrot.lane.b32.xlu0 %v3359_v51, %s8427_s28 }
0x1e14   :  { %v3362_v26 = vpop.permute.xlu0 %3361 }
0x1e17   :  { %v3251_v58 = vpop.f32.mrb[108].mxu1 }
0x1e18   :  { %v7596_v23 = vpop.f32.mrb[109].mxu1  ;;  %v3252_v43 = vadd.f32 %v3251_v58, %v3209_v61 }
0x1e19   :  { %v3254_v24 = vpop.f32.mrb[110].mxu1 }
0x1e1a   :  { %v3255_v50 = vadd.f32 %v3254_v24, %v3211_v47  ;;  %v7597_v42 = vpop.f32.mrb[111].mxu1  ;;  %v8390_v24 = vld [vmem:[%s10475_s27 + $0x8] sm:$0xff]  }
0x1e1c   :  { %v3258_v39 = vpack.c.bf16 %v3255_v50, %v3252_v43  ;;  %v8392_v50 = vld [vmem:[%s10479_s1 + $0x8] sm:$0xff]  }
0x1e1e   :  { %7599 = vmatpush3.bf16.msra.mxu0 %v3258_v39 }
0x1e1f   :  { %v3352_v53 = vpop.f32.mrb[112].mxu1  ;;  %7612 = vmatprep.subr.bf16.mxu0 %v8421_v0 }
0x1e20   :  { %v7610_v9 = vpop.f32.mrb[113].mxu1 }
0x1e21   :  { %7601 = vmatmul.mubr.msk.bf16.vlgmr.msra.gmra.mrb[112].mxu0 %vm437_vm4, %v9490_v4  ;;  %v3355_v38 = vpop.f32.mrb[114].mxu1 }
0x1e22   :  { %v7611_v36 = vpop.f32.mrb[115].mxu1  ;;  %7613 = vmatpush3.bf16.msra.mxu0 %v9207_v56  ;;  %7616 = vmatprep.mubr.msk.bf16.mxu0 %vm8423_vm3, %v8421_v0 }
0x1e23   :  { %7614 = vmatprep.subr.bf16.mxu0 %v8421_v0 }
0x1e26   :  { %7615 = vmatpush3.bf16.msra.mxu0 %v9216_v57  ;;  %v9510_v57 = vld [vmem:[%s10481_s5] ss:$0 sm:$0xff] }
0x1e27   :  { %7626 = vmatprep.subr.bf16.mxu0 %v8421_v0 }
0x1e29   :  { %7617 = vmatmul.mubr.msk.bf16.vlgmr.msra.gmra.mrb[116].mxu0 %vm386_vm5, %v3362_v26 }
0x1e2a   :  { %7627 = vmatpush3.bf16.msra.mxu0 %v9224_v15  ;;  %7630 = vmatprep.mubr.msk.bf16.mxu0 %vm8423_vm3, %v8421_v0 }
0x1e2b   :  { %7628 = vmatprep.subr.bf16.mxu0 %v8421_v0 }
0x1e2e   :  { %7629 = vmatpush3.bf16.msra.mxu0 %v9233_v7 }
0x1e2f   :  { %7640 = vmatprep.subr.bf16.mxu0 %v8421_v0 }
0x1ef4   :  { %v3293_v56 = vpop.f32.mrb[112].mxu0 }
0x1ef5   :  { %v3294_v28 = vadd.f32 %v9510_v57, %v3293_v56  ;;  %v7602_v60 = vpop.f32.mrb[113].mxu0 }
0x1ef6   :  { %v3296_v16 = vpop.f32.mrb[114].mxu0 }
0x1ef7   :  { %8224 = vtanh.f32 %v3294_v28  ;;  %v3297_v15 = vadd.f32 %v9510_v57, %v3296_v16  ;;  %v7603_v3 = vpop.f32.mrb[115].mxu0 }
0x1ef9   :  { %8226 = vtanh.f32 %v3297_v15 }
0x1efc   :  { %v3400_v27 = vpop.f32.mrb[116].mxu0 }
0x1efd   :  { %v3401_v17 = vadd.f32 %v3400_v27, %v3352_v53  ;;  %v7618_v7 = vpop.f32.mrb[117].mxu0 }
0x1efe   :  { %v3403_v41 = vpop.f32.mrb[118].mxu0 }
0x1eff   :  { %v3404_v2 = vadd.f32 %v3403_v41, %v3355_v38  ;;  %v7619_v48 = vpop.f32.mrb[119].mxu0 }
0x1f01   :  { %v8225_v11 = vpop.eup %8224  ;;  %v3407_v10 = vpack.c.bf16 %v3404_v2, %v3401_v17 }
0x1f02   :  { %3308 = vrot.lane.b32.xlu1 %v8225_v11, %s10484_s2 }
0x1f03   :  { %v8227_v63 = vpop.eup %8226  ;;  %7621 = vmatpush3.bf16.msra.mxu1 %v3407_v10 }
0x1f04   :  { %3310 = vrot.lane.b32.xlu0 %v8227_v63, %s10484_s2  ;;  %7634 = vmatprep.subr.bf16.mxu1 %v8421_v0 }
0x1f06   :  { %3463 = vrot.lane.b32.xlu1 %v9479_v5, %s8427_s28  ;;  %7623 = vmatmul.mubr.msk.bf16.vlgmr.msra.gmra.mrb[116].mxu1 %vm437_vm4, %v9490_v4 }
0x1f07   :  { %7636 = vmatprep.mubr.msk.bf16.mxu1 %vm8423_vm3, %v8421_v0 }
0x1f08   :  { %3465 = vrot.lane.b32.xlu0 %v9481_v6, %s8427_s28 }
0x1f0c   :  { %3474 = vrot.lane.b32.xlu0 %v3352_v53, %s8425_s4 }
0x1f74   :  { %v3309_v35 = vpop.permute.xlu1 %3308 }
0x1f75   :  { %v3314_v45 = vmul.f32 %v3309_v35, %v3304_v22  ;;  %v8393_v35 = vld [vmem:[%s10480_s25] ss:$0 sm:$0xff] }
0x1f76   :  { %v3311_v54 = vpop.permute.xlu0 %3310 }
0x1f77   :  { %v9530_v52 = vadd.f32 %v3314_v45, %v3302_v44  ;;  %v3315_v46 = vmul.f32 %v3311_v54, %v3305_v20 }
0x1f78   :  { %v3464_v58 = vpop.permute.xlu1 %3463 }
0x1f79   :  { %v9534_v25 = vadd.f32 %v3315_v46, %v3303_v18  ;;  %3688 = vrot.lane.b32.xlu0 %v9530_v52, %s8427_s28 }
0x1f7a   :  { %v3466_v61 = vpop.permute.xlu0 %3465 }
0x1f7b   :  { %v3584_v8 = vpack.c.bf16 %v9534_v25, %v9530_v52 }
0x1f7d   :  { %3586 = vrot.lane.b32.xlu1 %v3584_v8, %s8427_s28 }
0x1f7e   :  { %v3475_v39 = vpop.permute.xlu0 %3474 }
0x1f81   :  { %3476 = vrot.lane.b32.xlu1 %v3355_v38, %s8425_s4 }
0x1f85   :  { %3690 = vrot.lane.b32.xlu1 %v9534_v25, %s8427_s28 }
0x1fd9   :  { %v3442_v13 = vpop.f32.mrb[116].mxu1 }
0x1fda   :  { %v3443_v34 = vadd.f32 %v9272_v59, %v3442_v13  ;;  %v7624_v40 = vpop.f32.mrb[117].mxu1 }
0x1fdb   :  { %v3445_v21 = vpop.f32.mrb[118].mxu1 }
0x1fdc   :  { %v6812_v31 = vmul.f32 -1.442695, %v3443_v34  ;;  %v3446_v33 = vadd.f32 %v9272_v59, %v3445_v21  ;;  %v7625_v55 = vpop.f32.mrb[119].mxu1 }
0x1fde   :  { %8228 = vpow2.f32 %v6812_v31  ;;  %v6813_v19 = vmul.f32 -1.442695, %v3446_v33 }
0x1fe0   :  { %8230 = vpow2.f32 %v6813_v19 }
0x1fe8   :  { %v8229_v29 = vpop.eup %8228 }
0x1fe9   :  { %v3455_v1 = vadd.f32 1.0, %v8229_v29 }
0x1fea   :  { %v8231_v49 = vpop.eup %8230 }
0x1feb   :  { %8232 = vrcp.f32 %v3455_v1  ;;  %v3456_v14 = vadd.f32 1.0, %v8231_v49  ;;  %v3689_v19 = vpop.permute.xlu0 %3688 }
0x1fed   :  { %8234 = vrcp.f32 %v3456_v14  ;;  %v9617_v14 = vld [vmem:[%s10482_s8 + $0x8] sm:$0xff]  }
0x1fef   :  { %v9561_v43 = vpop.permute.xlu1 %3586 }
0x1ff3   :  { %v3477_v9 = vpop.permute.xlu1 %3476 }
0x1ff5   :  { %v9546_v12 = vpop.eup %8232 }
0x1ff6   :  { %v3469_v23 = vmul.f32 %v9546_v12, %v3464_v58  ;;  %v3570_v58 = vsub.f32 1.0, %v9546_v12 }
0x1ff7   :  { %v9548_v51 = vpop.eup %8234  ;;  %v3691_v29 = vpop.permute.xlu1 %3690 }
0x1ff8   :  { %v3470_v59 = vmul.f32 %v9548_v51, %v3466_v61 }
0x1ffa   :  { %v3471_v47 = vpack.c.bf16 %v3470_v59, %v3469_v23  ;;  %v3568_v23 = vmul.f32 %v9546_v12, %v9479_v5 }
0x1ffc   :  { %7631 = vmatmul.mubr.msk.bf16.vlgmr.msra.gmra.mrb[120].mxu0 %vm386_vm5, %v3471_v47  ;;  %v3571_v47 = vsub.f32 1.0, %v9548_v51 }
0x1ffd   :  { %7641 = vmatpush3.bf16.msra.mxu0 %v9416_v62  ;;  %7644 = vmatprep.mubr.msk.bf16.mxu0 %vm8423_vm3, %v8421_v0  ;;  %v8391_v62 = vld [vmem:[%s10479_s1] sm:$0xff]  }
0x1ffe   :  { %7642 = vmatprep.subr.bf16.mxu0 %v8421_v0 }
0x2001   :  { %7643 = vmatpush3.bf16.msra.mxu0 %v8390_v24 }
0x2002   :  { %7654 = vmatprep.subr.bf16.mxu0 %v8421_v0 }
0x2004   :  { %7645 = vmatmul.mubr.msk.bf16.vlgmr.msra.gmra.mrb[124].mxu0 %vm386_vm5, %v9561_v43 }
0x2005   :  { %7655 = vmatpush3.bf16.msra.mxu0 %v8391_v62  ;;  %7658 = vmatprep.mubr.msk.bf16.mxu0 %vm8423_vm3, %v8421_v0 }
0x2006   :  { %7656 = vmatprep.subr.bf16.mxu0 %v8421_v0 }
0x2009   :  { %7657 = vmatpush3.bf16.msra.mxu0 %v8392_v50  ;;  %v3569_v50 = vmul.f32 %v9548_v51, %v9481_v6 }
0x200a   :  { %7668 = vmatprep.subr.bf16.mxu0 %v8421_v0 }
0x20cf   :  { %v3517_v42 = vpop.f32.mrb[120].mxu0 }
0x20d0   :  { %v7632_v53 = vpop.f32.mrb[121].mxu0  ;;  %v3518_v36 = vadd.f32 %v3517_v42, %v3475_v39 }
0x20d1   :  { %v3520_v38 = vpop.f32.mrb[122].mxu0 }
0x20d2   :  { %v3521_v26 = vadd.f32 %v3520_v38, %v3477_v9  ;;  %v7633_v56 = vpop.f32.mrb[123].mxu0 }
0x20d4   :  { %v3524_v28 = vpack.c.bf16 %v3521_v26, %v3518_v36 }
0x20d6   :  { %7635 = vmatpush3.bf16.msra.mxu1 %v3524_v28 }
0x20d7   :  { %v3625_v60 = vpop.f32.mrb[124].mxu0  ;;  %7648 = vmatprep.subr.bf16.mxu1 %v8421_v0 }
0x20d8   :  { %v3626_v16 = vadd.f32 %v8701_v30, %v3625_v60  ;;  %v7646_v15 = vpop.f32.mrb[125].mxu0 }
0x20d9   :  { %7637 = vmatmul.mubr.msk.bf16.vlgmr.msra.gmra.mrb[120].mxu1 %vm437_vm4, %v9490_v4  ;;  %v3628_v3 = vpop.f32.mrb[126].mxu0 }
0x20da   :  { %v3629_v27 = vadd.f32 %v8705_v32, %v3628_v3  ;;  %v7647_v17 = vpop.f32.mrb[127].mxu0  ;;  %7650 = vmatprep.mubr.msk.bf16.mxu1 %vm8423_vm3, %v8421_v0  ;;  %v9659_v3 = vld [vmem:[%s10483_s30 + $0x8] sm:$0xff]  }
0x20db   :  { %v9667_v17 = vld [vmem:[%s10440_s9] sm:$0xff]  }
0x20dc   :  { %v3632_v7 = vpack.c.bf16 %v3629_v27, %v3626_v16  ;;  %v9649_v16 = vld [vmem:[%s10483_s30] sm:$0xff]  }
0x20de   :  { %7649 = vmatpush3.bf16.msra.mxu1 %v3632_v7  ;;  %v9676_v7 = vld [vmem:[%s10440_s9 + $0x8] sm:$0xff]  }
0x20df   :  { %7662 = vmatprep.subr.bf16.mxu1 %v8421_v0 }
0x20e1   :  { %7651 = vmatmul.mubr.msk.bf16.vlgmr.msra.gmra.mrb[124].mxu1 %vm437_vm4, %v9490_v4 }
0x20e2   :  { %7664 = vmatprep.mubr.msk.bf16.mxu1 %vm8423_vm3, %v8421_v0 }
0x21ac   :  { %v3559_v41 = vpop.f32.mrb[120].mxu1 }
0x21ad   :  { %v3560_v2 = vadd.f32 %v9314_v37, %v3559_v41  ;;  %v7638_v48 = vpop.f32.mrb[121].mxu1 }
0x21ae   :  { %v3562_v11 = vpop.f32.mrb[122].mxu1 }
0x21af   :  { %8236 = vtanh.f32 %v3560_v2  ;;  %v3563_v10 = vadd.f32 %v9314_v37, %v3562_v11  ;;  %v7639_v63 = vpop.f32.mrb[123].mxu1 }
0x21b1   :  { %8238 = vtanh.f32 %v3563_v10 }
0x21b4   :  { %v3667_v22 = vpop.f32.mrb[124].mxu1 }
0x21b5   :  { %v3668_v44 = vadd.f32 %v8393_v35, %v3667_v22  ;;  %v7652_v45 = vpop.f32.mrb[125].mxu1 }
0x21b6   :  { %v3670_v20 = vpop.f32.mrb[126].mxu1 }
0x21b7   :  { %v6818_v54 = vmul.f32 -1.442695, %v3668_v44  ;;  %v3671_v18 = vadd.f32 %v8393_v35, %v3670_v20  ;;  %v7653_v46 = vpop.f32.mrb[127].mxu1 }
0x21b9   :  { %v8237_v8 = vpop.eup %8236  ;;  %8240 = vpow2.f32 %v6818_v54  ;;  %v6819_v13 = vmul.f32 -1.442695, %v3671_v18 }
0x21ba   :  { %3574 = vrot.lane.b32.xlu0 %v8237_v8, %s10484_s2 }
0x21bb   :  { %v8239_v34 = vpop.eup %8238  ;;  %8242 = vpow2.f32 %v6819_v13  ;;  %v9692_v13 = vld [vmem:[%s10441_s10] ss:$0 sm:$0xff] }
0x21bc   :  { %3576 = vrot.lane.b32.xlu1 %v8239_v34, %s10484_s2 }
0x21be   :  { %3699 = vrot.lane.b32.xlu0 %v8701_v30, %s8425_s4 }
0x21c0   :  { %3701 = vrot.lane.b32.xlu1 %v8705_v32, %s8425_s4  ;;  %v9608_v32 = vld [vmem:[%s10482_s8] sm:$0xff]  }
0x21c3   :  { %v8241_v37 = vpop.eup %8240 }
0x21c4   :  { %v3680_v40 = vadd.f32 1.0, %v8241_v37 }
0x21c5   :  { %v8243_v21 = vpop.eup %8242 }
0x21c6   :  { %8244 = vrcp.f32 %v3680_v40  ;;  %v3681_v31 = vadd.f32 1.0, %v8243_v21 }
0x21c8   :  { %8246 = vrcp.f32 %v3681_v31 }
0x21d0   :  { %v9598_v33 = vpop.eup %8244 }
0x21d1   :  { %v3694_v1 = vmul.f32 %v9598_v33, %v3689_v19 }
0x21d2   :  { %v9600_v55 = vpop.eup %8246 }
0x21d3   :  { %v3695_v49 = vmul.f32 %v9600_v55, %v3691_v29 }
0x21d5   :  { %v3696_v30 = vpack.c.bf16 %v3695_v49, %v3694_v1 }
0x21d7   :  { %7659 = vmatmul.mubr.msk.bf16.vlgmr.msra.gmra.mrb[128].mxu0 %vm386_vm5, %v3696_v30 }
0x21d8   :  { %7669 = vmatpush3.bf16.msra.mxu0 %v9608_v32  ;;  %7672 = vmatprep.mubr.msk.bf16.mxu0 %vm8423_vm3, %v8421_v0 }
0x21d9   :  { %7670 = vmatprep.subr.bf16.mxu0 %v8421_v0 }
0x21dc   :  { %7671 = vmatpush3.bf16.msra.mxu0 %v9617_v14 }
0x21dd   :  { %7684 = vmatprep.subr.bf16.mxu0 %v8421_v0 }
0x21df   :  { %7673 = vmatmul.mubr.msk.bf16.vlgmr.msra.gmra.mrb[132].mxu0 %vm386_vm5, %v9561_v43 }
0x21e0   :  { %7686 = vmatprep.mubr.msk.bf16.mxu0 %vm8423_vm3, %v8421_v0 }
0x222c   :  { %v3575_v61 = vpop.permute.xlu0 %3574 }
0x222d   :  { %v3580_v59 = vmul.f32 %v3575_v61, %v3570_v58 }
0x222e   :  { %v3577_v24 = vpop.permute.xlu1 %3576 }
0x222f   :  { %v9629_v62 = vadd.f32 %v3580_v59, %v3568_v23  ;;  %v3581_v42 = vmul.f32 %v3577_v24, %v3571_v47 }
0x2230   :  { %v3700_v12 = vpop.permute.xlu0 %3699 }
0x2231   :  { %v9633_v43 = vadd.f32 %v3581_v42, %v3569_v50  ;;  %3954 = vrot.lane.b32.xlu1 %v9629_v62, %s8427_s28 }
0x2232   :  { %v3702_v9 = vpop.permute.xlu1 %3701 }
0x2233   :  { %v3850_v39 = vpack.c.bf16 %v9633_v43, %v9629_v62 }
0x2235   :  { %3852 = vrot.lane.b32.xlu0 %v3850_v39, %s8427_s28 }
0x2239   :  { %3956 = vrot.lane.b32.xlu0 %v9633_v43, %s8427_s28 }
0x22a3   :  { %v3955_v59 = vpop.permute.xlu1 %3954 }
0x22a7   :  { %v3853_v27 = vpop.permute.xlu0 %3852 }
0x22aa   :  { %v3742_v5 = vpop.f32.mrb[128].mxu0 }
0x22ab   :  { %v7660_v53 = vpop.f32.mrb[129].mxu0  ;;  %v3743_v6 = vadd.f32 %v3742_v5, %v3700_v12  ;;  %v3957_v47 = vpop.permute.xlu0 %3956 }
0x22ac   :  { %v3745_v38 = vpop.f32.mrb[130].mxu0 }
0x22ad   :  { %v3746_v51 = vadd.f32 %v3745_v38, %v3702_v9  ;;  %v7661_v36 = vpop.f32.mrb[131].mxu0 }
0x22af   :  { %v3749_v26 = vpack.c.bf16 %v3746_v51, %v3743_v6 }
0x22b1   :  { %7663 = vmatpush3.bf16.msra.mxu1 %v3749_v26 }
0x22b2   :  { %v3843_v56 = vpop.f32.mrb[132].mxu0  ;;  %7676 = vmatprep.subr.bf16.mxu1 %v8421_v0 }
0x22b3   :  { %3965 = vrot.lane.b32.xlu1 %v3843_v56, %s8425_s4  ;;  %v7674_v28 = vpop.f32.mrb[133].mxu0 }
0x22b4   :  { %7665 = vmatmul.mubr.msk.bf16.vlgmr.msra.gmra.mrb[128].mxu1 %vm437_vm4, %v9490_v4  ;;  %v3846_v60 = vpop.f32.mrb[134].mxu0 }
0x22b5   :  { %7677 = vmatpush3.bf16.msra.mxu1 %v9649_v16  ;;  %3967 = vrot.lane.b32.xlu0 %v3846_v60, %s8425_s4  ;;  %v7675_v15 = vpop.f32.mrb[135].mxu0 }
0x22b6   :  { %7678 = vmatprep.subr.bf16.mxu1 %v8421_v0  ;;  %7680 = vmatprep.mubr.msk.bf16.mxu1 %vm8423_vm3, %v8421_v0 }
0x22b9   :  { %7679 = vmatpush3.bf16.msra.mxu1 %v9659_v3 }
0x22ba   :  { %7690 = vmatprep.subr.bf16.mxu1 %v8421_v0 }
0x22bc   :  { %7681 = vmatmul.mubr.msk.bf16.vlgmr.msra.gmra.mrb[132].mxu1 %vm386_vm5, %v3853_v27 }
0x22bd   :  { %7691 = vmatpush3.bf16.msra.mxu1 %v9667_v17  ;;  %7694 = vmatprep.mubr.msk.bf16.mxu1 %vm8423_vm3, %v8421_v0 }
0x22be   :  { %7692 = vmatprep.subr.bf16.mxu1 %v8421_v0 }
0x22c1   :  { %7693 = vmatpush3.bf16.msra.mxu1 %v9676_v7 }
0x22c2   :  { %7704 = vmatprep.subr.bf16.mxu1 %v8421_v0 }
0x2325   :  { %v3966_v5 = vpop.permute.xlu1 %3965 }
0x2327   :  { %v3968_v53 = vpop.permute.xlu0 %3967 }
0x2387   :  { %v3784_v41 = vpop.f32.mrb[128].mxu1 }
0x2388   :  { %v3785_v2 = vadd.f32 %v9510_v57, %v3784_v41  ;;  %v7666_v48 = vpop.f32.mrb[129].mxu1  ;;  %v3795_v41 = vsub.f32 1.0, %v9598_v33 }
0x2389   :  { %v3787_v11 = vpop.f32.mrb[130].mxu1 }
0x238a   :  { %8248 = vtanh.f32 %v3785_v2  ;;  %v3788_v10 = vadd.f32 %v9510_v57, %v3787_v11  ;;  %v7667_v63 = vpop.f32.mrb[131].mxu1  ;;  %v3794_v11 = vmul.f32 %v9600_v55, %v9534_v25 }
0x238c   :  { %8250 = vtanh.f32 %v3788_v10  ;;  %v3793_v10 = vmul.f32 %v9598_v33, %v9530_v52 }
0x238f   :  { %v3891_v22 = vpop.f32.mrb[132].mxu1 }
0x2390   :  { %v3892_v35 = vadd.f32 %v3891_v22, %v3843_v56  ;;  %v7682_v44 = vpop.f32.mrb[133].mxu1 }
0x2391   :  { %v3894_v45 = vpop.f32.mrb[134].mxu1 }
0x2392   :  { %v3895_v20 = vadd.f32 %v3894_v45, %v3846_v60  ;;  %v7683_v54 = vpop.f32.mrb[135].mxu1 }
0x2394   :  { %v8249_v18 = vpop.eup %8248  ;;  %v3898_v46 = vpack.c.bf16 %v3895_v20, %v3892_v35 }
0x2395   :  { %3799 = vrot.lane.b32.xlu1 %v8249_v18, %s10484_s2 }
0x2396   :  { %v8251_v8 = vpop.eup %8250  ;;  %7685 = vmatpush3.bf16.msra.mxu0 %v3898_v46 }
0x2397   :  { %3801 = vrot.lane.b32.xlu0 %v8251_v8, %s10484_s2  ;;  %7698 = vmatprep.subr.bf16.mxu0 %v8421_v0 }
0x2399   :  { %7687 = vmatmul.mubr.msk.bf16.vlgmr.msra.gmra.mrb[136].mxu0 %vm437_vm4, %v9490_v4 }
0x239a   :  { %7700 = vmatprep.mubr.msk.bf16.mxu0 %vm8423_vm3, %v8421_v0 }
0x2407   :  { %v3800_v27 = vpop.permute.xlu1 %3799 }
0x2408   :  { %v3805_v48 = vmul.f32 %v3800_v27, %v3795_v41 }
0x2409   :  { %v3802_v15 = vpop.permute.xlu0 %3801 }
0x240a   :  { %v9730_v35 = vadd.f32 %v3805_v48, %v3793_v10 }
0x246c   :  { %v3933_v57 = vpop.f32.mrb[136].mxu0 }
0x246d   :  { %v3934_v34 = vadd.f32 %v9692_v13, %v3933_v57  ;;  %v7688_v37 = vpop.f32.mrb[137].mxu0 }
0x246e   :  { %v3936_v40 = vpop.f32.mrb[138].mxu0 }
0x246f   :  { %v6825_v21 = vmul.f32 -1.442695, %v3934_v34  ;;  %v3937_v31 = vadd.f32 %v9692_v13, %v3936_v40  ;;  %v7689_v19 = vpop.f32.mrb[139].mxu0 }
0x2471   :  { %8252 = vpow2.f32 %v6825_v21  ;;  %v6826_v29 = vmul.f32 -1.442695, %v3937_v31 }
0x2473   :  { %8254 = vpow2.f32 %v6826_v29 }
0x247b   :  { %v8253_v1 = vpop.eup %8252 }
0x247c   :  { %v3946_v49 = vadd.f32 1.0, %v8253_v1 }
0x247d   :  { %v8255_v30 = vpop.eup %8254 }
0x247e   :  { %8256 = vrcp.f32 %v3946_v49  ;;  %v3947_v58 = vadd.f32 1.0, %v8255_v30 }
0x2480   :  { %8258 = vrcp.f32 %v3947_v58 }
0x2488   :  { %v8257_v61 = vpop.eup %8256 }
0x2489   :  { %v3960_v24 = vmul.f32 %v8257_v61, %v3955_v59  ;;  %v4061_v20 = vsub.f32 1.0, %v8257_v61 }
0x248a   :  { %v9696_v23 = vpop.eup %8258 }
0x248b   :  { %v3961_v50 = vmul.f32 %v9696_v23, %v3957_v47  ;;  %v4062_v33 = vsub.f32 1.0, %v9696_v23  ;;  %v4060_v46 = vmul.f32 %v9696_v23, %v9633_v43 }
0x248d   :  { %v3962_v42 = vpack.c.bf16 %v3961_v50, %v3960_v24 }
0x248f   :  { %7695 = vmatmul.mubr.msk.bf16.vlgmr.msra.gmra.mrb[136].mxu1 %vm386_vm5, %v3962_v42 }
0x2490   :  { %7705 = vmatpush3.bf16.msra.mxu1 %v9608_v32  ;;  %7708 = vmatprep.mubr.msk.bf16.mxu1 %vm8423_vm3, %v8421_v0 }
0x2491   :  { %7706 = vmatprep.subr.bf16.mxu1 %v8421_v0 }
0x2494   :  { %7707 = vmatpush3.bf16.msra.mxu1 %v9617_v14  ;;  %v9718_v14 = vld [vmem:[%s10442_s11] ss:$0 sm:$0xff] }
0x2495   :  { %7720 = vmatprep.subr.bf16.mxu1 %v8421_v0 }
0x2562   :  { %v4008_v39 = vpop.f32.mrb[136].mxu1 }
0x2563   :  { %v7696_v12 = vpop.f32.mrb[137].mxu1  ;;  %v4009_v38 = vadd.f32 %v4008_v39, %v3966_v5 }
0x2564   :  { %v4011_v9 = vpop.f32.mrb[138].mxu1 }
0x2565   :  { %v4012_v6 = vadd.f32 %v4011_v9, %v3968_v53  ;;  %v7697_v51 = vpop.f32.mrb[139].mxu1 }
0x2567   :  { %v4015_v36 = vpack.c.bf16 %v4012_v6, %v4009_v38 }
0x2569   :  { %7699 = vmatpush3.bf16.msra.mxu0 %v4015_v36 }
0x256a   :  { %7712 = vmatprep.subr.bf16.mxu0 %v8421_v0 }
0x256c   :  { %7701 = vmatmul.mubr.msk.bf16.vlgmr.msra.gmra.mrb[140].mxu0 %vm437_vm4, %v9490_v4 }
0x256d   :  { %7713 = vmatpush3.bf16.msra.mxu0 %v9649_v16  ;;  %7716 = vmatprep.mubr.msk.bf16.mxu0 %vm8423_vm3, %v8421_v0 }
0x256e   :  { %7714 = vmatprep.subr.bf16.mxu0 %v8421_v0 }
0x2571   :  { %7715 = vmatpush3.bf16.msra.mxu0 %v9659_v3  ;;  %v3796_v3 = vsub.f32 1.0, %v9600_v55  ;;  %v4059_v55 = vmul.f32 %v8257_v61, %v9629_v62 }
0x2572   :  { %7726 = vmatprep.subr.bf16.mxu0 %v8421_v0 }
0x2573   :  { %v3806_v2 = vmul.f32 %v3802_v15, %v3796_v3 }
0x2575   :  { %v9728_v63 = vadd.f32 %v3806_v2, %v3794_v11 }
0x2577   :  { %v4075_v45 = vpack.c.bf16 %v9728_v63, %v9730_v35 }
0x263f   :  { %v4050_v32 = vpop.f32.mrb[140].mxu0 }
0x2640   :  { %v4051_v26 = vadd.f32 %v9718_v14, %v4050_v32  ;;  %v7702_v56 = vpop.f32.mrb[141].mxu0  ;;  %v9787_v32 = vld [vmem:[%s10443_s13] sm:$0xff]  }
0x2641   :  { %v4053_v28 = vpop.f32.mrb[142].mxu0  ;;  %v9794_v56 = vld [vmem:[%s10443_s13 + $0x8] sm:$0xff]  }
0x2642   :  { %8260 = vtanh.f32 %v4051_v26  ;;  %v4054_v60 = vadd.f32 %v9718_v14, %v4053_v28  ;;  %v7703_v16 = vpop.f32.mrb[143].mxu0 }
0x2644   :  { %8262 = vtanh.f32 %v4054_v60 }
0x264c   :  { %v8261_v22 = vpop.eup %8260 }
0x264d   :  { %4065 = vrot.lane.b32.xlu1 %v8261_v22, %s10484_s2 }
0x264e   :  { %v8263_v44 = vpop.eup %8262 }
0x264f   :  { %4067 = vrot.lane.b32.xlu0 %v8263_v44, %s10484_s2 }
0x2651   :  { %4077 = vrot.lane.b32.xlu1 %v4075_v45, %s8427_s28 }
0x26bf   :  { %v4066_v25 = vpop.permute.xlu1 %4065 }
0x26c0   :  { %v4071_v52 = vmul.f32 %v4066_v25, %v4061_v20  ;;  %v9818_v20 = vld [vmem:[%s10444_s14] sm:$0xff]   ;;  %v9824_v25 = vld [vmem:[%s10444_s14 + $0x8] sm:$0xff]  }
0x26c1   :  { %v4068_v54 = vpop.permute.xlu0 %4067 }
0x26c2   :  { %v9739_v18 = vadd.f32 %v4071_v52, %v4059_v55  ;;  %v4072_v8 = vmul.f32 %v4068_v54, %v4062_v33 }
0x26c3   :  { %v9743_v57 = vpop.permute.xlu1 %4077 }
0x26c4   :  { %v9745_v34 = vadd.f32 %v4072_v8, %v4060_v46  ;;  %4227 = vrot.lane.b32.xlu1 %v9739_v18, %s8427_s28  ;;  %7709 = vmatmul.mubr.msk.bf16.vlgmr.msra.gmra.mrb[140].mxu1 %vm386_vm5, %v9743_v57 }
0x26c5   :  { %7722 = vmatprep.mubr.msk.bf16.mxu1 %vm8423_vm3, %v8421_v0 }
0x26c6   :  { %v4123_v62 = vpack.c.bf16 %v9745_v34, %v9739_v18 }
0x26c8   :  { %4125 = vrot.lane.b32.xlu0 %v4123_v62, %s8427_s28 }
0x26cc   :  { %4229 = vrot.lane.b32.xlu0 %v9745_v34, %s8427_s28 }
0x2736   :  { %v4228_v6 = vpop.permute.xlu1 %4227 }
0x273a   :  { %v4126_v43 = vpop.permute.xlu0 %4125 }
0x273b   :  { %7717 = vmatmul.mubr.msk.bf16.vlgmr.msra.gmra.mrb[144].mxu0 %vm386_vm5, %v4126_v43 }
0x273c   :  { %7727 = vmatpush3.bf16.msra.mxu0 %v9667_v17  ;;  %7730 = vmatprep.mubr.msk.bf16.mxu0 %vm8423_vm3, %v8421_v0 }
0x273d   :  { %7728 = vmatprep.subr.bf16.mxu0 %v8421_v0 }
0x273e   :  { %v4230_v51 = vpop.permute.xlu0 %4229 }
0x2740   :  { %7729 = vmatpush3.bf16.msra.mxu0 %v9676_v7 }
0x2741   :  { %7740 = vmatprep.subr.bf16.mxu0 %v8421_v0 }
0x2797   :  { %v4116_v37 = vpop.f32.mrb[140].mxu1 }
0x2798   :  { %4238 = vrot.lane.b32.xlu1 %v4116_v37, %s8425_s4  ;;  %v7710_v40 = vpop.f32.mrb[141].mxu1 }
0x2799   :  { %v4119_v21 = vpop.f32.mrb[142].mxu1 }
0x279a   :  { %4240 = vrot.lane.b32.xlu0 %v4119_v21, %s8425_s4  ;;  %v7711_v31 = vpop.f32.mrb[143].mxu1 }
0x279c   :  { %4457 = vrot.lane.b32.xlu1 %v9730_v35, %s8427_s28 }
0x279e   :  { %4459 = vrot.lane.b32.xlu0 %v9728_v63, %s8427_s28 }
0x280a   :  { %v4239_v60 = vpop.permute.xlu1 %4238 }
0x280c   :  { %v4241_v15 = vpop.permute.xlu0 %4240 }
0x280e   :  { %v4164_v17 = vpop.f32.mrb[144].mxu0 }
0x280f   :  { %v4165_v19 = vadd.f32 %v4164_v17, %v4116_v37  ;;  %v7718_v29 = vpop.f32.mrb[145].mxu0 }
0x2810   :  { %v4167_v7 = vpop.f32.mrb[146].mxu0 }
0x2811   :  { %v4168_v1 = vadd.f32 %v4167_v7, %v4119_v21  ;;  %v7719_v49 = vpop.f32.mrb[147].mxu0 }
0x2813   :  { %v4171_v30 = vpack.c.bf16 %v4168_v1, %v4165_v19 }
0x2815   :  { %7721 = vmatpush3.bf16.msra.mxu1 %v4171_v30 }
0x2816   :  { %7734 = vmatprep.subr.bf16.mxu1 %v8421_v0 }
0x2818   :  { %7723 = vmatmul.mubr.msk.bf16.vlgmr.msra.gmra.mrb[144].mxu1 %vm437_vm4, %v9490_v4 }
0x2819   :  { %7736 = vmatprep.mubr.msk.bf16.mxu1 %vm8423_vm3, %v8421_v0 }
0x28eb   :  { %v4206_v58 = vpop.f32.mrb[144].mxu1 }
0x28ec   :  { %v4207_v61 = vadd.f32 %v9692_v13, %v4206_v58  ;;  %v7724_v23 = vpop.f32.mrb[145].mxu1 }
0x28ed   :  { %v4209_v59 = vpop.f32.mrb[146].mxu1  ;;  %v4458_v23 = vpop.permute.xlu1 %4457 }
0x28ee   :  { %v6832_v47 = vmul.f32 -1.442695, %v4207_v61  ;;  %v4210_v24 = vadd.f32 %v9692_v13, %v4209_v59  ;;  %v7725_v50 = vpop.f32.mrb[147].mxu1  ;;  %v4460_v59 = vpop.permute.xlu0 %4459 }
0x28f0   :  { %8264 = vpow2.f32 %v6832_v47  ;;  %v6833_v42 = vmul.f32 -1.442695, %v4210_v24 }
0x28f2   :  { %8266 = vpow2.f32 %v6833_v42 }
0x28fa   :  { %v8265_v39 = vpop.eup %8264 }
0x28fb   :  { %v4219_v5 = vadd.f32 1.0, %v8265_v39 }
0x28fc   :  { %v8267_v12 = vpop.eup %8266 }
0x28fd   :  { %8268 = vrcp.f32 %v4219_v5  ;;  %v4220_v53 = vadd.f32 1.0, %v8267_v12 }
0x28ff   :  { %8270 = vrcp.f32 %v4220_v53 }
0x2907   :  { %v9778_v9 = vpop.eup %8268 }
0x2908   :  { %v4233_v36 = vmul.f32 %v9778_v9, %v4228_v6  ;;  %v9857_v6 = vld [vmem:[%s10446_s18] sm:$0xff]  }
0x2909   :  { %v9780_v38 = vpop.eup %8270 }
0x290a   :  { %v4234_v13 = vmul.f32 %v9780_v38, %v4230_v51  ;;  %v9864_v51 = vld [vmem:[%s10447_s16] ss:$0 sm:$0xff] }
0x290c   :  { %v4235_v26 = vpack.c.bf16 %v4234_v13, %v4233_v36 }
0x290e   :  { %7731 = vmatmul.mubr.msk.bf16.vlgmr.msra.gmra.mrb[148].mxu0 %vm386_vm5, %v4235_v26 }
0x290f   :  { %7741 = vmatpush3.bf16.msra.mxu0 %v9787_v32  ;;  %7744 = vmatprep.mubr.msk.bf16.mxu0 %vm8423_vm3, %v8421_v0 }
0x2910   :  { %7742 = vmatprep.subr.bf16.mxu0 %v8421_v0 }
0x2913   :  { %7743 = vmatpush3.bf16.msra.mxu0 %v9794_v56 }
0x2914   :  { %7754 = vmatprep.subr.bf16.mxu0 %v8421_v0 }
0x2916   :  { %7745 = vmatmul.mubr.msk.bf16.vlgmr.msra.gmra.mrb[152].mxu0 %vm386_vm5, %v9743_v57  ;;  %v9834_v57 = vld [vmem:[%s10445_s15] ss:$0 sm:$0xff] }
0x2917   :  { %7758 = vmatprep.mubr.msk.bf16.mxu0 %vm8423_vm3, %v8421_v0  ;;  %7755 = vmatpush3.bf16.msra.mxu0 %v9818_v20 }
0x2918   :  { %7756 = vmatprep.subr.bf16.mxu0 %v8421_v0 }
0x291b   :  { %7757 = vmatpush3.bf16.msra.mxu0 %v9824_v25 }
0x291c   :  { %7768 = vmatprep.subr.bf16.mxu0 %v8421_v0 }
0x29e1   :  { %v4281_v28 = vpop.f32.mrb[148].mxu0 }
0x29e2   :  { %v7732_v16 = vpop.f32.mrb[149].mxu0  ;;  %v4282_v27 = vadd.f32 %v4281_v28, %v4239_v60  ;;  %v9870_v28 = vld [vmem:[%s10446_s18 + $0x8] sm:$0xff]  }
0x29e3   :  { %v4284_v3 = vpop.f32.mrb[150].mxu0 }
0x29e4   :  { %v4285_v41 = vadd.f32 %v4284_v3, %v4241_v15  ;;  %v7733_v2 = vpop.f32.mrb[151].mxu0  ;;  %v4335_v3 = vsub.f32 1.0, %v9780_v38 }
0x29e6   :  { %v4288_v48 = vpack.c.bf16 %v4285_v41, %v4282_v27  ;;  %v4334_v41 = vsub.f32 1.0, %v9778_v9 }
0x29e8   :  { %7735 = vmatpush3.bf16.msra.mxu1 %v4288_v48 }
0x29e9   :  { %v4394_v11 = vpop.f32.mrb[152].mxu0  ;;  %7748 = vmatprep.subr.bf16.mxu1 %v8421_v0 }
0x29ea   :  { %v7746_v10 = vpop.f32.mrb[153].mxu0 }
0x29eb   :  { %7737 = vmatmul.mubr.msk.bf16.vlgmr.msra.gmra.mrb[148].mxu1 %vm437_vm4, %v9490_v4  ;;  %v4397_v22 = vpop.f32.mrb[154].mxu0 }
0x29ec   :  { %v4401_v44 = vpack.c.bf16 %v4397_v22, %v4394_v11  ;;  %v7747_v45 = vpop.f32.mrb[155].mxu0  ;;  %7750 = vmatprep.mubr.msk.bf16.mxu1 %vm8423_vm3, %v8421_v0  ;;  %v4333_v11 = vmul.f32 %v9780_v38, %v9745_v34  ;;  %v4332_v22 = vmul.f32 %v9778_v9, %v9739_v18  ;;  %v9896_v18 = vld [vmem:[%s10448_s17 + $0x8] sm:$0xff]  }
0x29ed   :  { %v9887_v45 = vld [vmem:[%s10448_s17] sm:$0xff]  }
0x29ee   :  { %7749 = vmatpush3.bf16.msra.mxu1 %v4401_v44 }
0x29ef   :  { %7762 = vmatprep.subr.bf16.mxu1 %v8421_v0 }
0x29f3   :  { %7751 = vmatmul.mubr.msk.bf16.vlgmr.msra.gmra.mrb[152].mxu1 %vm437_vm4, %v9490_v4 }
0x29f4   :  { %7764 = vmatprep.mubr.msk.bf16.mxu1 %vm8423_vm3, %v8421_v0 }
0x2abe   :  { %v4323_v55 = vpop.f32.mrb[148].mxu1 }
0x2abf   :  { %v4324_v52 = vadd.f32 %v9718_v14, %v4323_v55  ;;  %v7738_v33 = vpop.f32.mrb[149].mxu1 }
0x2ac0   :  { %v4326_v54 = vpop.f32.mrb[150].mxu1 }
0x2ac1   :  { %8272 = vtanh.f32 %v4324_v52  ;;  %v4327_v46 = vadd.f32 %v9718_v14, %v4326_v54  ;;  %v7739_v8 = vpop.f32.mrb[151].mxu1 }
0x2ac3   :  { %8274 = vtanh.f32 %v4327_v46 }
0x2ac6   :  { %v4436_v62 = vpop.f32.mrb[152].mxu1 }
0x2ac7   :  { %v4437_v43 = vadd.f32 %v9834_v57, %v4436_v62  ;;  %v7752_v37 = vpop.f32.mrb[153].mxu1 }
0x2ac8   :  { %v4439_v40 = vpop.f32.mrb[154].mxu1 }
0x2ac9   :  { %v6840_v21 = vmul.f32 -1.442695, %v4437_v43  ;;  %v4440_v31 = vadd.f32 %v9834_v57, %v4439_v40  ;;  %v7753_v17 = vpop.f32.mrb[155].mxu1 }
0x2acb   :  { %v8273_v19 = vpop.eup %8272  ;;  %8276 = vpow2.f32 %v6840_v21  ;;  %v6841_v29 = vmul.f32 -1.442695, %v4440_v31 }
0x2acc   :  { %4338 = vrot.lane.b32.xlu1 %v8273_v19, %s10484_s2 }
0x2acd   :  { %v8275_v14 = vpop.eup %8274  ;;  %8278 = vpow2.f32 %v6841_v29 }
0x2ace   :  { %4340 = vrot.lane.b32.xlu0 %v8275_v14, %s10484_s2 }
0x2ad5   :  { %v8277_v7 = vpop.eup %8276 }
0x2ad6   :  { %v4449_v1 = vadd.f32 1.0, %v8277_v7 }
0x2ad7   :  { %v8279_v49 = vpop.eup %8278 }
0x2ad8   :  { %8280 = vrcp.f32 %v4449_v1  ;;  %v4450_v30 = vadd.f32 1.0, %v8279_v49 }
0x2ada   :  { %8282 = vrcp.f32 %v4450_v30 }
0x2ae2   :  { %v9840_v58 = vpop.eup %8280 }
0x2ae3   :  { %v4463_v47 = vmul.f32 %v9840_v58, %v4458_v23  ;;  %v4568_v9 = vsub.f32 1.0, %v9840_v58  ;;  %v4566_v8 = vmul.f32 %v9840_v58, %v9730_v35  ;;  %v9936_v23 = vld [vmem:[%s10478_s26] sm:$0xff]  }
0x2ae4   :  { %v9842_v61 = vpop.eup %8282 }
0x2ae5   :  { %v4464_v24 = vmul.f32 %v9842_v61, %v4460_v59  ;;  %v4569_v54 = vsub.f32 1.0, %v9842_v61  ;;  %v4567_v62 = vmul.f32 %v9842_v61, %v9728_v63  ;;  %v9945_v59 = vld [vmem:[%s10449_s19] sm:$0xff]  }
0x2ae7   :  { %v4465_v50 = vpack.c.bf16 %v4464_v24, %v4463_v47  ;;  %v9951_v47 = vld [vmem:[%s10449_s19 + $0x8] sm:$0xff]   ;;  %v9959_v24 = vld [vmem:[%s10450_s20] ss:$0 sm:$0xff] }
0x2ae9   :  { %7759 = vmatmul.mubr.msk.bf16.vlgmr.msra.gmra.mrb[156].mxu0 %vm386_vm5, %v4465_v50 }
0x2aea   :  { %7772 = vmatprep.mubr.msk.bf16.mxu0 %vm8423_vm3, %v8421_v0  ;;  %7769 = vmatpush3.bf16.msra.mxu0 %v9887_v45 }
0x2aeb   :  { %7770 = vmatprep.subr.bf16.mxu0 %v8421_v0 }
0x2aee   :  { %7771 = vmatpush3.bf16.msra.mxu0 %v9896_v18 }
0x2aef   :  { %7784 = vmatprep.subr.bf16.mxu0 %v8421_v0 }
0x2b3e   :  { %v4339_v27 = vpop.permute.xlu1 %4338 }
0x2b3f   :  { %v4344_v48 = vmul.f32 %v4339_v27, %v4334_v41 }
0x2b40   :  { %v4341_v15 = vpop.permute.xlu0 %4340 }
0x2b41   :  { %v4345_v2 = vmul.f32 %v4341_v15, %v4335_v3  ;;  %v9889_v52 = vadd.f32 %v4344_v48, %v4332_v22 }
0x2b43   :  { %v9881_v44 = vadd.f32 %v4345_v2, %v4333_v11 }
0x2b45   :  { %v4642_v34 = vpack.c.bf16 %v9881_v44, %v9889_v52 }
0x2bbc   :  { %v4515_v42 = vpop.f32.mrb[156].mxu0 }
0x2bbd   :  { %v7760_v39 = vpop.f32.mrb[157].mxu0 }
0x2bbe   :  { %v4518_v5 = vpop.f32.mrb[158].mxu0 }
0x2bbf   :  { %v4522_v12 = vpack.c.bf16 %v4518_v5, %v4515_v42  ;;  %v7761_v53 = vpop.f32.mrb[159].mxu0 }
0x2bc1   :  { %7763 = vmatpush3.bf16.msra.mxu1 %v4522_v12 }
0x2bc2   :  { %7776 = vmatprep.subr.bf16.mxu1 %v8421_v0 }
0x2bc4   :  { %7765 = vmatmul.mubr.msk.bf16.vlgmr.msra.gmra.mrb[156].mxu1 %vm437_vm4, %v9490_v4 }
0x2bc5   :  { %7780 = vmatprep.mubr.msk.bf16.mxu1 %vm8423_vm3, %v8421_v0  ;;  %7777 = vmatpush3.bf16.msra.mxu1 %v9857_v6 }
0x2bc6   :  { %7778 = vmatprep.subr.bf16.mxu1 %v8421_v0 }
0x2bc9   :  { %7779 = vmatpush3.bf16.msra.mxu1 %v9870_v28 }
0x2bca   :  { %7790 = vmatprep.subr.bf16.mxu1 %v8421_v0 }
0x2c97   :  { %v4557_v36 = vpop.f32.mrb[156].mxu1 }
0x2c98   :  { %v4558_v4 = vadd.f32 %v9864_v51, %v4557_v36  ;;  %v7766_v13 = vpop.f32.mrb[157].mxu1 }
0x2c99   :  { %v4560_v26 = vpop.f32.mrb[158].mxu1 }
0x2c9a   :  { %8284 = vtanh.f32 %v4558_v4  ;;  %v4561_v60 = vadd.f32 %v9864_v51, %v4560_v26  ;;  %v7767_v16 = vpop.f32.mrb[159].mxu1 }
0x2c9c   :  { %8286 = vtanh.f32 %v4561_v60 }
0x2ca4   :  { %v8285_v10 = vpop.eup %8284 }
0x2ca5   :  { %4572 = vrot.lane.b32.xlu1 %v8285_v10, %s10484_s2 }
0x2ca6   :  { %v8287_v55 = vpop.eup %8286 }
0x2ca7   :  { %4574 = vrot.lane.b32.xlu0 %v8287_v55, %s10484_s2 }
0x2cab   :  { %4644 = vrot.lane.b32.xlu0 %v4642_v34, %s8427_s28 }
0x2caf   :  { %4760 = vrot.lane.b32.xlu0 %v9881_v44, %s8427_s28 }
0x2d17   :  { %v4573_v38 = vpop.permute.xlu1 %4572 }
0x2d18   :  { %v4578_v33 = vmul.f32 %v4573_v38, %v4568_v9 }
0x2d19   :  { %v4575_v46 = vpop.permute.xlu0 %4574 }
0x2d1a   :  { %v4579_v43 = vmul.f32 %v4575_v46, %v4569_v54  ;;  %v9912_v37 = vadd.f32 %v4578_v33, %v4566_v8  ;;  %v9974_v8 = vld [vmem:[%s10451_s21] ss:$0 sm:$0xff] }
0x2d1c   :  { %v9914_v40 = vadd.f32 %v4579_v43, %v4567_v62 }
0x2d1d   :  { %v4645_v21 = vpop.permute.xlu0 %4644 }
0x2d1e   :  { %v4582_v31 = vpack.c.bf16 %v9914_v40, %v9912_v37  ;;  %7781 = vmatmul.mubr.msk.bf16.vlgmr.msra.gmra.mrb[160].mxu1 %vm386_vm5, %v4645_v21 }
0x2d1f   :  { %7794 = vmatprep.mubr.msk.bf16.mxu1 %vm8423_vm3, %v8421_v0  ;;  %7791 = vmatpush3.bf16.msra.mxu1 %v9945_v59 }
0x2d20   :  { %4584 = vrot.lane.b32.xlu1 %v4582_v31, %s8427_s28  ;;  %7792 = vmatprep.subr.bf16.mxu1 %v8421_v0 }
0x2d21   :  { %v4761_v27 = vpop.permute.xlu0 %4760 }
0x2d23   :  { %7793 = vmatpush3.bf16.msra.mxu1 %v9951_v47 }
0x2d24   :  { %4758 = vrot.lane.b32.xlu1 %v9889_v52, %s8427_s28  ;;  %7804 = vmatprep.subr.bf16.mxu1 %v8421_v0 }
0x2d92   :  { %v9924_v63 = vpop.permute.xlu1 %4584 }
0x2d93   :  { %7773 = vmatmul.mubr.msk.bf16.vlgmr.msra.gmra.mrb[160].mxu0 %vm386_vm5, %v9924_v63 }
0x2d94   :  { %7786 = vmatprep.mubr.msk.bf16.mxu0 %vm8423_vm3, %v8421_v0 }
0x2d96   :  { %v4759_v41 = vpop.permute.xlu1 %4758 }
0x2df1   :  { %v4695_v35 = vpop.f32.mrb[160].mxu1 }
0x2df2   :  { %v7782_v17 = vpop.f32.mrb[161].mxu1 }
0x2df3   :  { %v4698_v19 = vpop.f32.mrb[162].mxu1 }
0x2df4   :  { %v7783_v29 = vpop.f32.mrb[163].mxu1 }
0x2df5   :  { %v9982_v29 = vld [vmem:[%s10452_s22] sm:$0xff]  }
0x2e66   :  { %v4635_v14 = vpop.f32.mrb[160].mxu0 }
0x2e67   :  { %v4696_v7 = vadd.f32 %v4695_v35, %v4635_v14  ;;  %4781 = vrot.lane.b32.xlu1 %v4635_v14, %s8425_s4  ;;  %v7774_v1 = vpop.f32.mrb[161].mxu0 }
0x2e68   :  { %v4638_v49 = vpop.f32.mrb[162].mxu0 }
0x2e69   :  { %v4699_v30 = vadd.f32 %v4698_v19, %v4638_v49  ;;  %4783 = vrot.lane.b32.xlu0 %v4638_v49, %s8425_s4  ;;  %v7775_v58 = vpop.f32.mrb[163].mxu0 }
0x2e6b   :  { %v4702_v61 = vpack.c.bf16 %v4699_v30, %v4696_v7  ;;  %v9989_v7 = vld [vmem:[%s10452_s22 + $0x8] sm:$0xff]  }
0x2e6d   :  { %7785 = vmatpush3.bf16.msra.mxu0 %v4702_v61 }
0x2e6e   :  { %7798 = vmatprep.subr.bf16.mxu0 %v8421_v0 }
0x2e70   :  { %7787 = vmatmul.mubr.msk.bf16.vlgmr.msra.gmra.mrb[164].mxu0 %vm437_vm4, %v9936_v23 }
0x2e71   :  { %7800 = vmatprep.mubr.msk.bf16.mxu0 %vm8423_vm3, %v8421_v0 }
0x2ed9   :  { %v4782_v22 = vpop.permute.xlu1 %4781 }
0x2edb   :  { %v4784_v34 = vpop.permute.xlu0 %4783 }
0x2f43   :  { %v4737_v50 = vpop.f32.mrb[164].mxu0 }
0x2f44   :  { %v4738_v42 = vadd.f32 %v9959_v24, %v4737_v50  ;;  %v7788_v39 = vpop.f32.mrb[165].mxu0 }
0x2f45   :  { %v4740_v5 = vpop.f32.mrb[166].mxu0 }
0x2f46   :  { %v6853_v12 = vmul.f32 -1.442695, %v4738_v42  ;;  %v4741_v53 = vadd.f32 %v9959_v24, %v4740_v5  ;;  %v7789_v36 = vpop.f32.mrb[167].mxu0 }
0x2f48   :  { %8288 = vpow2.f32 %v6853_v12  ;;  %v6854_v4 = vmul.f32 -1.442695, %v4741_v53 }
0x2f4a   :  { %8290 = vpow2.f32 %v6854_v4 }
0x2f52   :  { %v8289_v13 = vpop.eup %8288 }
0x2f53   :  { %v4750_v26 = vadd.f32 1.0, %v8289_v13 }
0x2f54   :  { %v8291_v60 = vpop.eup %8290 }
0x2f55   :  { %8292 = vrcp.f32 %v4750_v26  ;;  %v4751_v16 = vadd.f32 1.0, %v8291_v60 }
0x2f57   :  { %8294 = vrcp.f32 %v4751_v16 }
0x2f5f   :  { %v8293_v15 = vpop.eup %8292 }
0x2f60   :  { %v4764_v2 = vmul.f32 %v8293_v15, %v4759_v41  ;;  %v4877_v1 = vsub.f32 1.0, %v8293_v15  ;;  %v4875_v50 = vmul.f32 %v8293_v15, %v9889_v52 }
0x2f61   :  { %v8295_v3 = vpop.eup %8294 }
0x2f62   :  { %v4765_v48 = vmul.f32 %v8295_v3, %v4761_v27  ;;  %v4878_v58 = vsub.f32 1.0, %v8295_v3  ;;  %v4876_v42 = vmul.f32 %v8295_v3, %v9881_v44  ;;  %v129_v44 = vld [vmem:[%s10453_s12] sm:$0x1] }
0x2f63   :  { %v10029_v52 = vsel %vm270_vm0, %v129_v44, 0 }
0x2f64   :  { %v4766_v11 = vpack.c.bf16 %v4765_v48, %v4764_v2 }
0x2f66   :  { %7795 = vmatmul.mubr.msk.bf16.vlgmr.msra.gmra.mrb[164].mxu1 %vm386_vm5, %v4766_v11 }
0x2f67   :  { %7808 = vmatprep.mubr.msk.bf16.mxu1 %vm8423_vm3, %v8421_v0  ;;  %7805 = vmatpush3.bf16.msra.mxu1 %v9982_v29 }
0x2f68   :  { %7806 = vmatprep.subr.bf16.mxu1 %v8421_v0 }
0x2f6b   :  { %7807 = vmatpush3.bf16.msra.mxu1 %v9989_v7 }
0x2f6c   :  { %7818 = vmatprep.subr.bf16.mxu1 %v8421_v0 }
0x3039   :  { %v4824_v10 = vpop.f32.mrb[164].mxu1 }
0x303a   :  { %v7796_v55 = vpop.f32.mrb[165].mxu1  ;;  %v4825_v38 = vadd.f32 %v4824_v10, %v4782_v22 }
0x303b   :  { %v4827_v9 = vpop.f32.mrb[166].mxu1 }
0x303c   :  { %v4828_v33 = vadd.f32 %v4827_v9, %v4784_v34  ;;  %v7797_v54 = vpop.f32.mrb[167].mxu1 }
0x303e   :  { %v4831_v46 = vpack.c.bf16 %v4828_v33, %v4825_v38 }
0x3040   :  { %7799 = vmatpush3.bf16.msra.mxu0 %v4831_v46 }
0x3041   :  { %7812 = vmatprep.subr.bf16.mxu0 %v8421_v0 }
0x3043   :  { %7801 = vmatmul.mubr.msk.bf16.vlgmr.msra.gmra.mrb[168].mxu0 %vm437_vm4, %v9936_v23 }
0x3044   :  { %7814 = vmatprep.mubr.msk.bf16.mxu0 %vm8423_vm3, %v8421_v0  ;;  %7813 = vmatpush3.bf16.msra.mxu0 %v10029_v52 }
0x3045   :  { %7826 = vmatprep.subr.bf16.mxu0 %v8421_v0 }
0x3116   :  { %v4866_v62 = vpop.f32.mrb[168].mxu0 }
0x3117   :  { %v4867_v43 = vadd.f32 %v9974_v8, %v4866_v62  ;;  %v7802_v21 = vpop.f32.mrb[169].mxu0 }
0x3118   :  { %v4869_v31 = vpop.f32.mrb[170].mxu0 }
0x3119   :  { %8296 = vtanh.f32 %v4867_v43  ;;  %v4870_v35 = vadd.f32 %v9974_v8, %v4869_v31  ;;  %v7803_v17 = vpop.f32.mrb[171].mxu0 }
0x311b   :  { %8298 = vtanh.f32 %v4870_v35 }
0x3123   :  { %v8297_v19 = vpop.eup %8296 }
0x3124   :  { %4881 = vrot.lane.b32.xlu1 %v8297_v19, %s10484_s2 }
0x3125   :  { %v8299_v14 = vpop.eup %8298 }
0x3126   :  { %4883 = vrot.lane.b32.xlu0 %v8299_v14, %s10484_s2 }
0x312a   :  { %5097 = vrot.lane.b32.xlu0 %v9912_v37, %s8427_s28 }
0x3196   :  { %v4882_v49 = vpop.permute.xlu1 %4881 }
0x3197   :  { %v4887_v30 = vmul.f32 %v4882_v49, %v4877_v1 }
0x3198   :  { %v4884_v61 = vpop.permute.xlu0 %4883 }
0x3199   :  { %v4888_v39 = vmul.f32 %v4884_v61, %v4878_v58  ;;  %v9998_v5 = vadd.f32 %v4887_v30, %v4875_v50 }
0x319b   :  { %v10000_v12 = vadd.f32 %v4888_v39, %v4876_v42 }
0x319c   :  { %v5098_v58 = vpop.permute.xlu0 %5097 }
0x319d   :  { %v4891_v53 = vpack.c.bf16 %v10000_v12, %v9998_v5 }
0x319f   :  { %4893 = vrot.lane.b32.xlu1 %v4891_v53, %s8427_s28 }
0x31a3   :  { %5099 = vrot.lane.b32.xlu1 %v9914_v40, %s8427_s28 }
0x3211   :  { %v10007_v36 = vpop.permute.xlu1 %4893 }
0x3212   :  { %7809 = vmatmul.mubr.msk.bf16.vlgmr.msra.gmra.mrb[168].mxu1 %vm386_vm5, %v10007_v36 }
0x3213   :  { %7819 = vmatpush3.bf16.msra.mxu1 %v9787_v32  ;;  %7822 = vmatprep.mubr.msk.bf16.mxu1 %vm8423_vm3, %v8421_v0 }
0x3214   :  { %7820 = vmatprep.subr.bf16.mxu1 %v8421_v0 }
0x3215   :  { %v5100_v61 = vpop.permute.xlu1 %5099 }
0x3217   :  { %7821 = vmatpush3.bf16.msra.mxu1 %v9794_v56 }
0x3218   :  { %7832 = vmatprep.subr.bf16.mxu1 %v8421_v0 }
0x321a   :  { %7823 = vmatmul.mubr.msk.bf16.vlgmr.msra.gmra.mrb[172].mxu1 %vm386_vm5, %v9924_v63  ;;  %v10036_v63 = vld [vmem:[%s10454_s23] ss:$0 sm:$0xff] }
0x321b   :  { %7833 = vmatpush3.bf16.msra.mxu1 %v9818_v20  ;;  %7836 = vmatprep.mubr.msk.bf16.mxu1 %vm8423_vm3, %v8421_v0 }
0x321c   :  { %7834 = vmatprep.subr.bf16.mxu1 %v8421_v0 }
0x321f   :  { %7835 = vmatpush3.bf16.msra.mxu1 %v9824_v25 }
0x3220   :  { %7846 = vmatprep.subr.bf16.mxu1 %v8421_v0 }
0x32e5   :  { %v4944_v4 = vpop.f32.mrb[168].mxu1 }
0x32e6   :  { %v4945_v13 = vadd.f32 %v10036_v63, %v4944_v4  ;;  %v7810_v26 = vpop.f32.mrb[169].mxu1 }
0x32e7   :  { %v4947_v60 = vpop.f32.mrb[170].mxu1 }
0x32e8   :  { %6686 = vst.msk [vmem:[%s10455_s24] sm:$0xff] %vm4952_vm6, %v4945_v13  ;;  %v4948_v16 = vadd.f32 %v10036_v63, %v4947_v60  ;;  %v7811_v15 = vpop.f32.mrb[171].mxu1 }
0x32ea   :  { %v4951_v3 = vpack.c.bf16 %v4948_v16, %v4945_v13  ;;  %6687 = vst.msk [vmem:[%s10455_s24 + $0x8] sm:$0xff] %vm4952_vm6, %v4948_v16 }
0x32ec   :  { %7815 = vmatmul.mubr.msk.bf16.vlgmr.msra.gmra.mrb[172].mxu0 %vm4952_vm6, %v4951_v3 }
0x32ed   :  { %v5034_v27 = vpop.f32.mrb[172].mxu1  ;;  %7828 = vmatprep.mubr.msk.bf16.mxu0 %vm8423_vm3, %v8421_v0 }
0x32ee   :  { %v7824_v41 = vpop.f32.mrb[173].mxu1 }
0x32ef   :  { %v5037_v2 = vpop.f32.mrb[174].mxu1 }
0x32f0   :  { %v7825_v48 = vpop.f32.mrb[175].mxu1 }
0x33bf   :  { %v4993_v11 = vpop.f32.mrb[172].mxu0 }
0x33c0   :  { %v5035_v10 = vadd.f32 %v5034_v27, %v4993_v11  ;;  %5108 = vrot.lane.b32.xlu0 %v4993_v11, %s8425_s4  ;;  %v7816_v22 = vpop.f32.mrb[173].mxu0 }
0x33c1   :  { %v4996_v55 = vpop.f32.mrb[174].mxu0 }
0x33c2   :  { %v5038_v34 = vadd.f32 %v5037_v2, %v4996_v55  ;;  %5110 = vrot.lane.b32.xlu1 %v4996_v55, %s8425_s4  ;;  %v7817_v9 = vpop.f32.mrb[175].mxu0 }
0x33c4   :  { %v5041_v38 = vpack.c.bf16 %v5038_v34, %v5035_v10 }
0x33c6   :  { %7827 = vmatpush3.bf16.msra.mxu0 %v5041_v38 }
0x33c7   :  { %7840 = vmatprep.subr.bf16.mxu0 %v8421_v0 }
0x33c9   :  { %7829 = vmatmul.mubr.msk.bf16.vlgmr.msra.gmra.mrb[176].mxu0 %vm437_vm4, %v9936_v23 }
0x33ca   :  { %7842 = vmatprep.mubr.msk.bf16.mxu0 %vm8423_vm3, %v8421_v0 }
0x3432   :  { %v5109_v44 = vpop.permute.xlu0 %5108 }
0x3434   :  { %v5111_v13 = vpop.permute.xlu1 %5110 }
0x349c   :  { %v5076_v33 = vpop.f32.mrb[176].mxu0 }
0x349d   :  { %v5077_v54 = vadd.f32 %v9834_v57, %v5076_v33  ;;  %v7830_v46 = vpop.f32.mrb[177].mxu0 }
0x349e   :  { %v5079_v62 = vpop.f32.mrb[178].mxu0 }
0x349f   :  { %v6865_v43 = vmul.f32 -1.442695, %v5077_v54  ;;  %v5080_v21 = vadd.f32 %v9834_v57, %v5079_v62  ;;  %v7831_v31 = vpop.f32.mrb[179].mxu0 }
0x34a1   :  { %8300 = vpow2.f32 %v6865_v43  ;;  %v6866_v35 = vmul.f32 -1.442695, %v5080_v21 }
0x34a3   :  { %8302 = vpow2.f32 %v6866_v35 }
0x34ab   :  { %v8301_v17 = vpop.eup %8300 }
0x34ac   :  { %v5089_v19 = vadd.f32 1.0, %v8301_v17 }
0x34ad   :  { %v8303_v14 = vpop.eup %8302 }
0x34ae   :  { %8304 = vrcp.f32 %v5089_v19  ;;  %v5090_v1 = vadd.f32 1.0, %v8303_v14 }
0x34b0   :  { %8306 = vrcp.f32 %v5090_v1 }
0x34b8   :  { %v8305_v49 = vpop.eup %8304 }
0x34b9   :  { %v5103_v50 = vmul.f32 %v8305_v49, %v5098_v58  ;;  %v5204_v33 = vsub.f32 1.0, %v8305_v49  ;;  %v5202_v21 = vmul.f32 %v8305_v49, %v9912_v37 }
0x34ba   :  { %v8307_v30 = vpop.eup %8306 }
0x34bb   :  { %v5104_v42 = vmul.f32 %v8307_v30, %v5100_v61  ;;  %v5205_v62 = vsub.f32 1.0, %v8307_v30  ;;  %v5203_v31 = vmul.f32 %v8307_v30, %v9914_v40 }
0x34bd   :  { %v5105_v39 = vpack.c.bf16 %v5104_v42, %v5103_v50 }
0x34bf   :  { %7837 = vmatmul.mubr.msk.bf16.vlgmr.msra.gmra.mrb[176].mxu1 %vm386_vm5, %v5105_v39 }
0x34c0   :  { %7847 = vmatpush3.bf16.msra.mxu1 %v9887_v45  ;;  %7850 = vmatprep.mubr.msk.bf16.mxu1 %vm8423_vm3, %v8421_v0 }
0x34c1   :  { %7848 = vmatprep.subr.bf16.mxu1 %v8421_v0 }
0x34c4   :  { %7849 = vmatpush3.bf16.msra.mxu1 %v9896_v18 }
0x34c5   :  { %7862 = vmatprep.subr.bf16.mxu1 %v8421_v0 }
0x3592   :  { %v5151_v53 = vpop.f32.mrb[176].mxu1 }
0x3593   :  { %v7838_v4 = vpop.f32.mrb[177].mxu1  ;;  %v5152_v60 = vadd.f32 %v5151_v53, %v5109_v44 }
0x3594   :  { %v5154_v26 = vpop.f32.mrb[178].mxu1 }
0x3595   :  { %v5155_v16 = vadd.f32 %v5154_v26, %v5111_v13  ;;  %v7839_v15 = vpop.f32.mrb[179].mxu1 }
0x3597   :  { %v5158_v3 = vpack.c.bf16 %v5155_v16, %v5152_v60 }
0x3599   :  { %7841 = vmatpush3.bf16.msra.mxu0 %v5158_v3 }
0x359a   :  { %7854 = vmatprep.subr.bf16.mxu0 %v8421_v0 }
0x359c   :  { %7843 = vmatmul.mubr.msk.bf16.vlgmr.msra.gmra.mrb[180].mxu0 %vm437_vm4, %v9936_v23 }
0x359d   :  { %7855 = vmatpush3.bf16.msra.mxu0 %v9857_v6  ;;  %7858 = vmatprep.mubr.msk.bf16.mxu0 %vm8423_vm3, %v8421_v0 }
0x359e   :  { %7856 = vmatprep.subr.bf16.mxu0 %v8421_v0 }
0x35a1   :  { %7857 = vmatpush3.bf16.msra.mxu0 %v9870_v28 }
0x35a2   :  { %7868 = vmatprep.subr.bf16.mxu0 %v8421_v0 }
0x35a4   :  { %7859 = vmatmul.mubr.msk.bf16.vlgmr.msra.gmra.mrb[184].mxu0 %vm386_vm5, %v10007_v36 }
0x35a5   :  { %7869 = vmatpush3.bf16.msra.mxu0 %v9945_v59  ;;  %7872 = vmatprep.mubr.msk.bf16.mxu0 %vm8423_vm3, %v8421_v0 }
0x35a6   :  { %7870 = vmatprep.subr.bf16.mxu0 %v8421_v0 }
0x35a9   :  { %7871 = vmatpush3.bf16.msra.mxu0 %v9951_v47 }
0x35aa   :  { %7882 = vmatprep.subr.bf16.mxu0 %v8421_v0 }
0x366f   :  { %v5193_v27 = vpop.f32.mrb[180].mxu0 }
0x3670   :  { %v5194_v41 = vadd.f32 %v9864_v51, %v5193_v27  ;;  %v7844_v2 = vpop.f32.mrb[181].mxu0 }
0x3671   :  { %v5196_v48 = vpop.f32.mrb[182].mxu0 }
0x3672   :  { %8308 = vtanh.f32 %v5194_v41  ;;  %v5197_v11 = vadd.f32 %v9864_v51, %v5196_v48  ;;  %v7845_v36 = vpop.f32.mrb[183].mxu0 }
0x3674   :  { %8310 = vtanh.f32 %v5197_v11 }
0x3677   :  { %v5300_v10 = vpop.f32.mrb[184].mxu0 }
0x3678   :  { %v7860_v22 = vpop.f32.mrb[185].mxu0 }
0x3679   :  { %v5303_v55 = vpop.f32.mrb[186].mxu0 }
0x367a   :  { %v7861_v34 = vpop.f32.mrb[187].mxu0 }
0x367c   :  { %v8309_v9 = vpop.eup %8308 }
0x367d   :  { %5208 = vrot.lane.b32.xlu0 %v8309_v9, %s10484_s2 }
0x367e   :  { %v8311_v38 = vpop.eup %8310 }
0x367f   :  { %5210 = vrot.lane.b32.xlu1 %v8311_v38, %s10484_s2 }
0x3683   :  { %5363 = vrot.lane.b32.xlu1 %v9998_v5, %s8427_s28 }
0x36ef   :  { %v5209_v54 = vpop.permute.xlu0 %5208 }
0x36f0   :  { %v5214_v46 = vmul.f32 %v5209_v54, %v5204_v33 }
0x36f1   :  { %v5211_v43 = vpop.permute.xlu1 %5210 }
0x36f2   :  { %v5215_v35 = vmul.f32 %v5211_v43, %v5205_v62  ;;  %v10092_v17 = vadd.f32 %v5214_v46, %v5202_v21 }
0x36f4   :  { %v10094_v19 = vadd.f32 %v5215_v35, %v5203_v31 }
0x36f5   :  { %v5364_v48 = vpop.permute.xlu1 %5363 }
0x36f6   :  { %v5218_v14 = vpack.c.bf16 %v10094_v19, %v10092_v17 }
0x36f8   :  { %5220 = vrot.lane.b32.xlu0 %v5218_v14, %s8427_s28 }
0x36fc   :  { %5365 = vrot.lane.b32.xlu0 %v10000_v12, %s8427_s28 }
0x376a   :  { %v10101_v1 = vpop.permute.xlu0 %5220 }
0x376b   :  { %7851 = vmatmul.mubr.msk.bf16.vlgmr.msra.gmra.mrb[180].mxu1 %vm386_vm5, %v10101_v1 }
0x376c   :  { %7864 = vmatprep.mubr.msk.bf16.mxu1 %vm8423_vm3, %v8421_v0 }
0x376e   :  { %v5366_v11 = vpop.permute.xlu0 %5365 }
0x383e   :  { %v5259_v37 = vpop.f32.mrb[180].mxu1 }
0x383f   :  { %v5301_v40 = vadd.f32 %v5300_v10, %v5259_v37  ;;  %5374 = vrot.lane.b32.xlu1 %v5259_v37, %s8425_s4  ;;  %v7852_v49 = vpop.f32.mrb[181].mxu1 }
0x3840   :  { %v5262_v30 = vpop.f32.mrb[182].mxu1 }
0x3841   :  { %v5304_v58 = vadd.f32 %v5303_v55, %v5262_v30  ;;  %5376 = vrot.lane.b32.xlu0 %v5262_v30, %s8425_s4  ;;  %v7853_v61 = vpop.f32.mrb[183].mxu1 }
0x3843   :  { %v5307_v50 = vpack.c.bf16 %v5304_v58, %v5301_v40 }
0x3845   :  { %7863 = vmatpush3.bf16.msra.mxu1 %v5307_v50 }
0x3846   :  { %7876 = vmatprep.subr.bf16.mxu1 %v8421_v0 }
0x3848   :  { %7865 = vmatmul.mubr.msk.bf16.vlgmr.msra.gmra.mrb[184].mxu1 %vm437_vm4, %v9936_v23 }
0x3849   :  { %7878 = vmatprep.mubr.msk.bf16.mxu1 %vm8423_vm3, %v8421_v0 }
0x38b1   :  { %v5375_v34 = vpop.permute.xlu1 %5374 }
0x38b3   :  { %v5377_v38 = vpop.permute.xlu0 %5376 }
0x391b   :  { %v5342_v42 = vpop.f32.mrb[184].mxu1 }
0x391c   :  { %v5343_v39 = vadd.f32 %v9959_v24, %v5342_v42  ;;  %v7866_v53 = vpop.f32.mrb[185].mxu1 }
0x391d   :  { %v5345_v44 = vpop.f32.mrb[186].mxu1 }
0x391e   :  { %v6872_v4 = vmul.f32 -1.442695, %v5343_v39  ;;  %v5346_v13 = vadd.f32 %v9959_v24, %v5345_v44  ;;  %v7867_v26 = vpop.f32.mrb[187].mxu1 }
0x3920   :  { %8312 = vpow2.f32 %v6872_v4  ;;  %v6873_v60 = vmul.f32 -1.442695, %v5346_v13 }
0x3922   :  { %8314 = vpow2.f32 %v6873_v60 }
0x392a   :  { %v8313_v16 = vpop.eup %8312 }
0x392b   :  { %v5355_v15 = vadd.f32 1.0, %v8313_v16 }
0x392c   :  { %v8315_v3 = vpop.eup %8314 }
0x392d   :  { %8316 = vrcp.f32 %v5355_v15  ;;  %v5356_v27 = vadd.f32 1.0, %v8315_v3 }
0x392f   :  { %8318 = vrcp.f32 %v5356_v27 }
0x3937   :  { %v8317_v41 = vpop.eup %8316 }
0x3938   :  { %v5369_v36 = vmul.f32 %v8317_v41, %v5364_v48  ;;  %v5470_v58 = vsub.f32 1.0, %v8317_v41  ;;  %v5468_v53 = vmul.f32 %v8317_v41, %v9998_v5 }
0x3939   :  { %v8319_v2 = vpop.eup %8318 }
0x393a   :  { %v5370_v10 = vmul.f32 %v8319_v2, %v5366_v11  ;;  %v5471_v42 = vsub.f32 1.0, %v8319_v2  ;;  %v5469_v44 = vmul.f32 %v8319_v2, %v10000_v12 }
0x393c   :  { %v5371_v22 = vpack.c.bf16 %v5370_v10, %v5369_v36 }
0x393e   :  { %7873 = vmatmul.mubr.msk.bf16.vlgmr.msra.gmra.mrb[188].mxu0 %vm386_vm5, %v5371_v22 }
0x393f   :  { %7883 = vmatpush3.bf16.msra.mxu0 %v9982_v29  ;;  %7886 = vmatprep.mubr.msk.bf16.mxu0 %vm8423_vm3, %v8421_v0 }
0x3940   :  { %7884 = vmatprep.subr.bf16.mxu0 %v8421_v0 }
0x3943   :  { %7885 = vmatpush3.bf16.msra.mxu0 %v9989_v7 }
0x3944   :  { %7896 = vmatprep.subr.bf16.mxu0 %v8421_v0 }
0x3a11   :  { %v5417_v55 = vpop.f32.mrb[188].mxu0 }
0x3a12   :  { %v7874_v9 = vpop.f32.mrb[189].mxu0  ;;  %v5418_v54 = vadd.f32 %v5417_v55, %v5375_v34 }
0x3a13   :  { %v5420_v33 = vpop.f32.mrb[190].mxu0 }
0x3a14   :  { %v5421_v46 = vadd.f32 %v5420_v33, %v5377_v38  ;;  %v7875_v62 = vpop.f32.mrb[191].mxu0 }
0x3a16   :  { %v5424_v43 = vpack.c.bf16 %v5421_v46, %v5418_v54 }
0x3a18   :  { %7877 = vmatpush3.bf16.msra.mxu1 %v5424_v43 }
0x3a19   :  { %7890 = vmatprep.subr.bf16.mxu1 %v8421_v0 }
0x3a1b   :  { %7879 = vmatmul.mubr.msk.bf16.vlgmr.msra.gmra.mrb[188].mxu1 %vm437_vm4, %v9936_v23 }
0x3a1c   :  { %7891 = vmatpush3.bf16.msra.mxu1 %v10029_v52  ;;  %7892 = vmatprep.mubr.msk.bf16.mxu1 %vm8423_vm3, %v8421_v0 }
0x3a1d   :  { %7904 = vmatprep.subr.bf16.mxu1 %v8421_v0 }
0x3aee   :  { %v5459_v21 = vpop.f32.mrb[188].mxu1 }
0x3aef   :  { %v5460_v31 = vadd.f32 %v9974_v8, %v5459_v21  ;;  %v7880_v35 = vpop.f32.mrb[189].mxu1 }
0x3af0   :  { %v5462_v14 = vpop.f32.mrb[190].mxu1 }
0x3af1   :  { %8320 = vtanh.f32 %v5460_v31  ;;  %v5463_v37 = vadd.f32 %v9974_v8, %v5462_v14  ;;  %v7881_v40 = vpop.f32.mrb[191].mxu1 }
0x3af3   :  { %8322 = vtanh.f32 %v5463_v37 }
0x3afb   :  { %v8321_v49 = vpop.eup %8320 }
0x3afc   :  { %5474 = vrot.lane.b32.xlu1 %v8321_v49, %s10484_s2 }
0x3afd   :  { %v8323_v30 = vpop.eup %8322 }
0x3afe   :  { %5476 = vrot.lane.b32.xlu0 %v8323_v30, %s10484_s2 }
0x3b02   :  { %5674 = vrot.lane.b32.xlu0 %v10092_v17, %s8427_s28 }
0x3b6e   :  { %v5475_v61 = vpop.permute.xlu1 %5474 }
0x3b6f   :  { %v5480_v50 = vmul.f32 %v5475_v61, %v5470_v58 }
0x3b70   :  { %v5477_v39 = vpop.permute.xlu0 %5476 }
0x3b71   :  { %v5481_v4 = vmul.f32 %v5477_v39, %v5471_v42  ;;  %v10138_v13 = vadd.f32 %v5480_v50, %v5468_v53 }
0x3b73   :  { %v10140_v26 = vadd.f32 %v5481_v4, %v5469_v44 }
0x3b74   :  { %v5675_v49 = vpop.permute.xlu0 %5674 }
0x3b75   :  { %v5484_v60 = vpack.c.bf16 %v10140_v26, %v10138_v13 }
0x3b77   :  { %5486 = vrot.lane.b32.xlu1 %v5484_v60, %s8427_s28 }
0x3b7b   :  { %5676 = vrot.lane.b32.xlu1 %v10094_v19, %s8427_s28 }
0x3be9   :  { %v10147_v16 = vpop.permute.xlu1 %5486 }
0x3bea   :  { %7887 = vmatmul.mubr.msk.bf16.vlgmr.msra.gmra.mrb[192].mxu0 %vm386_vm5, %v10147_v16 }
0x3beb   :  { %7897 = vmatpush3.bf16.msra.mxu0 %v9787_v32  ;;  %7900 = vmatprep.mubr.msk.bf16.mxu0 %vm8423_vm3, %v8421_v0 }
0x3bec   :  { %7898 = vmatprep.subr.bf16.mxu0 %v8421_v0 }
0x3bed   :  { %v5677_v30 = vpop.permute.xlu1 %5676 }
0x3bef   :  { %7899 = vmatpush3.bf16.msra.mxu0 %v9794_v56 }
0x3bf0   :  { %7910 = vmatprep.subr.bf16.mxu0 %v8421_v0 }
0x3bf2   :  { %7901 = vmatmul.mubr.msk.bf16.vlgmr.msra.gmra.mrb[196].mxu0 %vm386_vm5, %v10101_v1 }
0x3bf3   :  { %7911 = vmatpush3.bf16.msra.mxu0 %v9818_v20  ;;  %7914 = vmatprep.mubr.msk.bf16.mxu0 %vm8423_vm3, %v8421_v0 }
0x3bf4   :  { %7912 = vmatprep.subr.bf16.mxu0 %v8421_v0 }
0x3bf7   :  { %7913 = vmatpush3.bf16.msra.mxu0 %v9824_v25 }
0x3bf8   :  { %7924 = vmatprep.subr.bf16.mxu0 %v8421_v0 }
0x3cbd   :  { %v5525_v32 = vpop.f32.mrb[192].mxu0 }
0x3cbe   :  { %v5526_v5 = vadd.f32 %v10036_v63, %v5525_v32  ;;  %v7888_v56 = vpop.f32.mrb[193].mxu0 }
0x3cbf   :  { %v5528_v12 = vpop.f32.mrb[194].mxu0 }
0x3cc0   :  { %6688 = vst.msk [vmem:[%s10455_s24 + $0x10] sm:$0xff] %vm4952_vm6, %v5526_v5  ;;  %v5529_v20 = vadd.f32 %v10036_v63, %v5528_v12  ;;  %v7889_v1 = vpop.f32.mrb[195].mxu0 }
0x3cc2   :  { %v5532_v15 = vpack.c.bf16 %v5529_v20, %v5526_v5  ;;  %6689 = vst.msk [vmem:[%s10455_s24 + $0x18] sm:$0xff] %vm4952_vm6, %v5529_v20 }
0x3cc4   :  { %7893 = vmatmul.mubr.msk.bf16.vlgmr.msra.gmra.mrb[192].mxu1 %vm4952_vm6, %v5532_v15 }
0x3cc5   :  { %v5611_v25 = vpop.f32.mrb[196].mxu0  ;;  %7906 = vmatprep.mubr.msk.bf16.mxu1 %vm8423_vm3, %v8421_v0 }
0x3cc6   :  { %v7902_v3 = vpop.f32.mrb[197].mxu0 }
0x3cc7   :  { %v5614_v27 = vpop.f32.mrb[198].mxu0 }
0x3cc8   :  { %v7903_v41 = vpop.f32.mrb[199].mxu0 }
0x3d97   :  { %v5570_v2 = vpop.f32.mrb[192].mxu1 }
0x3d98   :  { %v5612_v48 = vadd.f32 %v5611_v25, %v5570_v2  ;;  %5685 = vrot.lane.b32.xlu0 %v5570_v2, %s8425_s4  ;;  %v7894_v11 = vpop.f32.mrb[193].mxu1 }
0x3d99   :  { %v5573_v36 = vpop.f32.mrb[194].mxu1 }
0x3d9a   :  { %v5615_v10 = vadd.f32 %v5614_v27, %v5573_v36  ;;  %5687 = vrot.lane.b32.xlu1 %v5573_v36, %s8425_s4  ;;  %v7895_v22 = vpop.f32.mrb[195].mxu1 }
0x3d9c   :  { %v5618_v55 = vpack.c.bf16 %v5615_v10, %v5612_v48 }
0x3d9e   :  { %7905 = vmatpush3.bf16.msra.mxu1 %v5618_v55 }
0x3d9f   :  { %7918 = vmatprep.subr.bf16.mxu1 %v8421_v0 }
0x3da1   :  { %7907 = vmatmul.mubr.msk.bf16.vlgmr.msra.gmra.mrb[196].mxu1 %vm437_vm4, %v9936_v23 }
0x3da2   :  { %7920 = vmatprep.mubr.msk.bf16.mxu1 %vm8423_vm3, %v8421_v0 }
0x3e0a   :  { %v5686_v42 = vpop.permute.xlu0 %5685 }
0x3e0c   :  { %v5688_v53 = vpop.permute.xlu1 %5687 }
0x3e74   :  { %v5653_v34 = vpop.f32.mrb[196].mxu1 }
0x3e75   :  { %v5654_v9 = vadd.f32 %v9834_v57, %v5653_v34  ;;  %v7908_v38 = vpop.f32.mrb[197].mxu1 }
0x3e76   :  { %v5656_v33 = vpop.f32.mrb[198].mxu1 }
0x3e77   :  { %v6880_v54 = vmul.f32 -1.442695, %v5654_v9  ;;  %v5657_v46 = vadd.f32 %v9834_v57, %v5656_v33  ;;  %v7909_v62 = vpop.f32.mrb[199].mxu1 }
0x3e79   :  { %8324 = vpow2.f32 %v6880_v54  ;;  %v6881_v43 = vmul.f32 -1.442695, %v5657_v46 }
0x3e7b   :  { %8326 = vpow2.f32 %v6881_v43 }
0x3e83   :  { %v8325_v21 = vpop.eup %8324 }
0x3e84   :  { %v5666_v31 = vadd.f32 1.0, %v8325_v21 }
0x3e85   :  { %v8327_v35 = vpop.eup %8326 }
0x3e86   :  { %8328 = vrcp.f32 %v5666_v31  ;;  %v5667_v14 = vadd.f32 1.0, %v8327_v35 }
0x3e88   :  { %8330 = vrcp.f32 %v5667_v14 }
0x3e90   :  { %v8329_v37 = vpop.eup %8328 }
0x3e91   :  { %v5680_v58 = vmul.f32 %v8329_v37, %v5675_v49  ;;  %v5781_v25 = vsub.f32 1.0, %v8329_v37  ;;  %v5779_v2 = vmul.f32 %v8329_v37, %v10092_v17 }
0x3e92   :  { %v8331_v40 = vpop.eup %8330 }
0x3e93   :  { %v5681_v61 = vmul.f32 %v8331_v40, %v5677_v30  ;;  %v5782_v41 = vsub.f32 1.0, %v8331_v40  ;;  %v5780_v48 = vmul.f32 %v8331_v40, %v10094_v19 }
0x3e95   :  { %v5682_v50 = vpack.c.bf16 %v5681_v61, %v5680_v58 }
0x3e97   :  { %7915 = vmatmul.mubr.msk.bf16.vlgmr.msra.gmra.mrb[200].mxu0 %vm386_vm5, %v5682_v50 }
0x3e98   :  { %7925 = vmatpush3.bf16.msra.mxu0 %v9887_v45  ;;  %7928 = vmatprep.mubr.msk.bf16.mxu0 %vm8423_vm3, %v8421_v0 }
0x3e99   :  { %7926 = vmatprep.subr.bf16.mxu0 %v8421_v0 }
0x3e9c   :  { %7927 = vmatpush3.bf16.msra.mxu0 %v9896_v18 }
0x3e9d   :  { %7940 = vmatprep.subr.bf16.mxu0 %v8421_v0 }
0x3f6a   :  { %v5728_v57 = vpop.f32.mrb[200].mxu0 }
0x3f6b   :  { %v7916_v39 = vpop.f32.mrb[201].mxu0  ;;  %v5729_v4 = vadd.f32 %v5728_v57, %v5686_v42 }
0x3f6c   :  { %v5731_v44 = vpop.f32.mrb[202].mxu0 }
0x3f6d   :  { %v5732_v60 = vadd.f32 %v5731_v44, %v5688_v53  ;;  %v7917_v32 = vpop.f32.mrb[203].mxu0 }
0x3f6f   :  { %v5735_v5 = vpack.c.bf16 %v5732_v60, %v5729_v4 }
0x3f71   :  { %7919 = vmatpush3.bf16.msra.mxu1 %v5735_v5 }
0x3f72   :  { %7932 = vmatprep.subr.bf16.mxu1 %v8421_v0 }
0x3f74   :  { %7921 = vmatmul.mubr.msk.bf16.vlgmr.msra.gmra.mrb[200].mxu1 %vm437_vm4, %v9936_v23 }
0x3f75   :  { %7933 = vmatpush3.bf16.msra.mxu1 %v9857_v6  ;;  %7936 = vmatprep.mubr.msk.bf16.mxu1 %vm8423_vm3, %v8421_v0 }
0x3f76   :  { %7934 = vmatprep.subr.bf16.mxu1 %v8421_v0 }
0x3f79   :  { %7935 = vmatpush3.bf16.msra.mxu1 %v9870_v28 }
0x3f7a   :  { %7946 = vmatprep.subr.bf16.mxu1 %v8421_v0 }
0x3f7c   :  { %7937 = vmatmul.mubr.msk.bf16.vlgmr.msra.gmra.mrb[204].mxu1 %vm386_vm5, %v10147_v16 }
0x3f7d   :  { %7947 = vmatpush3.bf16.msra.mxu1 %v9945_v59  ;;  %7950 = vmatprep.mubr.msk.bf16.mxu1 %vm8423_vm3, %v8421_v0 }
0x3f7e   :  { %7948 = vmatprep.subr.bf16.mxu1 %v8421_v0 }
0x3f81   :  { %7949 = vmatpush3.bf16.msra.mxu1 %v9951_v47 }
0x3f82   :  { %7960 = vmatprep.subr.bf16.mxu1 %v8421_v0 }
0x4047   :  { %v5770_v6 = vpop.f32.mrb[200].mxu1 }
0x4048   :  { %v5771_v45 = vadd.f32 %v9864_v51, %v5770_v6  ;;  %v7922_v28 = vpop.f32.mrb[201].mxu1 }
0x4049   :  { %v5773_v18 = vpop.f32.mrb[202].mxu1 }
0x404a   :  { %8332 = vtanh.f32 %v5771_v45  ;;  %v5774_v56 = vadd.f32 %v9864_v51, %v5773_v18  ;;  %v7923_v16 = vpop.f32.mrb[203].mxu1 }
0x404c   :  { %8334 = vtanh.f32 %v5774_v56 }
0x404f   :  { %v5877_v59 = vpop.f32.mrb[204].mxu1 }
0x4050   :  { %v7938_v12 = vpop.f32.mrb[205].mxu1 }
0x4051   :  { %v5880_v20 = vpop.f32.mrb[206].mxu1 }
0x4052   :  { %v7939_v1 = vpop.f32.mrb[207].mxu1 }
0x4054   :  { %v8333_v15 = vpop.eup %8332 }
0x4055   :  { %5785 = vrot.lane.b32.xlu0 %v8333_v15, %s10484_s2 }
0x4056   :  { %v8335_v47 = vpop.eup %8334 }
0x4057   :  { %5787 = vrot.lane.b32.xlu1 %v8335_v47, %s10484_s2 }
0x405b   :  { %5940 = vrot.lane.b32.xlu1 %v10138_v13, %s8427_s28 }
0x40c7   :  { %v5786_v3 = vpop.permute.xlu0 %5785 }
0x40c8   :  { %v5791_v27 = vmul.f32 %v5786_v3, %v5781_v25 }
0x40c9   :  { %v5788_v51 = vpop.permute.xlu1 %5787 }
0x40ca   :  { %v5792_v11 = vmul.f32 %v5788_v51, %v5782_v41  ;;  %v10219_v36 = vadd.f32 %v5791_v27, %v5779_v2 }
0x40cc   :  { %v10221_v10 = vadd.f32 %v5792_v11, %v5780_v48  ;;  %v8405_v11 = vld [vmem:[%s10444_s14] sm:$0xff]  }
0x40cd   :  { %v5941_v57 = vpop.permute.xlu1 %5940 }
0x40ce   :  { %v5795_v22 = vpack.c.bf16 %v10221_v10, %v10219_v36 }
0x40d0   :  { %5797 = vrot.lane.b32.xlu0 %v5795_v22, %s8427_s28  ;;  %v8406_v22 = vld [vmem:[%s10444_s14 + $0x8] sm:$0xff]  }
0x40d4   :  { %5942 = vrot.lane.b32.xlu0 %v10140_v26, %s8427_s28 }
0x4142   :  { %v10228_v55 = vpop.permute.xlu0 %5797 }
0x4143   :  { %7929 = vmatmul.mubr.msk.bf16.vlgmr.msra.gmra.mrb[204].mxu0 %vm386_vm5, %v10228_v55 }
0x4144   :  { %7942 = vmatprep.mubr.msk.bf16.mxu0 %vm8423_vm3, %v8421_v0 }
0x4146   :  { %v5943_v42 = vpop.permute.xlu0 %5942 }
0x4216   :  { %v5836_v17 = vpop.f32.mrb[204].mxu0 }
0x4217   :  { %v5878_v19 = vadd.f32 %v5877_v59, %v5836_v17  ;;  %5951 = vrot.lane.b32.xlu1 %v5836_v17, %s8425_s4  ;;  %v7930_v34 = vpop.f32.mrb[205].mxu0 }
0x4218   :  { %v5839_v9 = vpop.f32.mrb[206].mxu0 }
0x4219   :  { %v5881_v38 = vadd.f32 %v5880_v20, %v5839_v9  ;;  %5953 = vrot.lane.b32.xlu0 %v5839_v9, %s8425_s4  ;;  %v7931_v33 = vpop.f32.mrb[207].mxu0 }
0x421b   :  { %v5884_v54 = vpack.c.bf16 %v5881_v38, %v5878_v19 }
0x421d   :  { %7941 = vmatpush3.bf16.msra.mxu0 %v5884_v54 }
0x421e   :  { %7954 = vmatprep.subr.bf16.mxu0 %v8421_v0 }
0x4220   :  { %7943 = vmatmul.mubr.msk.bf16.vlgmr.msra.gmra.mrb[208].mxu0 %vm437_vm4, %v9936_v23 }
0x4221   :  { %7956 = vmatprep.mubr.msk.bf16.mxu0 %vm8423_vm3, %v8421_v0 }
0x4289   :  { %v5952_v4 = vpop.permute.xlu1 %5951 }
0x428b   :  { %v5954_v32 = vpop.permute.xlu0 %5953 }
0x42f3   :  { %v5919_v46 = vpop.f32.mrb[208].mxu0 }
0x42f4   :  { %v5920_v62 = vadd.f32 %v9959_v24, %v5919_v46  ;;  %v7944_v43 = vpop.f32.mrb[209].mxu0 }
0x42f5   :  { %v5922_v21 = vpop.f32.mrb[210].mxu0 }
0x42f6   :  { %v6887_v31 = vmul.f32 -1.442695, %v5920_v62  ;;  %v5923_v35 = vadd.f32 %v9959_v24, %v5922_v21  ;;  %v7945_v14 = vpop.f32.mrb[211].mxu0 }
0x42f8   :  { %8336 = vpow2.f32 %v6887_v31  ;;  %v6888_v37 = vmul.f32 -1.442695, %v5923_v35 }
0x42fa   :  { %8338 = vpow2.f32 %v6888_v37 }
0x4302   :  { %v8337_v40 = vpop.eup %8336 }
0x4303   :  { %v5932_v49 = vadd.f32 1.0, %v8337_v40 }
0x4304   :  { %v8339_v30 = vpop.eup %8338 }
0x4305   :  { %8340 = vrcp.f32 %v5932_v49  ;;  %v5933_v58 = vadd.f32 1.0, %v8339_v30  ;;  %v10319_v49 = vld [vmem:[%s10478_s26] sm:$0xff]  }
0x4307   :  { %8342 = vrcp.f32 %v5933_v58  ;;  %v8408_v58 = vld [vmem:[%s10445_s15] ss:$0 sm:$0xff] }
0x430f   :  { %v8341_v61 = vpop.eup %8340 }
0x4310   :  { %v5946_v39 = vmul.f32 %v8341_v61, %v5941_v57  ;;  %v6045_v3 = vmul.f32 %v8341_v61, %v10138_v13  ;;  %v8403_v13 = vld [vmem:[%s10443_s13] sm:$0xff]  }
0x4311   :  { %v8343_v50 = vpop.eup %8342 }
0x4312   :  { %v5947_v53 = vmul.f32 %v8343_v50, %v5943_v42  ;;  %v6048_v47 = vsub.f32 1.0, %v8343_v50 }
0x4314   :  { %v5948_v44 = vpack.c.bf16 %v5947_v53, %v5946_v39 }
0x4316   :  { %7951 = vmatmul.mubr.msk.bf16.vlgmr.msra.gmra.mrb[208].mxu1 %vm386_vm5, %v5948_v44 }
0x4317   :  { %7961 = vmatpush3.bf16.msra.mxu1 %v9982_v29  ;;  %7964 = vmatprep.mubr.msk.bf16.mxu1 %vm8423_vm3, %v8421_v0 }
0x4318   :  { %7962 = vmatprep.subr.bf16.mxu1 %v8421_v0 }
0x431b   :  { %7963 = vmatpush3.bf16.msra.mxu1 %v9989_v7 }
0x431c   :  { %7974 = vmatprep.subr.bf16.mxu1 %v8421_v0 }
0x43e9   :  { %v5994_v24 = vpop.f32.mrb[208].mxu1 }
0x43ea   :  { %v7952_v60 = vpop.f32.mrb[209].mxu1  ;;  %v5995_v6 = vadd.f32 %v5994_v24, %v5952_v4 }
0x43eb   :  { %v5997_v5 = vpop.f32.mrb[210].mxu1 }
0x43ec   :  { %v5998_v45 = vadd.f32 %v5997_v5, %v5954_v32  ;;  %v7953_v28 = vpop.f32.mrb[211].mxu1 }
0x43ee   :  { %v6001_v18 = vpack.c.bf16 %v5998_v45, %v5995_v6 }
0x43f0   :  { %7955 = vmatpush3.bf16.msra.mxu0 %v6001_v18 }
0x43f1   :  { %7968 = vmatprep.subr.bf16.mxu0 %v8421_v0 }
0x43f3   :  { %7957 = vmatmul.mubr.msk.bf16.vlgmr.msra.gmra.mrb[212].mxu0 %vm437_vm4, %v9936_v23 }
0x43f4   :  { %7969 = vmatpush3.bf16.msra.mxu0 %v10029_v52  ;;  %7970 = vmatprep.mubr.msk.bf16.mxu0 %vm8423_vm3, %v8421_v0  ;;  %v6047_v52 = vsub.f32 1.0, %v8341_v61 }
0x43f5   :  { %7982 = vmatprep.subr.bf16.mxu0 %v8421_v0 }
0x44c6   :  { %v6036_v29 = vpop.f32.mrb[212].mxu0 }
0x44c7   :  { %v6037_v7 = vadd.f32 %v9974_v8, %v6036_v29  ;;  %v7958_v56 = vpop.f32.mrb[213].mxu0 }
0x44c8   :  { %v6039_v16 = vpop.f32.mrb[214].mxu0  ;;  %v8409_v56 = vld [vmem:[%s10448_s17] sm:$0xff]  }
0x44c9   :  { %8344 = vtanh.f32 %v6037_v7  ;;  %v6040_v59 = vadd.f32 %v9974_v8, %v6039_v16  ;;  %v7959_v12 = vpop.f32.mrb[215].mxu0  ;;  %v6046_v8 = vmul.f32 %v8343_v50, %v10140_v26  ;;  %v8404_v26 = vld [vmem:[%s10443_s13 + $0x8] sm:$0xff]  }
0x44ca   :  { %v8410_v16 = vld [vmem:[%s10448_s17 + $0x8] sm:$0xff]  }
0x44cb   :  { %8346 = vtanh.f32 %v6040_v59 }
0x44d3   :  { %v8345_v20 = vpop.eup %8344 }
0x44d4   :  { %6051 = vrot.lane.b32.xlu1 %v8345_v20, %s10484_s2 }
0x44d5   :  { %v8347_v23 = vpop.eup %8346 }
0x44d6   :  { %6053 = vrot.lane.b32.xlu0 %v8347_v23, %s10484_s2 }
0x44da   :  { %6251 = vrot.lane.b32.xlu0 %v10219_v36, %s8427_s28 }
0x4546   :  { %v6052_v1 = vpop.permute.xlu1 %6051 }
0x4547   :  { %v6057_v15 = vmul.f32 %v6052_v1, %v6047_v52 }
0x4548   :  { %v6054_v25 = vpop.permute.xlu0 %6053 }
0x4549   :  { %v6058_v27 = vmul.f32 %v6054_v25, %v6048_v47  ;;  %v10265_v41 = vadd.f32 %v6057_v15, %v6045_v3  ;;  %v8411_v3 = vld [vmem:[%s10446_s18] sm:$0xff]  }
0x454b   :  { %v10267_v51 = vadd.f32 %v6058_v27, %v6046_v8  ;;  %v8412_v8 = vld [vmem:[%s10446_s18 + $0x8] sm:$0xff]   ;;  %v8413_v27 = vld [vmem:[%s10449_s19] sm:$0xff]  }
0x454c   :  { %v6252_v45 = vpop.permute.xlu0 %6251 }
0x454d   :  { %v6061_v2 = vpack.c.bf16 %v10267_v51, %v10265_v41 }
0x454f   :  { %6063 = vrot.lane.b32.xlu1 %v6061_v2, %s8427_s28  ;;  %v8414_v2 = vld [vmem:[%s10449_s19 + $0x8] sm:$0xff]  }
0x4553   :  { %6253 = vrot.lane.b32.xlu1 %v10221_v10, %s8427_s28 }
0x45c1   :  { %v10274_v48 = vpop.permute.xlu1 %6063 }
0x45c2   :  { %7965 = vmatmul.mubr.msk.bf16.vlgmr.msra.gmra.mrb[212].mxu1 %vm386_vm5, %v10274_v48 }
0x45c3   :  { %7975 = vmatpush3.bf16.msra.mxu1 %v8403_v13  ;;  %7978 = vmatprep.mubr.msk.bf16.mxu1 %vm8423_vm3, %v8421_v0 }
0x45c4   :  { %7976 = vmatprep.subr.bf16.mxu1 %v8421_v0 }
0x45c5   :  { %v6254_v28 = vpop.permute.xlu1 %6253 }
0x45c7   :  { %7977 = vmatpush3.bf16.msra.mxu1 %v8404_v26 }
0x45c8   :  { %7988 = vmatprep.subr.bf16.mxu1 %v8421_v0 }
0x45ca   :  { %7979 = vmatmul.mubr.msk.bf16.vlgmr.msra.gmra.mrb[216].mxu1 %vm386_vm5, %v10228_v55 }
0x45cb   :  { %7989 = vmatpush3.bf16.msra.mxu1 %v8405_v11  ;;  %7992 = vmatprep.mubr.msk.bf16.mxu1 %vm8423_vm3, %v8421_v0 }
0x45cc   :  { %7990 = vmatprep.subr.bf16.mxu1 %v8421_v0 }
0x45cf   :  { %7991 = vmatpush3.bf16.msra.mxu1 %v8406_v22 }
0x45d0   :  { %8002 = vmatprep.subr.bf16.mxu1 %v8421_v0 }
0x4695   :  { %v6102_v17 = vpop.f32.mrb[212].mxu1 }
0x4696   :  { %v6103_v55 = vadd.f32 %v10036_v63, %v6102_v17  ;;  %v7966_v19 = vpop.f32.mrb[213].mxu1 }
0x4697   :  { %v6105_v34 = vpop.f32.mrb[214].mxu1 }
0x4698   :  { %6690 = vst.msk [vmem:[%s10455_s24 + $0x20] sm:$0xff] %vm4952_vm6, %v6103_v55  ;;  %v6106_v9 = vadd.f32 %v10036_v63, %v6105_v34  ;;  %v7967_v38 = vpop.f32.mrb[215].mxu1 }
0x469a   :  { %v6109_v33 = vpack.c.bf16 %v6106_v9, %v6103_v55  ;;  %6691 = vst.msk [vmem:[%s10455_s24 + $0x28] sm:$0xff] %vm4952_vm6, %v6106_v9 }
0x469c   :  { %7971 = vmatmul.mubr.msk.bf16.vlgmr.msra.gmra.mrb[216].mxu0 %vm4952_vm6, %v6109_v33 }
0x469d   :  { %v6188_v54 = vpop.f32.mrb[216].mxu1  ;;  %7984 = vmatprep.mubr.msk.bf16.mxu0 %vm8423_vm3, %v8421_v0 }
0x469e   :  { %v7980_v46 = vpop.f32.mrb[217].mxu1 }
0x469f   :  { %v6191_v62 = vpop.f32.mrb[218].mxu1 }
0x46a0   :  { %v7981_v43 = vpop.f32.mrb[219].mxu1 }
0x476f   :  { %v6147_v21 = vpop.f32.mrb[216].mxu0 }
0x4770   :  { %v6189_v31 = vadd.f32 %v6188_v54, %v6147_v21  ;;  %6262 = vrot.lane.b32.xlu0 %v6147_v21, %s8425_s4  ;;  %v7972_v63 = vpop.f32.mrb[217].mxu0 }
0x4771   :  { %v6150_v35 = vpop.f32.mrb[218].mxu0 }
0x4772   :  { %v6192_v14 = vadd.f32 %v6191_v62, %v6150_v35  ;;  %6264 = vrot.lane.b32.xlu1 %v6150_v35, %s8425_s4  ;;  %v7973_v37 = vpop.f32.mrb[219].mxu0 }
0x4774   :  { %v6195_v40 = vpack.c.bf16 %v6192_v14, %v6189_v31 }
0x4776   :  { %7983 = vmatpush3.bf16.msra.mxu0 %v6195_v40 }
0x4777   :  { %7996 = vmatprep.subr.bf16.mxu0 %v8421_v0 }
0x4779   :  { %7985 = vmatmul.mubr.msk.bf16.vlgmr.msra.gmra.mrb[220].mxu0 %vm437_vm4, %v10319_v49 }
0x477a   :  { %7998 = vmatprep.mubr.msk.bf16.mxu0 %vm8423_vm3, %v8421_v0 }
0x47e2   :  { %v6263_v12 = vpop.permute.xlu0 %6262 }
0x47e4   :  { %v6265_v23 = vpop.permute.xlu1 %6264 }
0x484c   :  { %v6230_v30 = vpop.f32.mrb[220].mxu0 }
0x484d   :  { %v6231_v61 = vadd.f32 %v8408_v58, %v6230_v30  ;;  %v7986_v50 = vpop.f32.mrb[221].mxu0 }
0x484e   :  { %v6233_v57 = vpop.f32.mrb[222].mxu0 }
0x484f   :  { %v6895_v42 = vmul.f32 -1.442695, %v6231_v61  ;;  %v6234_v39 = vadd.f32 %v8408_v58, %v6233_v57  ;;  %v7987_v53 = vpop.f32.mrb[223].mxu0 }
0x4851   :  { %8348 = vpow2.f32 %v6895_v42  ;;  %v6896_v44 = vmul.f32 -1.442695, %v6234_v39 }
0x4853   :  { %8350 = vpow2.f32 %v6896_v44  ;;  %v8416_v44 = vld [vmem:[%s10450_s20] ss:$0 sm:$0xff] }
0x485b   :  { %v8349_v24 = vpop.eup %8348 }
0x485c   :  { %v6243_v4 = vadd.f32 1.0, %v8349_v24 }
0x485d   :  { %v8351_v60 = vpop.eup %8350 }
0x485e   :  { %8352 = vrcp.f32 %v6243_v4  ;;  %v6244_v32 = vadd.f32 1.0, %v8351_v60 }
0x4860   :  { %8354 = vrcp.f32 %v6244_v32 }
0x4868   :  { %v10328_v5 = vpop.eup %8352 }
0x4869   :  { %v6257_v18 = vmul.f32 %v10328_v5, %v6252_v45  ;;  %v6358_v46 = vsub.f32 1.0, %v10328_v5  ;;  %v6356_v63 = vmul.f32 %v10328_v5, %v10219_v36 }
0x486a   :  { %v10330_v6 = vpop.eup %8354 }
0x486b   :  { %v6258_v29 = vmul.f32 %v10330_v6, %v6254_v28  ;;  %v6359_v21 = vsub.f32 1.0, %v10330_v6  ;;  %v6357_v35 = vmul.f32 %v10330_v6, %v10221_v10 }
0x486d   :  { %v6259_v7 = vpack.c.bf16 %v6258_v29, %v6257_v18 }
0x486f   :  { %7993 = vmatmul.mubr.msk.bf16.vlgmr.msra.gmra.mrb[220].mxu1 %vm386_vm5, %v6259_v7 }
0x4870   :  { %8003 = vmatpush3.bf16.msra.mxu1 %v8409_v56  ;;  %8006 = vmatprep.mubr.msk.bf16.mxu1 %vm8423_vm3, %v8421_v0 }
0x4871   :  { %8004 = vmatprep.subr.bf16.mxu1 %v8421_v0 }
0x4874   :  { %8005 = vmatpush3.bf16.msra.mxu1 %v8410_v16 }
0x4875   :  { %8018 = vmatprep.subr.bf16.mxu1 %v8421_v0 }
0x4942   :  { %v6305_v59 = vpop.f32.mrb[220].mxu1 }
0x4943   :  { %v7994_v20 = vpop.f32.mrb[221].mxu1  ;;  %v6306_v1 = vadd.f32 %v6305_v59, %v6263_v12 }
0x4944   :  { %v6308_v52 = vpop.f32.mrb[222].mxu1 }
0x4945   :  { %v6309_v15 = vadd.f32 %v6308_v52, %v6265_v23  ;;  %v7995_v47 = vpop.f32.mrb[223].mxu1 }
0x4947   :  { %v6312_v25 = vpack.c.bf16 %v6309_v15, %v6306_v1  ;;  %v8417_v1 = vld [vmem:[%s10452_s22] sm:$0xff]   ;;  %v8418_v15 = vld [vmem:[%s10452_s22 + $0x8] sm:$0xff]  }
0x4949   :  { %7997 = vmatpush3.bf16.msra.mxu0 %v6312_v25 }
0x494a   :  { %8010 = vmatprep.subr.bf16.mxu0 %v8421_v0 }
0x494c   :  { %7999 = vmatmul.mubr.msk.bf16.vlgmr.msra.gmra.mrb[224].mxu0 %vm437_vm4, %v10319_v49 }
0x494d   :  { %8011 = vmatpush3.bf16.msra.mxu0 %v8411_v3  ;;  %8014 = vmatprep.mubr.msk.bf16.mxu0 %vm8423_vm3, %v8421_v0 }
0x494e   :  { %8012 = vmatprep.subr.bf16.mxu0 %v8421_v0 }
0x4951   :  { %8013 = vmatpush3.bf16.msra.mxu0 %v8412_v8 }
0x4952   :  { %8024 = vmatprep.subr.bf16.mxu0 %v8421_v0 }
0x4954   :  { %8015 = vmatmul.mubr.msk.bf16.vlgmr.msra.gmra.mrb[228].mxu0 %vm386_vm5, %v10274_v48  ;;  %v8415_v48 = vld [vmem:[%s10447_s16] ss:$0 sm:$0xff] }
0x4955   :  { %8025 = vmatpush3.bf16.msra.mxu0 %v8413_v27  ;;  %8028 = vmatprep.mubr.msk.bf16.mxu0 %vm8423_vm3, %v8421_v0 }
0x4956   :  { %8026 = vmatprep.subr.bf16.mxu0 %v8421_v0 }
0x4959   :  { %8027 = vmatpush3.bf16.msra.mxu0 %v8414_v2 }
0x495a   :  { %8038 = vmatprep.subr.bf16.mxu0 %v8421_v0 }
0x4a1f   :  { %v6347_v13 = vpop.f32.mrb[224].mxu0 }
0x4a20   :  { %v6348_v26 = vadd.f32 %v8415_v48, %v6347_v13  ;;  %v8000_v11 = vpop.f32.mrb[225].mxu0 }
0x4a21   :  { %v6350_v22 = vpop.f32.mrb[226].mxu0 }
0x4a22   :  { %8356 = vtanh.f32 %v6348_v26  ;;  %v6351_v17 = vadd.f32 %v8415_v48, %v6350_v22  ;;  %v8001_v55 = vpop.f32.mrb[227].mxu0 }
0x4a24   :  { %8358 = vtanh.f32 %v6351_v17 }
0x4a27   :  { %v6454_v19 = vpop.f32.mrb[228].mxu0 }
0x4a28   :  { %v8016_v34 = vpop.f32.mrb[229].mxu0 }
0x4a29   :  { %v6457_v9 = vpop.f32.mrb[230].mxu0 }
0x4a2a   :  { %v8017_v38 = vpop.f32.mrb[231].mxu0 }
0x4a2c   :  { %v8357_v33 = vpop.eup %8356 }
0x4a2d   :  { %6362 = vrot.lane.b32.xlu0 %v8357_v33, %s10484_s2 }
0x4a2e   :  { %v8359_v54 = vpop.eup %8358 }
0x4a2f   :  { %6364 = vrot.lane.b32.xlu1 %v8359_v54, %s10484_s2 }
0x4a33   :  { %6517 = vrot.lane.b32.xlu1 %v10265_v41, %s8427_s28 }
0x4a9f   :  { %v6363_v62 = vpop.permute.xlu0 %6362 }
0x4aa0   :  { %v6368_v43 = vmul.f32 %v6363_v62, %v6358_v46 }
0x4aa1   :  { %v6365_v31 = vpop.permute.xlu1 %6364 }
0x4aa2   :  { %v6369_v14 = vmul.f32 %v6365_v31, %v6359_v21  ;;  %v6370_v37 = vadd.f32 %v6368_v43, %v6356_v63 }
0x4aa4   :  { %v6371_v40 = vadd.f32 %v6369_v14, %v6357_v35 }
0x4aa5   :  { %v6518_v59 = vpop.permute.xlu1 %6517 }
0x4aa6   :  { %v6372_v30 = vpack.c.bf16 %v6371_v40, %v6370_v37 }
0x4aa8   :  { %6374 = vrot.lane.b32.xlu0 %v6372_v30, %s8427_s28  ;;  %v8420_v30 = vld [vmem:[%s10454_s23] ss:$0 sm:$0xff] }
0x4aac   :  { %6519 = vrot.lane.b32.xlu0 %v10267_v51, %s8427_s28 }
0x4b1a   :  { %v6375_v58 = vpop.permute.xlu0 %6374 }
0x4b1b   :  { %8007 = vmatmul.mubr.msk.bf16.vlgmr.msra.gmra.mrb[224].mxu1 %vm386_vm5, %v6375_v58 }
0x4b1c   :  { %8020 = vmatprep.mubr.msk.bf16.mxu1 %vm8423_vm3, %v8421_v0 }
0x4b1e   :  { %v6520_v12 = vpop.permute.xlu0 %6519 }
0x4bee   :  { %v6413_v61 = vpop.f32.mrb[224].mxu1 }
0x4bef   :  { %v6455_v36 = vadd.f32 %v6454_v19, %v6413_v61  ;;  %6528 = vrot.lane.b32.xlu1 %v6413_v61, %s8425_s4  ;;  %v8008_v10 = vpop.f32.mrb[225].mxu1 }
0x4bf0   :  { %v6416_v50 = vpop.f32.mrb[226].mxu1 }
0x4bf1   :  { %v6458_v57 = vadd.f32 %v6457_v9, %v6416_v50  ;;  %6530 = vrot.lane.b32.xlu0 %v6416_v50, %s8425_s4  ;;  %v8009_v42 = vpop.f32.mrb[227].mxu1 }
0x4bf3   :  { %v6461_v39 = vpack.c.bf16 %v6458_v57, %v6455_v36 }
0x4bf5   :  { %8019 = vmatpush3.bf16.msra.mxu1 %v6461_v39 }
0x4bf6   :  { %8032 = vmatprep.subr.bf16.mxu1 %v8421_v0 }
0x4bf8   :  { %8021 = vmatmul.mubr.msk.bf16.vlgmr.msra.gmra.mrb[228].mxu1 %vm437_vm4, %v10319_v49 }
0x4bf9   :  { %8034 = vmatprep.mubr.msk.bf16.mxu1 %vm8423_vm3, %v8421_v0 }
0x4c61   :  { %v6529_v25 = vpop.permute.xlu1 %6528 }
0x4c63   :  { %v6531_v8 = vpop.permute.xlu0 %6530 }
0x4ccb   :  { %v6496_v53 = vpop.f32.mrb[228].mxu1 }
0x4ccc   :  { %v6497_v24 = vadd.f32 %v8416_v44, %v6496_v53  ;;  %v8022_v4 = vpop.f32.mrb[229].mxu1 }
0x4ccd   :  { %v6499_v60 = vpop.f32.mrb[230].mxu1 }
0x4cce   :  { %v6902_v32 = vmul.f32 -1.442695, %v6497_v24  ;;  %v6500_v5 = vadd.f32 %v8416_v44, %v6499_v60  ;;  %v8023_v6 = vpop.f32.mrb[231].mxu1 }
0x4cd0   :  { %8360 = vpow2.f32 %v6902_v32  ;;  %v6903_v45 = vmul.f32 -1.442695, %v6500_v5 }
0x4cd2   :  { %8362 = vpow2.f32 %v6903_v45 }
0x4cda   :  { %v8361_v28 = vpop.eup %8360 }
0x4cdb   :  { %v6509_v18 = vadd.f32 1.0, %v8361_v28 }
0x4cdc   :  { %v8363_v29 = vpop.eup %8362 }
0x4cdd   :  { %8364 = vrcp.f32 %v6509_v18  ;;  %v6510_v7 = vadd.f32 1.0, %v8363_v29 }
0x4cdf   :  { %8366 = vrcp.f32 %v6510_v7 }
0x4ce7   :  { %v8365_v56 = vpop.eup %8364 }
0x4ce8   :  { %v6523_v20 = vmul.f32 %v8365_v56, %v6518_v59  ;;  %v6624_v33 = vsub.f32 1.0, %v8365_v56  ;;  %v6622_v43 = vmul.f32 %v8365_v56, %v10265_v41 }
0x4ce9   :  { %v8367_v16 = vpop.eup %8366 }
0x4cea   :  { %v6524_v23 = vmul.f32 %v8367_v16, %v6520_v12  ;;  %v6625_v46 = vsub.f32 1.0, %v8367_v16  ;;  %v6623_v21 = vmul.f32 %v8367_v16, %v10267_v51 }
0x4cec   :  { %v6525_v52 = vpack.c.bf16 %v6524_v23, %v6523_v20 }
0x4cee   :  { %8029 = vmatmul.mubr.msk.bf16.vlgmr.msra.gmra.mrb[232].mxu0 %vm386_vm5, %v6525_v52 }
0x4cef   :  { %8039 = vmatpush3.bf16.msra.mxu0 %v8417_v1  ;;  %8042 = vmatprep.mubr.msk.bf16.mxu0 %vm8423_vm3, %v8421_v0 }
0x4cf0   :  { %8040 = vmatprep.subr.bf16.mxu0 %v8421_v0  ;;  %v8419_v0 = vld [vmem:[%s10451_s21] ss:$0 sm:$0xff] }
0x4cf3   :  { %8041 = vmatpush3.bf16.msra.mxu0 %v8418_v15 }
0x4dc1   :  { %v6571_v47 = vpop.f32.mrb[232].mxu0 }
0x4dc2   :  { %v8030_v3 = vpop.f32.mrb[233].mxu0  ;;  %v6572_v2 = vadd.f32 %v6571_v47, %v6529_v25 }
0x4dc3   :  { %v6574_v27 = vpop.f32.mrb[234].mxu0 }
0x4dc4   :  { %v6575_v13 = vadd.f32 %v6574_v27, %v6531_v8  ;;  %v8031_v48 = vpop.f32.mrb[235].mxu0 }
0x4dc6   :  { %v6578_v26 = vpack.c.bf16 %v6575_v13, %v6572_v2 }
0x4dc8   :  { %8033 = vmatpush3.bf16.msra.mxu1 %v6578_v26 }
0x4dcb   :  { %8035 = vmatmul.mubr.msk.bf16.vlgmr.msra.gmra.mrb[232].mxu1 %vm437_vm4, %v10319_v49 }
0x4e9e   :  { %v6613_v11 = vpop.f32.mrb[232].mxu1 }
0x4e9f   :  { %v6614_v22 = vadd.f32 %v8419_v0, %v6613_v11  ;;  %v8036_v17 = vpop.f32.mrb[233].mxu1 }
0x4ea0   :  { %v6616_v55 = vpop.f32.mrb[234].mxu1 }
0x4ea1   :  { %8368 = vtanh.f32 %v6614_v22  ;;  %v6617_v19 = vadd.f32 %v8419_v0, %v6616_v55  ;;  %v8037_v34 = vpop.f32.mrb[235].mxu1 }
0x4ea3   :  { %8370 = vtanh.f32 %v6617_v19 }
0x4eab   :  { %v8369_v9 = vpop.eup %8368 }
0x4eac   :  { %6628 = vrot.lane.b32.xlu1 %v8369_v9, %s10484_s2 }
0x4ead   :  { %v8371_v38 = vpop.eup %8370 }
0x4eae   :  { %6630 = vrot.lane.b32.xlu0 %v8371_v38, %s10484_s2 }
0x4f1e   :  { %v6629_v49 = vpop.permute.xlu1 %6628 }
0x4f1f   :  { %v6634_v54 = vmul.f32 %v6629_v49, %v6624_v33 }
0x4f20   :  { %v6631_v62 = vpop.permute.xlu0 %6630 }
0x4f21   :  { %v6635_v31 = vmul.f32 %v6631_v62, %v6625_v46  ;;  %v6636_v63 = vadd.f32 %v6634_v54, %v6622_v43 }
0x4f23   :  { %v6637_v35 = vadd.f32 %v6635_v31, %v6623_v21 }
0x4f25   :  { %v6638_v14 = vpack.c.bf16 %v6637_v35, %v6636_v63 }
0x4f27   :  { %6640 = vrot.lane.b32.xlu1 %v6638_v14, %s8427_s28 }
0x4f99   :  { %v6641_v37 = vpop.permute.xlu1 %6640 }
0x4f9a   :  { %8043 = vmatmul.mubr.msk.bf16.vlgmr.msra.gmra.mrb[236].mxu0 %vm386_vm5, %v6641_v37 }
0x506d   :  { %v6679_v40 = vpop.f32.mrb[236].mxu0 }
0x506e   :  { %v6680_v58 = vadd.f32 %v8420_v30, %v6679_v40  ;;  %v8044_v61 = vpop.f32.mrb[237].mxu0 }
0x506f   :  { %v6682_v36 = vpop.f32.mrb[238].mxu0 }
0x5070   :  { %6692 = vst.msk [vmem:[%s10455_s24 + $0x30] sm:$0xff] %vm4952_vm6, %v6680_v58  ;;  %v6683_v41 = vadd.f32 %v8420_v30, %v6682_v36  ;;  %v8045_v51 = vpop.f32.mrb[239].mxu0 }
0x5072   :  { %6693 = vst.msk [vmem:[%s10455_s24 + $0x38] sm:$0xff] %vm4952_vm6, %v6683_v41 }

</bundles_post_ra>
